<compile_context>
chip_gen: v7x
topology: tpu7x:2x2x1
jax: 0.10.0
libtpu: 0.0.40
codegen_flags: <defaults>
</compile_context>

<pallas_src>
import jax
import jax.numpy as jnp
from jax.experimental import pallas as pl
from jax.experimental.pallas import tpu as pltpu

BN_EPS = 1e-5
LEAKY_SLOPE = 0.01   # nn.LeakyReLU default negative_slope
L2_EPS = 1e-12       # guards the L2 normalize against a zero vector

_VMEM_SPEC = pl.BlockSpec(memory_space=pltpu.MemorySpace.VMEM)


# ---------------------------------------------------------------------------
# Kernel
# ---------------------------------------------------------------------------
def _bn_leaky(z, gamma, beta):
    # BatchNorm1d, training mode: per-feature batch mean / biased variance,
    # single pass (var = E[z^2] - mean^2), gamma folded into the rsqrt scale.
    mean = jnp.mean(z, axis=0, keepdims=True)
    mean_sq = jnp.mean(z * z, axis=0, keepdims=True)
    var = mean_sq - mean * mean
    scale = gamma * jax.lax.rsqrt(var + BN_EPS)
    zn = (z - mean) * scale + beta
    return jnp.maximum(zn, LEAKY_SLOPE * zn)            # LeakyReLU, one VPU op


def _cross_modal_kernel(
    img_ref, txt_ref,                 # (B, C) pooled image, (B, orig_dim) text
    w_fold_ref,                       # (C, 2560)  image path folded into [W1|W2a]
    w_txt_ref,                        # (orig_dim, 32) text embed stand-in
    w_fa_txt_ref,                     # (32, 2560) text rows of [W1|W2a]
    g_fa_ref, be_fa_ref,              # fused BN(512)+BN(2048) params, (1, 2560)
    w2b_ref,                          # (2048, 512) Linear_fusing2 stage B
    g2b_ref, be2b_ref,                # BN(512) params
    o_ref,                            # (B, 512) L2-normalized output
):
    # --- text embed stand-in (pre-BN bias dropped: cancels under train-mode BN)
    txt_emb = jnp.dot(txt_ref[...].astype(jnp.bfloat16), w_txt_ref[...],
                      preferred_element_type=jnp.float32)          # (B, 32)

    # --- stage 1: both branches share the LHS; the torch.cat is replaced by a
    # split contraction (folded image rows + text rows) into one (B, 2560) z.
    z = (
        jnp.dot(img_ref[...].astype(jnp.bfloat16), w_fold_ref[...],
                preferred_element_type=jnp.float32)
        + jnp.dot(txt_emb.astype(jnp.bfloat16), w_fa_txt_ref[...],
                  preferred_element_type=jnp.float32)
    )                                                               # (B, 2560)

    act = _bn_leaky(z, g_fa_ref[...], be_fa_ref[...])               # BN + LeakyReLU
    y1 = act[:, :512]                                               # branch 1 (lane-aligned slice)
    h = act[:, 512:]                                                # branch 2 hidden, (B, 2048)

    # --- branch 2 stage B: Linear(2048 -> 512) + BN + LeakyReLU (bias dropped)
    y2 = _bn_leaky(
        jnp.dot(h.astype(jnp.bfloat16), w2b_ref[...],
                preferred_element_type=jnp.float32),
        g2b_ref[...], be2b_ref[...],
    )                                                               # (B, 512)

    # --- sum branches, L2-normalize with rsqrt (EUP path) ---
    f = y1 + y2
    inv = jax.lax.rsqrt(jnp.sum(f * f, axis=-1, keepdims=True) + L2_EPS)
    o_ref[...] = f * inv


# ---------------------------------------------------------------------------
# Wrapper
# ---------------------------------------------------------------------------
def cross_modal_forward(image_nchw, text_feature, params):
    # retrieval_net stand-in, part 1: global average pool NCHW -> (B, C).
    pooled = jnp.mean(image_nchw, axis=(2, 3))
    B, C = pooled.shape
    orig_dim = text_feature.shape[1]

    args = (
        pooled, text_feature,
        params["w_fold"],
        params["w_txt"],
        params["w_fa_txt"],
        params["g_fa"], params["be_fa"],
        params["w2b"],
        params["g2b"], params["be2b"],
    )

    # Advisory cost so XLA can overlap neighbors with this custom call.
    flops = 2 * B * (C * 2560 + orig_dim * 32 + 32 * 2560 + 2048 * 512)
    bytes_accessed = int(
        sum(a.size * a.dtype.itemsize for a in args) + B * 512 * 4
    )
    transcendentals = 2560 + 512 + B   # BN rsqrts + per-row L2 rsqrt

    return pl.pallas_call(
        _cross_modal_kernel,
        out_shape=jax.ShapeDtypeStruct((B, 512), jnp.float32),
        in_specs=[_VMEM_SPEC] * len(args),
        out_specs=_VMEM_SPEC,
        compiler_params=pltpu.CompilerParams(
            vmem_limit_bytes=32 * 1024 * 1024,
        ),
        cost_estimate=pl.CostEstimate(
            flops=flops,
            transcendentals=transcendentals,
            bytes_accessed=bytes_accessed,
        ),
    )(*args)


# ---------------------------------------------------------------------------
# Parameters
# ---------------------------------------------------------------------------
def init_params(key, in_channels, original_dim):
    ks = jax.random.split(key, 5)

    def lin_w(k, fan_in, fan_out):
        # PyTorch nn.Linear weight init (bias omitted: pre-BN biases cancel
        # exactly under train-mode BatchNorm, so they are not materialized).
        scale = 1.0 / jnp.sqrt(jnp.float32(fan_in))
        return jax.random.uniform(k, (fan_in, fan_out), jnp.float32, -scale, scale)

    w_img = lin_w(ks[0], in_channels, 1024)     # image embed stand-in, C -> 1024
    w_txt = lin_w(ks[1], original_dim, 32)      # text embed stand-in
    w1 = lin_w(ks[2], 1056, 512)                # Linear_fusing1
    w2a = lin_w(ks[3], 1056, 2048)              # Linear_fusing2 stage A
    w2b = lin_w(ks[4], 2048, 512)               # Linear_fusing2 stage B

    # Shared-LHS fusion of the two stage-1 matmuls: [W1 | W2a] is one (1056, 2560)
    # weight; split its K rows at 1024 (image) / 32 (text).
    w_fa = jnp.concatenate([w1, w2a], axis=1)   # (1056, 2560)
    w_fa_img = w_fa[:1024, :]                   # image rows
    w_fa_txt = w_fa[1024:, :]                   # text rows, (32, 2560)

    # Fold the image-embed linear into stage 1 (exact: no nonlinearity between).
    # Product in f32, then cast to bf16 for storage/MXU.
    w_fold = jnp.dot(w_img, w_fa_img)           # (C, 2560)
    # Text path is kept two-stage since original_dim > 32 (folding would grow bytes).

    def bn(n):
        # Fresh BatchNorm1d init: gamma = 1, beta = 0.
        return jnp.ones((1, n), jnp.float32), jnp.zeros((1, n), jnp.float32)

    g1, be1 = bn(512)
    g2a, be2a = bn(2048)
    g2b, be2b = bn(512)
    g_fa = jnp.concatenate([g1, g2a], axis=1)   # (1, 2560)
    be_fa = jnp.concatenate([be1, be2a], axis=1)

    bf16 = jnp.bfloat16
    return dict(
        w_fold=w_fold.astype(bf16),
        w_txt=w_txt.astype(bf16),
        w_fa_txt=w_fa_txt.astype(bf16),
        g_fa=g_fa, be_fa=be_fa,
        w2b=w2b.astype(bf16),
        g2b=g2b, be2b=be2b,
    )


# ---------------------------------------------------------------------------
# Demo
# ---------------------------------------------------------------------------
if __name__ == "__main__":
    B, C, H, W = 2, 4, 16, 16
    ORIGINAL_DIM = 64

    key = jax.random.PRNGKey(0)
    k_img, k_txt, k_par = jax.random.split(key, 3)

    image = jax.random.normal(k_img, (B, C, H, W), jnp.float32)          # NCHW, like PyTorch
    text_feature = jax.random.normal(k_txt, (B, ORIGINAL_DIM), jnp.float32)
    params = init_params(k_par, C, ORIGINAL_DIM)

    out = jax.jit(cross_modal_forward)(image, text_feature, params)
    out = jax.block_until_ready(out)

    assert out.shape == (B, 512)
    # output is L2-normalized along the last dim
    norms = jnp.linalg.norm(out, axis=-1)
    assert jnp.allclose(norms, 1.0, atol=1e-3)

    print("KERNEL_OK")
</pallas_src>

<mosaic_0001>
module attributes {stable_mosaic.version = 11 : i64} {
  func.func @_cross_modal_kernel(%arg0: memref<2x4xf32, #tpu.memory_space<vmem>>, %arg1: memref<2x64xf32, #tpu.memory_space<vmem>>, %arg2: memref<4x2560xbf16, #tpu.memory_space<vmem>>, %arg3: memref<64x32xbf16, #tpu.memory_space<vmem>>, %arg4: memref<32x2560xbf16, #tpu.memory_space<vmem>>, %arg5: memref<1x2560xf32, #tpu.memory_space<vmem>>, %arg6: memref<1x2560xf32, #tpu.memory_space<vmem>>, %arg7: memref<2048x512xbf16, #tpu.memory_space<vmem>>, %arg8: memref<1x512xf32, #tpu.memory_space<vmem>>, %arg9: memref<1x512xf32, #tpu.memory_space<vmem>>, %arg10: memref<2x512xf32, #tpu.memory_space<vmem>>) attributes {dimension_semantics = [], scalar_prefetch = 0 : i64, scratch_operands = 0 : i64, tpu.core_type = #tpu.core_type<tc>} {
    %c0 = arith.constant 0 : index
    %c0_0 = arith.constant 0 : index
    %0 = vector.load %arg1[%c0, %c0_0] : memref<2x64xf32, #tpu.memory_space<vmem>>, vector<2x64xf32>
    %1 = arith.truncf %0 : vector<2x64xf32> to vector<2x64xbf16>
    %c0_1 = arith.constant 0 : index
    %c0_2 = arith.constant 0 : index
    %2 = vector.load %arg3[%c0_1, %c0_2] : memref<64x32xbf16, #tpu.memory_space<vmem>>, vector<64x32xbf16>
    %cst = arith.constant dense<0.000000e+00> : vector<2x32xf32>
    %3 = tpu.matmul %1, %2, %cst {dimension_numbers = #tpu.dot_dimension_numbers<[1], [0], [0], [1], [0, 0, 1, 1], [], []>} : vector<2x64xbf16>, vector<64x32xbf16>, vector<2x32xf32> -> vector<2x32xf32>
    %c0_3 = arith.constant 0 : index
    %c0_4 = arith.constant 0 : index
    %4 = vector.load %arg0[%c0_3, %c0_4] : memref<2x4xf32, #tpu.memory_space<vmem>>, vector<2x4xf32>
    %5 = arith.truncf %4 : vector<2x4xf32> to vector<2x4xbf16>
    %c0_5 = arith.constant 0 : index
    %c0_6 = arith.constant 0 : index
    %6 = vector.load %arg2[%c0_5, %c0_6] : memref<4x2560xbf16, #tpu.memory_space<vmem>>, vector<4x2560xbf16>
    %cst_7 = arith.constant dense<0.000000e+00> : vector<2x2560xf32>
    %7 = tpu.matmul %5, %6, %cst_7 {dimension_numbers = #tpu.dot_dimension_numbers<[1], [0], [0], [1], [0, 0, 1, 1], [], []>} : vector<2x4xbf16>, vector<4x2560xbf16>, vector<2x2560xf32> -> vector<2x2560xf32>
    %8 = arith.truncf %3 : vector<2x32xf32> to vector<2x32xbf16>
    %c0_8 = arith.constant 0 : index
    %c0_9 = arith.constant 0 : index
    %9 = vector.load %arg4[%c0_8, %c0_9] : memref<32x2560xbf16, #tpu.memory_space<vmem>>, vector<32x2560xbf16>
    %cst_10 = arith.constant dense<0.000000e+00> : vector<2x2560xf32>
    %10 = tpu.matmul %8, %9, %cst_10 {dimension_numbers = #tpu.dot_dimension_numbers<[1], [0], [0], [1], [0, 0, 1, 1], [], []>} : vector<2x32xbf16>, vector<32x2560xbf16>, vector<2x2560xf32> -> vector<2x2560xf32>
    %11 = arith.addf %7, %10 : vector<2x2560xf32>
    %c0_11 = arith.constant 0 : index
    %c0_12 = arith.constant 0 : index
    %12 = vector.load %arg5[%c0_11, %c0_12] : memref<1x2560xf32, #tpu.memory_space<vmem>>, vector<1x2560xf32>
    %c0_13 = arith.constant 0 : index
    %c0_14 = arith.constant 0 : index
    %13 = vector.load %arg6[%c0_13, %c0_14] : memref<1x2560xf32, #tpu.memory_space<vmem>>, vector<1x2560xf32>
    %cst_15 = arith.constant dense<0.000000e+00> : vector<2560xf32>
    %14 = vector.multi_reduction <add>, %11, %cst_15 [0] : vector<2x2560xf32> to vector<2560xf32>
    %15 = vector.shape_cast %14 : vector<2560xf32> to vector<1x2560xf32>
    %cst_16 = arith.constant 2.000000e+00 : f32
    %16 = vector.broadcast %cst_16 : f32 to vector<1x2560xf32>
    %17 = arith.divf %15, %16 : vector<1x2560xf32>
    %18 = arith.mulf %11, %11 : vector<2x2560xf32>
    %cst_17 = arith.constant dense<0.000000e+00> : vector<2560xf32>
    %19 = vector.multi_reduction <add>, %18, %cst_17 [0] : vector<2x2560xf32> to vector<2560xf32>
    %20 = vector.shape_cast %19 : vector<2560xf32> to vector<1x2560xf32>
    %cst_18 = arith.constant 2.000000e+00 : f32
    %21 = vector.broadcast %cst_18 : f32 to vector<1x2560xf32>
    %22 = arith.divf %20, %21 : vector<1x2560xf32>
    %23 = arith.mulf %17, %17 : vector<1x2560xf32>
    %24 = arith.subf %22, %23 : vector<1x2560xf32>
    %cst_19 = arith.constant 9.99999974E-6 : f32
    %25 = vector.broadcast %cst_19 : f32 to vector<1x2560xf32>
    %26 = arith.addf %24, %25 : vector<1x2560xf32>
    %27 = math.rsqrt %26 : vector<1x2560xf32>
    %28 = arith.mulf %12, %27 : vector<1x2560xf32>
    %29 = vector.broadcast %17 : vector<1x2560xf32> to vector<2x2560xf32>
    %30 = arith.subf %11, %29 : vector<2x2560xf32>
    %31 = vector.broadcast %28 : vector<1x2560xf32> to vector<2x2560xf32>
    %32 = arith.mulf %30, %31 : vector<2x2560xf32>
    %33 = vector.broadcast %13 : vector<1x2560xf32> to vector<2x2560xf32>
    %34 = arith.addf %32, %33 : vector<2x2560xf32>
    %cst_20 = arith.constant 0.00999999977 : f32
    %35 = vector.broadcast %cst_20 : f32 to vector<2x2560xf32>
    %36 = arith.mulf %35, %34 : vector<2x2560xf32>
    %37 = arith.maximumf %34, %36 : vector<2x2560xf32>
    %38 = vector.extract_strided_slice %37 {offsets = [0, 0], sizes = [2, 512], strides = [1, 1]} : vector<2x2560xf32> to vector<2x512xf32>
    %39 = vector.extract_strided_slice %37 {offsets = [0, 512], sizes = [2, 2048], strides = [1, 1]} : vector<2x2560xf32> to vector<2x2048xf32>
    %40 = arith.truncf %39 : vector<2x2048xf32> to vector<2x2048xbf16>
    %c0_21 = arith.constant 0 : index
    %c0_22 = arith.constant 0 : index
    %41 = vector.load %arg7[%c0_21, %c0_22] : memref<2048x512xbf16, #tpu.memory_space<vmem>>, vector<2048x512xbf16>
    %cst_23 = arith.constant dense<0.000000e+00> : vector<2x512xf32>
    %42 = tpu.matmul %40, %41, %cst_23 {dimension_numbers = #tpu.dot_dimension_numbers<[1], [0], [0], [1], [0, 0, 1, 1], [], []>} : vector<2x2048xbf16>, vector<2048x512xbf16>, vector<2x512xf32> -> vector<2x512xf32>
    %c0_24 = arith.constant 0 : index
    %c0_25 = arith.constant 0 : index
    %43 = vector.load %arg8[%c0_24, %c0_25] : memref<1x512xf32, #tpu.memory_space<vmem>>, vector<1x512xf32>
    %c0_26 = arith.constant 0 : index
    %c0_27 = arith.constant 0 : index
    %44 = vector.load %arg9[%c0_26, %c0_27] : memref<1x512xf32, #tpu.memory_space<vmem>>, vector<1x512xf32>
    %cst_28 = arith.constant dense<0.000000e+00> : vector<512xf32>
    %45 = vector.multi_reduction <add>, %42, %cst_28 [0] : vector<2x512xf32> to vector<512xf32>
    %46 = vector.shape_cast %45 : vector<512xf32> to vector<1x512xf32>
    %cst_29 = arith.constant 2.000000e+00 : f32
    %47 = vector.broadcast %cst_29 : f32 to vector<1x512xf32>
    %48 = arith.divf %46, %47 : vector<1x512xf32>
    %49 = arith.mulf %42, %42 : vector<2x512xf32>
    %cst_30 = arith.constant dense<0.000000e+00> : vector<512xf32>
    %50 = vector.multi_reduction <add>, %49, %cst_30 [0] : vector<2x512xf32> to vector<512xf32>
    %51 = vector.shape_cast %50 : vector<512xf32> to vector<1x512xf32>
    %cst_31 = arith.constant 2.000000e+00 : f32
    %52 = vector.broadcast %cst_31 : f32 to vector<1x512xf32>
    %53 = arith.divf %51, %52 : vector<1x512xf32>
    %54 = arith.mulf %48, %48 : vector<1x512xf32>
    %55 = arith.subf %53, %54 : vector<1x512xf32>
    %cst_32 = arith.constant 9.99999974E-6 : f32
    %56 = vector.broadcast %cst_32 : f32 to vector<1x512xf32>
    %57 = arith.addf %55, %56 : vector<1x512xf32>
    %58 = math.rsqrt %57 : vector<1x512xf32>
    %59 = arith.mulf %43, %58 : vector<1x512xf32>
    %60 = vector.broadcast %48 : vector<1x512xf32> to vector<2x512xf32>
    %61 = arith.subf %42, %60 : vector<2x512xf32>
    %62 = vector.broadcast %59 : vector<1x512xf32> to vector<2x512xf32>
    %63 = arith.mulf %61, %62 : vector<2x512xf32>
    %64 = vector.broadcast %44 : vector<1x512xf32> to vector<2x512xf32>
    %65 = arith.addf %63, %64 : vector<2x512xf32>
    %cst_33 = arith.constant 0.00999999977 : f32
    %66 = vector.broadcast %cst_33 : f32 to vector<2x512xf32>
    %67 = arith.mulf %66, %65 : vector<2x512xf32>
    %68 = arith.maximumf %65, %67 : vector<2x512xf32>
    %69 = arith.addf %38, %68 : vector<2x512xf32>
    %70 = arith.mulf %69, %69 : vector<2x512xf32>
    %cst_34 = arith.constant dense<0.000000e+00> : vector<2xf32>
    %71 = vector.multi_reduction <add>, %70, %cst_34 [1] : vector<2x512xf32> to vector<2xf32>
    %72 = vector.shape_cast %71 : vector<2xf32> to vector<2x1xf32>
    %cst_35 = arith.constant 9.99999996E-13 : f32
    %73 = vector.broadcast %cst_35 : f32 to vector<2x1xf32>
    %74 = arith.addf %72, %73 : vector<2x1xf32>
    %75 = math.rsqrt %74 : vector<2x1xf32>
    %76 = vector.broadcast %75 : vector<2x1xf32> to vector<2x512xf32>
    %77 = arith.mulf %69, %76 : vector<2x512xf32>
    %c0_36 = arith.constant 0 : index
    %c0_37 = arith.constant 0 : index
    %78 = vector.load %arg10[%c0_36, %c0_37] : memref<2x512xf32, #tpu.memory_space<vmem>>, vector<2x512xf32>
    tpu.vector_store %arg10[%c0_36, %c0_37], %77 {strides = array<i32>} : memref<2x512xf32, #tpu.memory_space<vmem>>, vector<2x512xf32>,
    return
  }
}

</mosaic_0001>

<bundles_post_ra>
// kernel: cross_modal_forward.1
= control target key start
LH: loop header
LB: loop body
LE: loop exit
PB: predicated region body
PF: predicated region fallthrough
CT: control target
= control target key end

     0   :  { %15 = vsyncpa [#allocation3], 0  ;;  %s9027_s0 = inlined_call_operand.vmem [shape: f32[2,4], index: 0, kind: input, shape index: {}]   ;;  %s9028_s1 = inlined_call_operand.hbm [shape: f32[2,64], index: 1, kind: input, shape index: {}]   ;;  %s9029_s2 = inlined_call_operand.hbm [shape: bf16[4,2560], index: 2, kind: input, shape index: {}]   ;;  %s9030_s3 = inlined_call_operand.vmem [shape: bf16[64,32], index: 3, kind: input, shape index: {}]   ;;  %s9031_s4 = inlined_call_operand.hbm [shape: bf16[32,2560], index: 4, kind: input, shape index: {}]   ;;  %s9032_s5 = inlined_call_operand.hbm [shape: f32[1,2560], index: 5, kind: input, shape index: {}]   ;;  %s9033_s6 = inlined_call_operand.hbm [shape: f32[1,2560], index: 6, kind: input, shape index: {}]   ;;  %s9034_s7 = inlined_call_operand.hbm [shape: bf16[2048,512], index: 7, kind: input, shape index: {}]   ;;  %s9035_s8 = inlined_call_operand.hbm [shape: f32[1,512], index: 8, kind: input, shape index: {}]   ;;  %s9036_s9 = inlined_call_operand.hbm [shape: f32[1,512], index: 9, kind: input, shape index: {}]   ;;  %s9037_s10 = inlined_call_operand.hbm [shape: f32[2,512], index: 10, kind: output, shape index: {}]  }
   0x1   :  { %16 = vsyncpa [#allocation6], 0 }
   0x2   :  { %17 = vsyncpa [#allocation9], 0 }
   0x3   :  { %18 = vsyncpa [#allocation12], 0 }
   0x4   :  { %19 = vsyncpa [#allocation15], 0 }
   0x5   :  { %20 = vsyncpa [#allocation4], 0  ;;  %s8121_s13 = smov [#allocation5]   ;;  %s8122_s15 = smov [#allocation8]  }
   0x6   :  { %s39_s14 = sshll.u32 %s8121_s13, 4  ;;  %s63_s16 = sshll.u32 %s8122_s15, 4  ;;  %s40_s14 = int_to_ptr.vmem [resolvable:$true] %s39_s14  ;;  %s64_s16 = int_to_ptr.vmem [resolvable:$true] %s63_s16 }
   0x7   :  { %s7911_s19 = scalar_lea.hbm %s9029_s2, 640 }
   0x8   :  { %p7912_p0 = scmp.ne.s32.totalorder %s9029_s2, %s7911_s19  ;;  %p7915_p1 = scmp.lt.u32.totalorder %s7911_s19, %s9029_s2 }
   0xa   :  { %p7917_p2 = pnand %p7915_p1, %p7912_p0 }
   0xc   :  { %7920 = shalt.err (!%p7917_p2)
}
   0xd   :  { %s7921_s24 = scalar_lea.vmem %s40_s14, 640  ;;  %p7926_p4 = scmp.lt.s32.totalorder %s40_s14, %s40_s14 }
   0xe   :  { %p7922_p3 = scmp.ne.s32.totalorder %s40_s14, %s7921_s24  ;;  %p7927_p5 = scmp.lt.s32.totalorder %s7921_s24, %s7921_s24 }
  0x10   :  { %p7928_p6 = por %p7927_p5, %p7926_p4 }
  0x12   :  { %p7929_p7 = pnand %p7928_p6, %p7922_p3 }
  0x14   :  { %7932 = shalt.err (!%p7929_p7)
}
  0x15   :  { %42 = dma.hbm_to_vmem [thread:$0]  %s9029_s2, 640, %s40_s14, [#allocation6]  }
  0x16   :  { %s7933_s29 = scalar_lea.hbm %s9032_s5, 320 }
  0x17   :  { %p7934_p8 = scmp.ne.s32.totalorder %s9032_s5, %s7933_s29  ;;  %p7937_p9 = scmp.lt.u32.totalorder %s7933_s29, %s9032_s5 }
  0x19   :  { %p7939_p10 = pnand %p7937_p9, %p7934_p8 }
  0x1b   :  { %7942 = shalt.err (!%p7939_p10)
}
  0x1c   :  { %s7943_s15 = scalar_lea.vmem %s64_s16, 320  ;;  %p7948_p12 = scmp.lt.s32.totalorder %s64_s16, %s64_s16 }
  0x1d   :  { %p7944_p11 = scmp.ne.s32.totalorder %s64_s16, %s7943_s15  ;;  %p7949_p13 = scmp.lt.s32.totalorder %s7943_s15, %s7943_s15 }
  0x1f   :  { %p7950_p0 = por %p7949_p13, %p7948_p12 }
  0x21   :  { %p7951_p1 = pnand %p7950_p0, %p7944_p11 }
  0x23   :  { %7954 = shalt.err (!%p7951_p1)
}
  0x24   :  { %66 = dma.hbm_to_vmem [thread:$0]  %s9032_s5, 320, %s64_s16, [#allocation9]  }
  0x25   :  { %s8123_s17 = smov [#allocation11]   ;;  %s7955_s21 = scalar_lea.hbm %s9034_s7, 65536 }
  0x26   :  { %s82_s18 = sshll.u32 %s8123_s17, 4  ;;  %p7956_p2 = scmp.ne.s32.totalorder %s9034_s7, %s7955_s21  ;;  %s83_s18 = int_to_ptr.vmem [resolvable:$true] %s82_s18 }
  0x27   :  { %p7959_p3 = scmp.lt.u32.totalorder %s7955_s21, %s9034_s7 }
  0x29   :  { %p7961_p4 = pnand %p7959_p3, %p7956_p2 }
  0x2b   :  { %7964 = shalt.err (!%p7961_p4)
}
  0x2c   :  { %s7965_s26 = scalar_lea.vmem %s83_s18, 65536  ;;  %p7970_p6 = scmp.lt.s32.totalorder %s83_s18, %s83_s18 }
  0x2d   :  { %p7966_p5 = scmp.ne.s32.totalorder %s83_s18, %s7965_s26  ;;  %p7971_p7 = scmp.lt.s32.totalorder %s7965_s26, %s7965_s26 }
  0x2f   :  { %p7972_p8 = por %p7971_p7, %p7970_p6 }
  0x31   :  { %p7973_p9 = pnand %p7972_p8, %p7966_p5 }
  0x33   :  { %7976 = shalt.err (!%p7973_p9)
}
  0x34   :  { %s8124_s5 = smov 256   ;;  %s8125_s16 = smov 16  }
  0x35   :  { %88 = dma.hbm_to_vmem [thread:$0]  %s9034_s7, 65536, %s83_s18, [#allocation12], %s8124_s5, %s8124_s5, %s8125_s16  }
  0x36   :  { %s8126_s29 = smov [#allocation2]   ;;  %s8127_s11 = smov [#allocation7]  }
  0x37   :  { %s29_s30 = sshll.u32 %s8126_s29, 4  ;;  %s50_s12 = sshll.u32 %s8127_s11, 4  ;;  %s30_s30 = int_to_ptr.vmem [resolvable:$true] %s29_s30  ;;  %s51_s12 = int_to_ptr.vmem [resolvable:$true] %s50_s12 }
  0x38   :  { %s7977_s2 = scalar_lea.hbm %s9028_s1, 32 }
  0x39   :  { %p7978_p10 = scmp.ne.s32.totalorder %s9028_s1, %s7977_s2  ;;  %p7981_p11 = scmp.lt.u32.totalorder %s7977_s2, %s9028_s1 }
  0x3b   :  { %p7983_p12 = pnand %p7981_p11, %p7978_p10 }
  0x3d   :  { %7986 = shalt.err (!%p7983_p12)
}
  0x3e   :  { %s7987_s7 = scalar_lea.vmem %s30_s30, 32  ;;  %p7992_p0 = scmp.lt.s32.totalorder %s30_s30, %s30_s30 }
  0x3f   :  { %p7988_p13 = scmp.ne.s32.totalorder %s30_s30, %s7987_s7  ;;  %p7993_p1 = scmp.lt.s32.totalorder %s7987_s7, %s7987_s7 }
  0x41   :  { %p7994_p2 = por %p7993_p1, %p7992_p0 }
  0x43   :  { %p7995_p3 = pnand %p7994_p2, %p7988_p13 }
  0x45   :  { %7998 = shalt.err (!%p7995_p3)
}
  0x46   :  { %32 = dma.hbm_to_vmem [thread:$0]  %s9028_s1, 32, %s30_s30, [#allocation3]  }
  0x47   :  { %s7999_s24 = scalar_lea.hbm %s9031_s4, 5120 }
  0x48   :  { %p8000_p4 = scmp.ne.s32.totalorder %s9031_s4, %s7999_s24  ;;  %p8003_p5 = scmp.lt.u32.totalorder %s7999_s24, %s9031_s4 }
  0x4a   :  { %p8005_p6 = pnand %p8003_p5, %p8000_p4 }
  0x4c   :  { %8008 = shalt.err (!%p8005_p6)
}
  0x4d   :  { %s8009_s27 = scalar_lea.vmem %s51_s12, 5120  ;;  %p8014_p8 = scmp.lt.s32.totalorder %s51_s12, %s51_s12 }
  0x4e   :  { %p8010_p7 = scmp.ne.s32.totalorder %s51_s12, %s8009_s27  ;;  %p8015_p9 = scmp.lt.s32.totalorder %s8009_s27, %s8009_s27 }
  0x50   :  { %p8016_p10 = por %p8015_p9, %p8014_p8 }
  0x52   :  { %p8017_p11 = pnand %p8016_p10, %p8010_p7 }
  0x54   :  { %8020 = shalt.err (!%p8017_p11)
}
  0x55   :  { %s8128_s1 = smov 1280   ;;  %s8129_s28 = smov 80  }
  0x56   :  { %56 = dma.hbm_to_vmem [thread:$0]  %s9031_s4, 5120, %s51_s12, [#allocation6], %s8128_s1, %s8128_s1, %s8129_s28  }
  0x57   :  { %s8130_s11 = smov [#allocation10]   ;;  %s8131_s15 = smov [#allocation13]  }
  0x58   :  { %s73_s13 = sshll.u32 %s8130_s11, 4  ;;  %s95_s2 = sshll.u32 %s8131_s15, 4  ;;  %s74_s13 = int_to_ptr.vmem [resolvable:$true] %s73_s13  ;;  %s96_s2 = int_to_ptr.vmem [resolvable:$true] %s95_s2 }
  0x59   :  { %s8021_s19 = scalar_lea.hbm %s9033_s6, 320 }
  0x5a   :  { %p8022_p12 = scmp.ne.s32.totalorder %s9033_s6, %s8021_s19  ;;  %p8025_p13 = scmp.lt.u32.totalorder %s8021_s19, %s9033_s6 }
  0x5c   :  { %p8027_p0 = pnand %p8025_p13, %p8022_p12 }
  0x5e   :  { %8030 = shalt.err (!%p8027_p0)
}
  0x5f   :  { %s8031_s4 = scalar_lea.vmem %s74_s13, 320  ;;  %p8036_p2 = scmp.lt.s32.totalorder %s74_s13, %s74_s13 }
  0x60   :  { %p8032_p1 = scmp.ne.s32.totalorder %s74_s13, %s8031_s4  ;;  %p8037_p3 = scmp.lt.s32.totalorder %s8031_s4, %s8031_s4 }
  0x62   :  { %p8038_p4 = por %p8037_p3, %p8036_p2 }
  0x64   :  { %p8039_p5 = pnand %p8038_p4, %p8032_p1 }
  0x66   :  { %8042 = shalt.err (!%p8039_p5)
}
  0x67   :  { %76 = dma.hbm_to_vmem [thread:$0]  %s9033_s6, 320, %s74_s13, [#allocation9]  }
  0x68   :  { %s8043_s25 = scalar_lea.hbm %s9035_s8, 64 }
  0x69   :  { %p8044_p6 = scmp.ne.s32.totalorder %s9035_s8, %s8043_s25  ;;  %p8047_p7 = scmp.lt.u32.totalorder %s8043_s25, %s9035_s8 }
  0x6b   :  { %p8049_p8 = pnand %p8047_p7, %p8044_p6 }
  0x6d   :  { %8052 = shalt.err (!%p8049_p8)
}
  0x6e   :  { %s8053_s1 = scalar_lea.vmem %s96_s2, 64  ;;  %p8058_p10 = scmp.lt.s32.totalorder %s96_s2, %s96_s2 }
  0x6f   :  { %p8054_p9 = scmp.ne.s32.totalorder %s96_s2, %s8053_s1  ;;  %p8059_p11 = scmp.lt.s32.totalorder %s8053_s1, %s8053_s1 }
  0x71   :  { %p8060_p12 = por %p8059_p11, %p8058_p10 }
  0x73   :  { %p8061_p13 = pnand %p8060_p12, %p8054_p9 }
  0x75   :  { %8064 = shalt.err (!%p8061_p13)
}
  0x76   :  { %98 = dma.hbm_to_vmem [thread:$0]  %s9035_s8, 64, %s96_s2, [#allocation12]  }
  0x77   :  { %s8132_s29 = smov [#allocation14]   ;;  %s8065_s15 = scalar_lea.hbm %s9036_s9, 64 }
  0x78   :  { %s105_s30 = sshll.u32 %s8132_s29, 4  ;;  %p8066_p0 = scmp.ne.s32.totalorder %s9036_s9, %s8065_s15  ;;  %s106_s30 = int_to_ptr.vmem [resolvable:$true] %s105_s30 }
  0x79   :  { %p8069_p1 = scmp.lt.u32.totalorder %s8065_s15, %s9036_s9 }
  0x7b   :  { %p8071_p2 = pnand %p8069_p1, %p8066_p0 }
  0x7d   :  { %8074 = shalt.err (!%p8071_p2)
}
  0x7e   :  { %s8075_s7 = scalar_lea.vmem %s106_s30, 64  ;;  %p8080_p4 = scmp.lt.s32.totalorder %s106_s30, %s106_s30 }
  0x7f   :  { %p8076_p3 = scmp.ne.s32.totalorder %s106_s30, %s8075_s7  ;;  %p8081_p5 = scmp.lt.s32.totalorder %s8075_s7, %s8075_s7 }
  0x81   :  { %p8082_p6 = por %p8081_p5, %p8080_p4 }
  0x83   :  { %p8083_p7 = pnand %p8082_p6, %p8076_p3 }
  0x85   :  { %8086 = shalt.err (!%p8083_p7)
}
  0x86   :  { %108 = dma.hbm_to_vmem [thread:$0]  %s9036_s9, 64, %s106_s30, [#allocation15]  }
  0x87   :  { %8109 = dma.done.wait [#allocation3], 32  }
  0x88   :  { %8110 = vsyncadd [#allocation3], 4294967264 }
  0x89   :  { %8111 = dma.done.wait [#allocation6], 5760  }
  0x8a   :  { %8112 = vsyncadd [#allocation6], 4294961536 }
  0x8b   :  { %8113 = dma.done.wait [#allocation9], 640  }
  0x8c   :  { %8114 = vsyncadd [#allocation9], 4294966656 }
  0x8d   :  { %8115 = dma.done.wait [#allocation12], 65600  }
  0x8e   :  { %8116 = vsyncadd [#allocation12], 4294901696 }
  0x8f   :  { %8117 = dma.done.wait [#allocation15], 64  }
  0x90   :  { %8118 = vsyncadd [#allocation15], 4294967232  ;;  %v8133_v0 = vmov 0.0   ;;  %vm8134_vm0 = vmmov 0   ;;  %v7023_v1 = vld [vmem:[%s9030_s3] sm:$0xff]   ;;  %v7024_v2 = vld [vmem:[%s9030_s3 + $0x8] sm:$0xff]   ;;  %v883_v41 = vlaneseq }
  0x91   :  { %6899 = vmatprep.subr.bf16.mxu0 %v8133_v0  ;;  %6907 = vmatprep.mubr.msk.bf16.mxu0 %vm8134_vm0, %v8133_v0  ;;  %v7027_v3 = vld [vmem:[#allocation7 + $0xc] ss:$80 sps:$4 sm:$0xff]   ;;  %v7032_v5 = vld [vmem:[#allocation7 + $0x8] ss:$80 sps:$4 sm:$0xff]   ;;  %v134_v8 = vld [vmem:[#allocation2] sm:$0x3] }
  0x92   :  { %6900 = vmatpush3.bf16.msra.mxu0 %v7023_v1  ;;  %v7025_v4 = vld [vmem:[%s9030_s3 + $0x10] sm:$0xff]   ;;  %505 = vmatprep.subr.bf16.mxu1 %v7027_v3  ;;  %v7026_v7 = vld [vmem:[%s9030_s3 + $0x18] sm:$0xff]   ;;  %v135_v12 = vpack.c.bf16 %v134_v8, %v134_v8  ;;  %vm168_vm1 = vcmask 523264   ;;  %v8135_v17 = vmov 0   ;;  %vm460_vm2 = vcmask 261120   ;;  %v214_v53 = vld [vmem:[#allocation5] sm:$0xff] }
  0x93   :  { %6901 = vmatprep.subr.bf16.mxu0 %v8133_v0  ;;  %v7033_v6 = vld [vmem:[#allocation7 + $0xac] ss:$80 sps:$4 sm:$0xff]   ;;  %506 = vmatpush1.bf16.msra.mxu1 %v7032_v5  ;;  %v7031_v9 = vld [vmem:[#allocation7 + $0x4] ss:$80 sps:$4 sm:$0xff]   ;;  %v7038_v10 = vld [vmem:[#allocation7 + $0xa8] ss:$80 sps:$4 sm:$0xff]   ;;  %v879_v61 = vcombine.high %v214_v53, %v214_v53 }
  0x94   :  { %507 = vmatprep.subr.bf16.mxu1 %v7033_v6  ;;  %v7029_v11 = vld [vmem:[#allocation7] ss:$80 sps:$4 sm:$0xff]   ;;  %v7037_v13 = vld [vmem:[#allocation7 + $0xa4] ss:$80 sps:$4 sm:$0xff]   ;;  %v7041_v15 = vld [vmem:[#allocation7 + $0x1c] ss:$80 sps:$4 sm:$0xff]   ;;  %537 = vmatprep.mubr.bf16.mxu1 %v8135_v17 }
  0x95   :  { %v7035_v14 = vld [vmem:[#allocation7 + $0xa0] ss:$80 sps:$4 sm:$0xff]   ;;  %v7044_v16 = vld [vmem:[#allocation7 + $0x14] ss:$80 sps:$4 sm:$0xff]   ;;  %v7039_v19 = vld [vmem:[#allocation7 + $0x18] ss:$80 sps:$4 sm:$0xff]  }
  0x96   :  { %6902 = vmatpush3.bf16.msra.mxu0 %v7024_v2  ;;  %v7042_v20 = vld [vmem:[#allocation7 + $0x10] ss:$80 sps:$4 sm:$0xff]   ;;  %v7047_v23 = vld [vmem:[#allocation7 + $0xbc] ss:$80 sps:$4 sm:$0xff]   ;;  %v7050_v24 = vld [vmem:[#allocation7 + $0xb4] ss:$80 sps:$4 sm:$0xff]  }
  0x97   :  { %6903 = vmatprep.subr.bf16.mxu0 %v8133_v0  ;;  %508 = vmatpush1.bf16.msra.mxu1 %v7038_v10  ;;  %v7045_v27 = vld [vmem:[#allocation7 + $0xb8] ss:$80 sps:$4 sm:$0xff]   ;;  %v7048_v28 = vld [vmem:[#allocation7 + $0xb0] ss:$80 sps:$4 sm:$0xff]   ;;  %v7053_v29 = vld [vmem:[#allocation7 + $0x2c] ss:$80 sps:$4 sm:$0xff]  }
  0x98   :  { %587 = vmatprep.subr.bf16.mxu1 %v7041_v15  ;;  %v7056_v30 = vld [vmem:[#allocation7 + $0x24] ss:$80 sps:$4 sm:$0xff]   ;;  %v7051_v31 = vld [vmem:[#allocation7 + $0x28] ss:$80 sps:$4 sm:$0xff]   ;;  %v7054_v32 = vld [vmem:[#allocation7 + $0x20] ss:$80 sps:$4 sm:$0xff]  }
  0x99   :  { %v7059_v33 = vld [vmem:[#allocation7 + $0xcc] ss:$80 sps:$4 sm:$0xff]   ;;  %v7062_v34 = vld [vmem:[#allocation7 + $0xc4] ss:$80 sps:$4 sm:$0xff]   ;;  %v7057_v35 = vld [vmem:[#allocation7 + $0xc8] ss:$80 sps:$4 sm:$0xff]  }
  0x9a   :  { %6904 = vmatpush3.bf16.msra.mxu0 %v7025_v4  ;;  %v7060_v36 = vld [vmem:[#allocation7 + $0xc0] ss:$80 sps:$4 sm:$0xff]   ;;  %v7065_v37 = vld [vmem:[#allocation7 + $0x3c] ss:$80 sps:$4 sm:$0xff]   ;;  %v7068_v38 = vld [vmem:[#allocation7 + $0x34] ss:$80 sps:$4 sm:$0xff]  }
  0x9b   :  { %6905 = vmatprep.subr.bf16.mxu0 %v8133_v0  ;;  %v8136_v39 = vmov 1983009808   ;;  %v7063_v42 = vld [vmem:[#allocation7 + $0x38] ss:$80 sps:$4 sm:$0xff]   ;;  %v7066_v43 = vld [vmem:[#allocation7 + $0x30] ss:$80 sps:$4 sm:$0xff]  }
  0x9c   :  { %v881_v40 = vunpack.c.l.s4 %v8136_v39  ;;  %v7071_v44 = vld [vmem:[#allocation7 + $0xdc] ss:$80 sps:$4 sm:$0xff]   ;;  %v7074_v45 = vld [vmem:[#allocation7 + $0xd4] ss:$80 sps:$4 sm:$0xff]   ;;  %v8318_v47 = vshrl.u32 %v883_v41, 7  ;;  %vm968_vm3 = vcmask 1041408  }
  0x9d   :  { %v7069_v48 = vld [vmem:[#allocation7 + $0xd8] ss:$80 sps:$4 sm:$0xff]   ;;  %v7072_v49 = vld [vmem:[#allocation7 + $0xd0] ss:$80 sps:$4 sm:$0xff]   ;;  %v7077_v50 = vld [vmem:[#allocation7 + $0x4c] ss:$80 sps:$4 sm:$0xff]  }
  0x9e   :  { %6906 = vmatpush3.bf16.msra.mxu0 %v7026_v7  ;;  %v882_v46 = vunpack.c.0.s8 %v881_v40  ;;  %v7080_v51 = vld [vmem:[#allocation7 + $0x44] ss:$80 sps:$4 sm:$0xff]   ;;  %v7075_v55 = vld [vmem:[#allocation7 + $0x48] ss:$80 sps:$4 sm:$0xff]   ;;  %v7078_v56 = vld [vmem:[#allocation7 + $0x40] ss:$80 sps:$4 sm:$0xff]  }
  0x9f   :  { %464 = vmatprep.subr.bf16.mxu0 %v7031_v9  ;;  %v215_v54 = vld [vmem:[#allocation5 + $0x8] sm:$0xff]  ;;  %v7083_v57 = vld [vmem:[#allocation7 + $0xec] ss:$80 sps:$4 sm:$0xff]   ;;  %v7081_v63 = vld [vmem:[#allocation7 + $0xe8] ss:$80 sps:$4 sm:$0xff]   ;;  %vm964_vm4 = vcmask 31744  }
  0xa0   :  { %v8325_v52 = vsub.s32 %v882_v46, %v8318_v47  ;;  %v7086_v58 = vld [vmem:[#allocation7 + $0xe4] ss:$80 sps:$4 sm:$0xff]   ;;  %v216_v62 = vld [vmem:[#allocation5 + $0x10] sm:$0xff]  ;;  %v7084_v0 = vld [vmem:[#allocation7 + $0xe0] ss:$80 sps:$4 sm:$0xff]   ;;  %v896_v8 = vcombine.high %v215_v54, %v215_v54 }
  0xa1   :  { %6908 = vmatmul.mubr.msk.bf16.vlgmr.msra.gmra.mrb[0].mxu0 %vm168_vm1, %v135_v12  ;;  %v217_v10 = vld [vmem:[#allocation5 + $0x18] sm:$0xff]  ;;  %v7092_v40 = vld [vmem:[#allocation11] ss:$16 sps:$4 sm:$0xff]   ;;  %v7106_v46 = vld [vmem:[#allocation11 + $0x44] ss:$16 sps:$4 sm:$0xff]  }
  0xa2   :  { %465 = vmatpush1.bf16.msra.mxu0 %v7029_v11  ;;  %496 = vmatprep.mubr.bf16.mxu0 %v8135_v17  ;;  %9053 = vst [vmem:[#allocation23_spill] sm:$0xff] %v8325_v52  ;;  %v886_v59 = vrot.slane %v214_v53, %v8325_v52  ;;  %v903_v60 = vrot.slane %v215_v54, %v8325_v52  ;;  %v212_v11 = vld [vmem:[%s9027_s0] sm:$0x3]  ;;  %v7095_v41 = vld [vmem:[#allocation11 + $0x8] ss:$16 sps:$4 sm:$0xff]   ;;  %s8138_s0 = smov [#allocation16]  }
  0xa3   :  { %466 = vmatprep.subr.bf16.mxu0 %v7037_v13  ;;  %v893_v3 = vrot.slane %v879_v61, %v8325_v52  ;;  %v920_v4 = vrot.slane %v216_v62, %v8325_v52  ;;  %v910_v12 = vrot.slane %v896_v8, %v8325_v52  ;;  %v937_v13 = vrot.slane %v217_v10, %v8325_v52  ;;  %v7097_v39 = vld [vmem:[#allocation11 + $0xc] ss:$16 sps:$4 sm:$0xff]   ;;  %v7110_v53 = vld [vmem:[#allocation11 + $0x60] ss:$16 sps:$4 sm:$0xff]   ;;  %v7113_v54 = vld [vmem:[#allocation11 + $0x68] ss:$16 sps:$4 sm:$0xff]  }
  0xa4   :  { %v894_v1 = vcombine.high %v886_v59, %v886_v59  ;;  %v911_v2 = vcombine.high %v903_v60, %v903_v60  ;;  %v970_v5 = vsel %vm968_vm3, %v886_v59, 0  ;;  %v982_v6 = vsel %vm968_vm3, %v903_v60, 0  ;;  %v7124_v59 = vld [vmem:[#allocation11 + $0xa4] ss:$16 sps:$4 sm:$0xff]   ;;  %v7127_v60 = vld [vmem:[#allocation11 + $0xac] ss:$16 sps:$4 sm:$0xff]  }
  0xa5   :  { %v895_v7 = vcombine.high %v893_v3, %v893_v3  ;;  %v928_v9 = vcombine.high %v920_v4, %v920_v4  ;;  %v976_v15 = vsel %vm968_vm3, %v893_v3, 0  ;;  %v7130_v3 = vld [vmem:[#allocation11 + $0xc4] ss:$16 sps:$4 sm:$0xff]   ;;  %v7139_v8 = vld [vmem:[#allocation11 + $0xec] ss:$16 sps:$4 sm:$0xff]   ;;  %s6294_s26 = sshll.u32 %s8138_s0, 4  ;;  %s6295_s26 = int_to_ptr.vmem [resolvable:$true] %s6294_s26 }
  0xa6   :  { %467 = vmatpush1.bf16.msra.mxu0 %v7035_v14  ;;  %v213_v14 = vpack.c.bf16 %v212_v11, %v212_v11  ;;  %v7142_v11 = vld [vmem:[#allocation11 + $0x104] ss:$16 sps:$4 sm:$0xff]   ;;  %s8087_s5 = scalar_lea.vmem %s6295_s26, 128  ;;  %p8092_p9 = scmp.lt.s32.totalorder %s6295_s26, %s6295_s26 }
  0xa7   :  { %546 = vmatprep.subr.bf16.mxu0 %v7044_v16  ;;  %v994_v16 = vsel %vm968_vm3, %v920_v4, 0  ;;  %v7133_v4 = vld [vmem:[#allocation11 + $0xcc] ss:$16 sps:$4 sm:$0xff]   ;;  %p8088_p8 = scmp.ne.s32.totalorder %s6295_s26, %s8087_s5  ;;  %p8093_p10 = scmp.lt.s32.totalorder %s8087_s5, %s8087_s5 }
  0xa9   :  { %p8094_p11 = por %p8093_p10, %p8092_p9 }
  0xab   :  { %p8095_p12 = pnand %p8094_p11, %p8088_p8 }
 0x174   :  { %v206_v18 = vpop.f32.mrb[0].mxu0 }
 0x175   :  { %v8304_v21 = vpack.c.bf16 %v206_v18, %v206_v18  ;;  %v6909_v22 = vpop.f32.mrb[1].mxu0  ;;  %v912_v18 = vcombine.high %v910_v12, %v910_v12 }
 0x176   :  { %v209_v25 = vpop.f32.mrb[2].mxu0 }
 0x177   :  { %v6910_v26 = vpop.f32.mrb[3].mxu0  ;;  %6352 = vmatmul.mubr.msk.bf16.vlgmr.msra.gmra.mrb[4].mxu0 %vm460_vm2, %v8304_v21  ;;  %6353 = vmatmul.mubr.msk.bf16.vlgmr.msra.gmra.mrb[0].mxu1 %vm460_vm2, %v8304_v21  ;;  %v1006_v25 = vsel %vm968_vm3, %v937_v13, 0 }
 0x178   :  { %588 = vmatpush1.bf16.msra.mxu1 %v7039_v19  ;;  %547 = vmatpush1.bf16.msra.mxu0 %v7042_v20  ;;  %v945_v19 = vcombine.high %v937_v13, %v937_v13  ;;  %v913_v20 = vcombine.high %v216_v62, %v216_v62  ;;  %v7122_v62 = vld [vmem:[#allocation11 + $0xa0] ss:$16 sps:$4 sm:$0xff]  }
 0x179   :  { %589 = vmatprep.subr.bf16.mxu1 %v7047_v23  ;;  %548 = vmatprep.subr.bf16.mxu0 %v7050_v24  ;;  %v988_v24 = vsel %vm968_vm3, %v910_v12, 0  ;;  %v7145_v12 = vld [vmem:[#allocation11 + $0x10c] ss:$16 sps:$4 sm:$0xff]   ;;  %v7140_v13 = vld [vmem:[#allocation11 + $0x100] ss:$16 sps:$4 sm:$0xff]  }
 0x17a   :  { %578 = vmatprep.mubr.bf16.mxu0 %v8135_v17  ;;  %619 = vmatprep.mubr.bf16.mxu1 %v8135_v17  ;;  %v927_v22 = vrot.slane %v913_v20, %v8325_v52  ;;  %v7154_v20 = vld [vmem:[#allocation11 + $0x144] ss:$16 sps:$4 sm:$0xff]  }
 0x17c   :  { %590 = vmatpush1.bf16.msra.mxu1 %v7045_v27  ;;  %549 = vmatpush1.bf16.msra.mxu0 %v7048_v28  ;;  %v929_v26 = vcombine.high %v927_v22, %v927_v22  ;;  %v930_v28 = vcombine.high %v217_v10, %v217_v10  ;;  %v7137_v10 = vld [vmem:[#allocation11 + $0xe8] ss:$16 sps:$4 sm:$0xff]  }
 0x17d   :  { %669 = vmatprep.subr.bf16.mxu1 %v7053_v29  ;;  %628 = vmatprep.subr.bf16.mxu0 %v7056_v30  ;;  %v1000_v30 = vsel %vm968_vm3, %v927_v22, 0  ;;  %v7152_v22 = vld [vmem:[#allocation11 + $0x140] ss:$16 sps:$4 sm:$0xff]  }
 0x17e   :  { %v944_v29 = vrot.slane %v930_v28, %v8325_v52  ;;  %v7166_v28 = vld [vmem:[#allocation11 + $0x184] ss:$16 sps:$4 sm:$0xff]  }
 0x17f   :  { %6354 = vmatmul.mubr.msk.bf16.vlgmr.msra.gmra.mrb[8].mxu0 %vm460_vm2, %v8304_v21  ;;  %6355 = vmatmul.mubr.msk.bf16.vlgmr.msra.gmra.mrb[4].mxu1 %vm460_vm2, %v8304_v21 }
 0x180   :  { %670 = vmatpush1.bf16.msra.mxu1 %v7051_v31  ;;  %629 = vmatpush1.bf16.msra.mxu0 %v7054_v32 }
 0x181   :  { %671 = vmatprep.subr.bf16.mxu1 %v7059_v33  ;;  %630 = vmatprep.subr.bf16.mxu0 %v7062_v34  ;;  %v946_v33 = vcombine.high %v944_v29, %v944_v29 }
 0x182   :  { %660 = vmatprep.mubr.bf16.mxu0 %v8135_v17  ;;  %701 = vmatprep.mubr.bf16.mxu1 %v8135_v17 }
 0x184   :  { %672 = vmatpush1.bf16.msra.mxu1 %v7057_v35  ;;  %631 = vmatpush1.bf16.msra.mxu0 %v7060_v36  ;;  %v1012_v35 = vsel %vm968_vm3, %v944_v29, 0  ;;  %v7169_v29 = vld [vmem:[#allocation11 + $0x18c] ss:$16 sps:$4 sm:$0xff]  }
 0x185   :  { %751 = vmatprep.subr.bf16.mxu1 %v7065_v37  ;;  %710 = vmatprep.subr.bf16.mxu0 %v7068_v38  ;;  %v7094_v38 = vld [vmem:[#allocation11 + $0x4] ss:$16 sps:$4 sm:$0xff]  }
 0x187   :  { %6356 = vmatmul.mubr.msk.bf16.vlgmr.msra.gmra.mrb[12].mxu0 %vm460_vm2, %v8304_v21  ;;  %6357 = vmatmul.mubr.msk.bf16.vlgmr.msra.gmra.mrb[8].mxu1 %vm460_vm2, %v8304_v21 }
 0x188   :  { %752 = vmatpush1.bf16.msra.mxu1 %v7063_v42  ;;  %711 = vmatpush1.bf16.msra.mxu0 %v7066_v43  ;;  %v7100_v42 = vld [vmem:[#allocation11 + $0x24] ss:$16 sps:$4 sm:$0xff]   ;;  %v7103_v43 = vld [vmem:[#allocation11 + $0x2c] ss:$16 sps:$4 sm:$0xff]  }
 0x189   :  { %753 = vmatprep.subr.bf16.mxu1 %v7071_v44  ;;  %712 = vmatprep.subr.bf16.mxu0 %v7074_v45  ;;  %v7098_v44 = vld [vmem:[#allocation11 + $0x20] ss:$16 sps:$4 sm:$0xff]   ;;  %v7101_v45 = vld [vmem:[#allocation11 + $0x28] ss:$16 sps:$4 sm:$0xff]  }
 0x18a   :  { %742 = vmatprep.mubr.bf16.mxu0 %v8135_v17  ;;  %783 = vmatprep.mubr.bf16.mxu1 %v8135_v17 }
 0x18c   :  { %754 = vmatpush1.bf16.msra.mxu1 %v7069_v48  ;;  %713 = vmatpush1.bf16.msra.mxu0 %v7072_v49  ;;  %v7104_v48 = vld [vmem:[#allocation11 + $0x40] ss:$16 sps:$4 sm:$0xff]   ;;  %v7107_v49 = vld [vmem:[#allocation11 + $0x48] ss:$16 sps:$4 sm:$0xff]  }
 0x18d   :  { %833 = vmatprep.subr.bf16.mxu1 %v7077_v50  ;;  %792 = vmatprep.subr.bf16.mxu0 %v7080_v51  ;;  %v7112_v50 = vld [vmem:[#allocation11 + $0x64] ss:$16 sps:$4 sm:$0xff]   ;;  %v7115_v51 = vld [vmem:[#allocation11 + $0x6c] ss:$16 sps:$4 sm:$0xff]  }
 0x18f   :  { %6358 = vmatmul.mubr.msk.bf16.vlgmr.msra.gmra.mrb[16].mxu0 %vm460_vm2, %v8304_v21  ;;  %6359 = vmatmul.mubr.msk.bf16.vlgmr.msra.gmra.mrb[12].mxu1 %vm460_vm2, %v8304_v21 }
 0x190   :  { %834 = vmatpush1.bf16.msra.mxu1 %v7075_v55  ;;  %793 = vmatpush1.bf16.msra.mxu0 %v7078_v56  ;;  %v7118_v55 = vld [vmem:[#allocation11 + $0x84] ss:$16 sps:$4 sm:$0xff]   ;;  %v7121_v56 = vld [vmem:[#allocation11 + $0x8c] ss:$16 sps:$4 sm:$0xff]  }
 0x191   :  { %835 = vmatprep.subr.bf16.mxu1 %v7083_v57  ;;  %794 = vmatprep.subr.bf16.mxu0 %v7086_v58  ;;  %v7116_v57 = vld [vmem:[#allocation11 + $0x80] ss:$16 sps:$4 sm:$0xff]   ;;  %v7119_v58 = vld [vmem:[#allocation11 + $0x88] ss:$16 sps:$4 sm:$0xff]  }
 0x192   :  { %824 = vmatprep.mubr.bf16.mxu0 %v8135_v17  ;;  %865 = vmatprep.mubr.bf16.mxu1 %v8135_v17 }
 0x194   :  { %836 = vmatpush1.bf16.msra.mxu1 %v7081_v63  ;;  %795 = vmatpush1.bf16.msra.mxu0 %v7084_v0  ;;  %v7125_v63 = vld [vmem:[#allocation11 + $0xa8] ss:$16 sps:$4 sm:$0xff]  }
 0x195   :  { %6362 = vmatprep.subr.msk.bf16.mxu1 %vm968_vm3, %v894_v1  ;;  %6366 = vmatprep.subr.msk.bf16.mxu0 %vm968_vm3, %v911_v2 }
 0x197   :  { %6360 = vmatmul.mubr.msk.bf16.vlgmr.msra.gmra.mrb[20].mxu0 %vm460_vm2, %v8304_v21  ;;  %6361 = vmatmul.mubr.msk.bf16.vlgmr.msra.gmra.mrb[16].mxu1 %vm460_vm2, %v8304_v21  ;;  %v218_v21 = vld [vmem:[#allocation5 + $0x20] sm:$0xff] }
 0x198   :  { %1030 = vmatpush1.bf16.msra.mxu1 %v970_v5  ;;  %1112 = vmatpush1.bf16.msra.mxu0 %v982_v6  ;;  %v954_v23 = vrot.slane %v218_v21, %v8325_v52  ;;  %v947_v32 = vcombine.high %v218_v21, %v218_v21  ;;  %v7128_v5 = vld [vmem:[#allocation11 + $0xc0] ss:$16 sps:$4 sm:$0xff]   ;;  %v7131_v6 = vld [vmem:[#allocation11 + $0xc8] ss:$16 sps:$4 sm:$0xff]   ;;  %v7157_v21 = vld [vmem:[#allocation11 + $0x14c] ss:$16 sps:$4 sm:$0xff]  }
 0x199   :  { %1061 = vmatprep.mubr.bf16.mxu1 %v8135_v17  ;;  %6364 = vmatprep.subr.msk.bf16.mxu1 %vm968_vm3, %v895_v7  ;;  %v7136_v7 = vld [vmem:[#allocation11 + $0xe4] ss:$16 sps:$4 sm:$0xff]  }
 0x19a   :  { %1143 = vmatprep.mubr.bf16.mxu0 %v8135_v17  ;;  %6370 = vmatprep.subr.msk.bf16.mxu0 %vm968_vm3, %v928_v9  ;;  %v962_v27 = vcombine.high %v954_v23, %v954_v23  ;;  %v1018_v31 = vsel %vm968_vm3, %v954_v23, 0  ;;  %v961_v34 = vrot.slane %v947_v32, %v8325_v52  ;;  %v7134_v9 = vld [vmem:[#allocation11 + $0xe0] ss:$16 sps:$4 sm:$0xff]   ;;  %v7155_v23 = vld [vmem:[#allocation11 + $0x148] ss:$16 sps:$4 sm:$0xff]  }
 0x19b   :  { %v8137_v32 = vmov 1966171168  }
 0x19c   :  { %v963_v36 = vcombine.high %v961_v34, %v961_v34  ;;  %v1024_v37 = vsel %vm968_vm3, %v961_v34, 0  ;;  %v7172_v34 = vld [vmem:[#allocation11 + $0x1a4] ss:$16 sps:$4 sm:$0xff]  }
 0x19f   :  { %6363 = vmatmul.mubr.msk.bf16.vlgmr.msra.gmra.mrb[20].mxu1 %vm964_vm4, %v213_v14  ;;  %6367 = vmatmul.mubr.msk.bf16.vlgmr.msra.gmra.mrb[8].mxu0 %vm964_vm4, %v213_v14 }
 0x1a0   :  { %1071 = vmatpush1.bf16.msra.mxu1 %v976_v15  ;;  %1194 = vmatpush1.bf16.msra.mxu0 %v994_v16  ;;  %v7148_v15 = vld [vmem:[#allocation11 + $0x124] ss:$16 sps:$4 sm:$0xff]   ;;  %v7151_v16 = vld [vmem:[#allocation11 + $0x12c] ss:$16 sps:$4 sm:$0xff]  }
 0x1a1   :  { %1102 = vmatprep.mubr.bf16.mxu1 %v8135_v17  ;;  %6368 = vmatprep.subr.msk.bf16.mxu1 %vm968_vm3, %v912_v18  ;;  %v7146_v18 = vld [vmem:[#allocation11 + $0x120] ss:$16 sps:$4 sm:$0xff]  }
 0x1a2   :  { %1225 = vmatprep.mubr.bf16.mxu0 %v8135_v17  ;;  %6374 = vmatprep.subr.msk.bf16.mxu0 %vm968_vm3, %v945_v19  ;;  %v7149_v19 = vld [vmem:[#allocation11 + $0x128] ss:$16 sps:$4 sm:$0xff]  }
 0x1a7   :  { %6365 = vmatmul.mubr.msk.bf16.vlgmr.msra.gmra.mrb[0].mxu1 %vm964_vm4, %v213_v14  ;;  %6371 = vmatmul.mubr.msk.bf16.vlgmr.msra.gmra.mrb[12].mxu0 %vm964_vm4, %v213_v14 }
 0x1a8   :  { %1153 = vmatpush1.bf16.msra.mxu1 %v988_v24  ;;  %1276 = vmatpush1.bf16.msra.mxu0 %v1006_v25  ;;  %v7160_v24 = vld [vmem:[#allocation11 + $0x164] ss:$16 sps:$4 sm:$0xff]   ;;  %v7163_v25 = vld [vmem:[#allocation11 + $0x16c] ss:$16 sps:$4 sm:$0xff]  }
 0x1a9   :  { %1184 = vmatprep.mubr.bf16.mxu1 %v8135_v17  ;;  %1307 = vmatprep.mubr.bf16.mxu0 %v8135_v17 }
 0x1aa   :  { %6372 = vmatprep.subr.msk.bf16.mxu1 %vm968_vm3, %v929_v26  ;;  %6378 = vmatprep.subr.msk.bf16.mxu0 %vm968_vm3, %v962_v27  ;;  %v7158_v26 = vld [vmem:[#allocation11 + $0x160] ss:$16 sps:$4 sm:$0xff]   ;;  %v7161_v27 = vld [vmem:[#allocation11 + $0x168] ss:$16 sps:$4 sm:$0xff]  }
 0x1af   :  { %6369 = vmatmul.mubr.msk.bf16.vlgmr.msra.gmra.mrb[4].mxu1 %vm964_vm4, %v213_v14  ;;  %6375 = vmatmul.mubr.msk.bf16.vlgmr.msra.gmra.mrb[16].mxu0 %vm964_vm4, %v213_v14 }
 0x1b0   :  { %1235 = vmatpush1.bf16.msra.mxu1 %v1000_v30  ;;  %1358 = vmatpush1.bf16.msra.mxu0 %v1018_v31  ;;  %v7164_v30 = vld [vmem:[#allocation11 + $0x180] ss:$16 sps:$4 sm:$0xff]   ;;  %v7167_v31 = vld [vmem:[#allocation11 + $0x188] ss:$16 sps:$4 sm:$0xff]  }
 0x1b1   :  { %1266 = vmatprep.mubr.bf16.mxu1 %v8135_v17  ;;  %1389 = vmatprep.mubr.bf16.mxu0 %v8135_v17 }
 0x1b2   :  { %6376 = vmatprep.subr.msk.bf16.mxu1 %vm968_vm3, %v946_v33  ;;  %5408 = vmatprep.subr.bf16.mxu0 %v7094_v38  ;;  %v8396_v33 = vunpack.c.l.s4 %v8137_v32  ;;  %v7170_v38 = vld [vmem:[#allocation11 + $0x1a0] ss:$16 sps:$4 sm:$0xff]  }
 0x1b7   :  { %6373 = vmatmul.mubr.msk.bf16.vlgmr.msra.gmra.mrb[8].mxu1 %vm964_vm4, %v213_v14  ;;  %6379 = vmatmul.mubr.msk.bf16.vlgmr.msra.gmra.mrb[20].mxu0 %vm964_vm4, %v213_v14 }
 0x1b8   :  { %1317 = vmatpush1.bf16.msra.mxu1 %v1012_v35  ;;  %1348 = vmatprep.mubr.bf16.mxu1 %v8135_v17  ;;  %v7175_v35 = vld [vmem:[#allocation11 + $0x1ac] ss:$16 sps:$4 sm:$0xff]  }
 0x1b9   :  { %6380 = vmatprep.subr.msk.bf16.mxu1 %vm968_vm3, %v963_v36  ;;  %5409 = vmatpush1.bf16.msra.mxu0 %v7092_v40  ;;  %v1892_v40 = vunpack.c.0.s8 %v8396_v33 }
 0x1ba   :  { %5410 = vmatprep.subr.bf16.mxu0 %v7100_v42 }
 0x1bd   :  { %5411 = vmatpush1.bf16.msra.mxu0 %v7098_v44 }
 0x1be   :  { %5412 = vmatprep.subr.bf16.mxu0 %v7106_v46 }
 0x1bf   :  { %6377 = vmatmul.mubr.msk.bf16.vlgmr.msra.gmra.mrb[12].mxu1 %vm964_vm4, %v213_v14 }
 0x1c0   :  { %1399 = vmatpush1.bf16.msra.mxu1 %v1024_v37  ;;  %1430 = vmatprep.mubr.bf16.mxu1 %v8135_v17  ;;  %v7109_v17 = vld [vmem:[#allocation11 + $0x4c] ss:$16 sps:$4 sm:$0xff]  }
 0x1c1   :  { %5736 = vmatprep.subr.bf16.mxu1 %v7097_v39  ;;  %5413 = vmatpush1.bf16.msra.mxu0 %v7104_v48  ;;  %v7173_v39 = vld [vmem:[#allocation11 + $0x1a8] ss:$16 sps:$4 sm:$0xff]  }
 0x1c2   :  { %5414 = vmatprep.subr.bf16.mxu0 %v7112_v50 }
 0x1c5   :  { %5415 = vmatpush1.bf16.msra.mxu0 %v7110_v53 }
 0x1c6   :  { %5416 = vmatprep.subr.bf16.mxu0 %v7118_v55 }
 0x1c7   :  { %6381 = vmatmul.mubr.msk.bf16.vlgmr.msra.gmra.mrb[16].mxu1 %vm964_vm4, %v213_v14  ;;  %v7143_v14 = vld [vmem:[#allocation11 + $0x108] ss:$16 sps:$4 sm:$0xff]  }
 0x1c8   :  { %5737 = vmatpush1.bf16.msra.mxu1 %v7095_v41 }
 0x1c9   :  { %5738 = vmatprep.subr.bf16.mxu1 %v7103_v43  ;;  %5417 = vmatpush1.bf16.msra.mxu0 %v7116_v57 }
 0x1ca   :  { %5418 = vmatprep.subr.bf16.mxu0 %v7124_v59 }
 0x1cc   :  { %5739 = vmatpush1.bf16.msra.mxu1 %v7101_v45 }
 0x1cd   :  { %5740 = vmatprep.subr.bf16.mxu1 %v7109_v17  ;;  %5419 = vmatpush1.bf16.msra.mxu0 %v7122_v62 }
 0x1ce   :  { %5420 = vmatprep.subr.bf16.mxu0 %v7130_v3 }
 0x1d0   :  { %5741 = vmatpush1.bf16.msra.mxu1 %v7107_v49 }
 0x1d1   :  { %5742 = vmatprep.subr.bf16.mxu1 %v7115_v51  ;;  %5421 = vmatpush1.bf16.msra.mxu0 %v7128_v5  ;;  %v7179_v5 = vld [vmem:[#allocation11 + $0x1c8] ss:$16 sps:$4 sm:$0xff]  }
 0x1d2   :  { %5422 = vmatprep.subr.bf16.mxu0 %v7136_v7 }
 0x1d4   :  { %5743 = vmatpush1.bf16.msra.mxu1 %v7113_v54 }
 0x1d5   :  { %5744 = vmatprep.subr.bf16.mxu1 %v7121_v56  ;;  %5423 = vmatpush1.bf16.msra.mxu0 %v7134_v9 }
 0x1d6   :  { %5424 = vmatprep.subr.bf16.mxu0 %v7142_v11 }
 0x1d8   :  { %5745 = vmatpush1.bf16.msra.mxu1 %v7119_v58 }
 0x1d9   :  { %5746 = vmatprep.subr.bf16.mxu1 %v7127_v60  ;;  %5425 = vmatpush1.bf16.msra.mxu0 %v7140_v13 }
 0x1da   :  { %5426 = vmatprep.subr.bf16.mxu0 %v7148_v15  ;;  %v7184_v15 = vld [vmem:[#allocation11 + $0x1e4] ss:$16 sps:$4 sm:$0xff]  }
 0x1dc   :  { %5747 = vmatpush1.bf16.msra.mxu1 %v7125_v63  ;;  %v7176_v63 = vld [vmem:[#allocation11 + $0x1c0] ss:$16 sps:$4 sm:$0xff]  }
 0x1dd   :  { %5748 = vmatprep.subr.bf16.mxu1 %v7133_v4  ;;  %5427 = vmatpush1.bf16.msra.mxu0 %v7146_v18  ;;  %v7178_v4 = vld [vmem:[#allocation11 + $0x1c4] ss:$16 sps:$4 sm:$0xff]  }
 0x1de   :  { %5428 = vmatprep.subr.bf16.mxu0 %v7154_v20 }
 0x1e0   :  { %5749 = vmatpush1.bf16.msra.mxu1 %v7131_v6 }
 0x1e1   :  { %5750 = vmatprep.subr.bf16.mxu1 %v7139_v8  ;;  %5429 = vmatpush1.bf16.msra.mxu0 %v7152_v22 }
 0x1e2   :  { %5430 = vmatprep.subr.bf16.mxu0 %v7160_v24 }
 0x1e4   :  { %5751 = vmatpush1.bf16.msra.mxu1 %v7137_v10  ;;  %v7181_v10 = vld [vmem:[#allocation11 + $0x1cc] ss:$16 sps:$4 sm:$0xff]  }
 0x1e5   :  { %5752 = vmatprep.subr.bf16.mxu1 %v7145_v12  ;;  %5431 = vmatpush1.bf16.msra.mxu0 %v7158_v26 }
 0x1e6   :  { %5432 = vmatprep.subr.bf16.mxu0 %v7166_v28 }
 0x1e8   :  { %5753 = vmatpush1.bf16.msra.mxu1 %v7143_v14 }
 0x1e9   :  { %5754 = vmatprep.subr.bf16.mxu1 %v7151_v16  ;;  %5433 = vmatpush1.bf16.msra.mxu0 %v7164_v30 }
 0x1ea   :  { %5434 = vmatprep.subr.bf16.mxu0 %v7172_v34 }
 0x1ec   :  { %5755 = vmatpush1.bf16.msra.mxu1 %v7149_v19 }
 0x1ed   :  { %5756 = vmatprep.subr.bf16.mxu1 %v7157_v21  ;;  %5435 = vmatpush1.bf16.msra.mxu0 %v7170_v38  ;;  %v7185_v38 = vld [vmem:[#allocation11 + $0x1e8] ss:$16 sps:$4 sm:$0xff]  }
 0x1ee   :  { %5436 = vmatprep.subr.bf16.mxu0 %v7178_v4 }
 0x1f0   :  { %5757 = vmatpush1.bf16.msra.mxu1 %v7155_v23  ;;  %v7182_v23 = vld [vmem:[#allocation11 + $0x1e0] ss:$16 sps:$4 sm:$0xff]  }
 0x1f1   :  { %5758 = vmatprep.subr.bf16.mxu1 %v7163_v25  ;;  %5437 = vmatpush1.bf16.msra.mxu0 %v7176_v63 }
 0x1f2   :  { %5438 = vmatprep.subr.bf16.mxu0 %v7184_v15 }
 0x1f4   :  { %5759 = vmatpush1.bf16.msra.mxu1 %v7161_v27 }
 0x1f5   :  { %5760 = vmatprep.subr.bf16.mxu1 %v7169_v29  ;;  %5439 = vmatpush1.bf16.msra.mxu0 %v7182_v23 }
 0x1f8   :  { %5761 = vmatpush1.bf16.msra.mxu1 %v7167_v31 }
 0x1f9   :  { %5762 = vmatprep.subr.bf16.mxu1 %v7175_v35 }
 0x1fc   :  { %5763 = vmatpush1.bf16.msra.mxu1 %v7173_v39 }
 0x1fd   :  { %5764 = vmatprep.subr.bf16.mxu1 %v7181_v10 }
 0x200   :  { %5765 = vmatpush1.bf16.msra.mxu1 %v7179_v5 }
 0x24a   :  { %v8392_v61 = vpop.f32.mrb[4].mxu0 }
 0x24b   :  { %v8394_v0 = vpop.f32.mrb[5].mxu0 }
 0x24c   :  { %v502_v1 = vpop.f32.mrb[6].mxu0 }
 0x24d   :  { %v503_v2 = vpop.f32.mrb[7].mxu0 }
 0x272   :  { %v1063_v36 = vpop.f32.mrb[20].mxu1  ;;  %v8398_v37 = vpop.f32.mrb[8].mxu0 }
 0x273   :  { %v8402_v41 = vadd.f32 %v1063_v36, %v8392_v61  ;;  %v1473_v42 = vsel %vm968_vm3, %v8398_v37, 0.0  ;;  %v1610_v43 = vmul.f32 %v8398_v37, %v8398_v37  ;;  %v1065_v44 = vpop.f32.mrb[21].mxu1  ;;  %v8408_v45 = vpop.f32.mrb[9].mxu0 }
 0x274   :  { %v1474_v46 = vrot.slane %v1473_v42, 4  ;;  %v8411_v17 = vadd.f32 %v1065_v44, %v8394_v0  ;;  %v1480_v48 = vsel %vm968_vm3, %v8408_v45, 0.0  ;;  %v1611_v49 = vmul.f32 %v8408_v45, %v8408_v45  ;;  %v1067_v50 = vpop.f32.mrb[22].mxu1  ;;  %v1149_v51 = vpop.f32.mrb[10].mxu0 }
 0x275   :  { %v1445_v53 = vsel %vm968_vm3, %v8402_v41, 0.0  ;;  %v1606_v54 = vmul.f32 %v8402_v41, %v8402_v41  ;;  %v1654_v55 = vsel %vm968_vm3, %v1610_v43, 0.0  ;;  %v1481_v56 = vrot.slane %v1480_v48, 4  ;;  %v1068_v57 = vpop.f32.mrb[23].mxu1  ;;  %v1150_v58 = vpop.f32.mrb[11].mxu0 }
 0x276   :  { %v1446_v59 = vrot.slane %v1445_v53, 4  ;;  %v1475_v60 = vadd.f32 %v1474_v46, %v1473_v42  ;;  %v1655_v61 = vrot.slane %v1654_v55, 4  ;;  %v1452_v62 = vsel %vm968_vm3, %v8411_v17, 0.0 }
 0x277   :  { %v1626_v0 = vsel %vm968_vm3, %v1606_v54, 0.0  ;;  %v1453_v1 = vrot.slane %v1452_v62, 4  ;;  %v1607_v2 = vmul.f32 %v8411_v17, %v8411_v17  ;;  %v1482_v3 = vadd.f32 %v1481_v56, %v1480_v48 }
 0x278   :  { %v1447_v6 = vadd.f32 %v1446_v59, %v1445_v53  ;;  %v1627_v7 = vrot.slane %v1626_v0, 4  ;;  %v1476_v8 = vrot.slane %v1475_v60, 2  ;;  %v1656_v9 = vadd.f32 %v1655_v61, %v1654_v55  ;;  %v7190_v59 = vld [vmem:[#allocation11 + $0x204] ss:$16 sps:$4 sm:$0xff]  }
 0x279   :  { %v1454_v11 = vadd.f32 %v1453_v1, %v1452_v62  ;;  %v1633_v12 = vsel %vm968_vm3, %v1607_v2, 0.0  ;;  %v1483_v13 = vrot.slane %v1482_v3, 2  ;;  %v1661_v14 = vsel %vm968_vm3, %v1611_v49, 0.0  ;;  %v7187_v49 = vld [vmem:[#allocation11 + $0x1ec] ss:$16 sps:$4 sm:$0xff]   ;;  %5449 = vmatprep.subr.bf16.mxu0 %v7190_v59 }
 0x27a   :  { %v1448_v16 = vrot.slane %v1447_v6, 2  ;;  %v1628_v18 = vadd.f32 %v1627_v7, %v1626_v0  ;;  %v1477_v19 = vadd.f32 %v1476_v8, %v1475_v60  ;;  %v1657_v20 = vrot.slane %v1656_v9, 2  ;;  %v8429_v21 = vpop.f32.mrb[0].mxu1  ;;  %v8431_v22 = vpop.f32.mrb[12].mxu0  ;;  %5766 = vmatprep.subr.bf16.mxu1 %v7187_v49  ;;  %v7193_v0 = vld [vmem:[#allocation11 + $0x20c] ss:$16 sps:$4 sm:$0xff]  }
 0x27b   :  { %9054 = vst [vmem:[#allocation24_spill] sm:$0xff] %v8431_v22  ;;  %v1455_v24 = vrot.slane %v1454_v11, 2  ;;  %v1634_v25 = vrot.slane %v1633_v12, 4  ;;  %v1484_v26 = vadd.f32 %v1483_v13, %v1482_v3  ;;  %v1662_v27 = vrot.slane %v1661_v14, 4  ;;  %v8433_v28 = vpop.f32.mrb[1].mxu1  ;;  %v8435_v29 = vpop.f32.mrb[13].mxu0  ;;  %5767 = vmatpush1.bf16.msra.mxu1 %v7185_v38 }
 0x27c   :  { %9055 = vst [vmem:[#allocation25_spill] sm:$0xff] %v8435_v29  ;;  %v1449_v30 = vadd.f32 %v1448_v16, %v1447_v6  ;;  %v1629_v31 = vrot.slane %v1628_v18, 2  ;;  %v1478_v32 = vrot.slane %v1477_v19, 1  ;;  %v1658_v34 = vadd.f32 %v1657_v20, %v1656_v9  ;;  %v1108_v35 = vpop.f32.mrb[2].mxu1  ;;  %v1231_v36 = vpop.f32.mrb[14].mxu0  ;;  %5777 = vmatprep.subr.bf16.mxu1 %v7193_v0 }
 0x27d   :  { %v1456_v39 = vadd.f32 %v1455_v24, %v1454_v11  ;;  %v1635_v42 = vadd.f32 %v1634_v25, %v1633_v12  ;;  %v1485_v43 = vrot.slane %v1484_v26, 1  ;;  %v1663_v44 = vadd.f32 %v1662_v27, %v1661_v14  ;;  %v1109_v46 = vpop.f32.mrb[3].mxu1  ;;  %v1232_v48 = vpop.f32.mrb[15].mxu0 }
 0x27e   :  { %v1450_v50 = vrot.slane %v1449_v30, 1  ;;  %v1630_v51 = vadd.f32 %v1629_v31, %v1628_v18  ;;  %v1479_v53 = vadd.f32 %v1478_v32, %v1477_v19  ;;  %v1659_v54 = vrot.slane %v1658_v34, 1 }
 0x27f   :  { %v1457_v55 = vrot.slane %v1456_v39, 1  ;;  %v1636_v56 = vrot.slane %v1635_v42, 2  ;;  %v1486_v57 = vadd.f32 %v1485_v43, %v1484_v26  ;;  %v1664_v58 = vrot.slane %v1663_v44, 2 }
 0x280   :  { %v1451_v60 = vadd.f32 %v1450_v50, %v1449_v30  ;;  %v1631_v61 = vrot.slane %v1630_v51, 1  ;;  %v8437_v62 = vmul.f32 0.5, %v1479_v53  ;;  %v1660_v63 = vadd.f32 %v1659_v54, %v1658_v34 }
 0x281   :  { %v1458_v1 = vadd.f32 %v1457_v55, %v1456_v39  ;;  %v1637_v2 = vadd.f32 %v1636_v56, %v1635_v42  ;;  %v8439_v3 = vmul.f32 0.5, %v1486_v57  ;;  %v1665_v4 = vadd.f32 %v1664_v58, %v1663_v44 }
 0x282   :  { %v8441_v5 = vmul.f32 0.5, %v1451_v60  ;;  %v1632_v6 = vadd.f32 %v1631_v61, %v1630_v51  ;;  %v1770_v7 = vmul.f32 0.5, %v1660_v63  ;;  %v1790_v8 = vmul.f32 %v8437_v62, %v8437_v62  ;;  %v8445_v9 = vpop.f32.mrb[4].mxu1  ;;  %v8447_v10 = vpop.f32.mrb[16].mxu0 }
 0x283   :  { %9056 = vst [vmem:[#allocation26_spill] sm:$0xff] %v8447_v10  ;;  %v8452_v11 = vsub.s32 %v1892_v40, %v8318_v47  ;;  %v8454_v12 = vmul.f32 0.5, %v1458_v1  ;;  %v1638_v13 = vrot.slane %v1637_v2, 1  ;;  %v1666_v14 = vrot.slane %v1665_v4, 1  ;;  %v8456_v15 = vpop.f32.mrb[5].mxu1  ;;  %v8458_v16 = vpop.f32.mrb[17].mxu0 }
 0x284   :  { %9057 = vst [vmem:[#allocation27_spill] sm:$0xff] %v8458_v16  ;;  %v1766_v18 = vmul.f32 0.5, %v1632_v6  ;;  %v1786_v19 = vmul.f32 %v8441_v5, %v8441_v5  ;;  %v1810_v23 = vsub.f32 %v1770_v7, %v1790_v8  ;;  %v1190_v24 = vpop.f32.mrb[6].mxu1  ;;  %v1313_v33 = vpop.f32.mrb[18].mxu0  ;;  %v1791_v35 = vmul.f32 %v8439_v3, %v8439_v3 }
 0x285   :  { %v1639_v40 = vadd.f32 %v1638_v13, %v1637_v2  ;;  %v1787_v25 = vmul.f32 %v8454_v12, %v8454_v12  ;;  %v1667_v27 = vadd.f32 %v1666_v14, %v1665_v4  ;;  %v1191_v30 = vpop.f32.mrb[7].mxu1  ;;  %v1314_v31 = vpop.f32.mrb[19].mxu0  ;;  %v8471_v36 = vsub.s32 7, %v8318_v47 }
 0x286   :  { %v1806_v32 = vsub.f32 %v1766_v18, %v1786_v19  ;;  %v1830_v34 = vadd.f32 1e-05, %v1810_v23  ;;  %v1459_v42 = vsel %vm968_vm3, %v8429_v21, 0.0  ;;  %v1608_v43 = vmul.f32 %v8429_v21, %v8429_v21 }
 0x287   :  { %v1767_v38 = vmul.f32 0.5, %v1639_v40  ;;  %v1771_v39 = vmul.f32 0.5, %v1667_v27  ;;  %v1460_v46 = vrot.slane %v1459_v42, 4  ;;  %v1501_v48 = vsel %vm968_vm3, %v8431_v22, 0.0 }
 0x288   :  { %v1826_v44 = vadd.f32 1e-05, %v1806_v32  ;;  %7860 = vrsqrt.f32 %v1830_v34  ;;  %v1640_v51 = vsel %vm968_vm3, %v1608_v43, 0.0  ;;  %v1502_v53 = vrot.slane %v1501_v48, 4 }
 0x289   :  { %v1807_v49 = vsub.f32 %v1767_v38, %v1787_v25  ;;  %v1811_v50 = vsub.f32 %v1771_v39, %v1791_v35  ;;  %v1461_v54 = vadd.f32 %v1460_v46, %v1459_v42  ;;  %v1641_v55 = vrot.slane %v1640_v51, 4 }
 0x28a   :  { %7862 = vrsqrt.f32 %v1826_v44  ;;  %v1614_v56 = vmul.f32 %v8431_v22, %v8431_v22  ;;  %v8482_v57 = vpop.f32.mrb[8].mxu1  ;;  %v8484_v58 = vpop.f32.mrb[20].mxu0  ;;  %v1503_v61 = vadd.f32 %v1502_v53, %v1501_v48  ;;  %v1466_v63 = vsel %vm968_vm3, %v8433_v28, 0.0 }
 0x28b   :  { %9058 = vst [vmem:[#allocation28_spill] sm:$0xff] %v8484_v58  ;;  %v1827_v59 = vadd.f32 1e-05, %v1807_v49  ;;  %v1831_v60 = vadd.f32 1e-05, %v1811_v50  ;;  %v8488_v0 = vpop.f32.mrb[9].mxu1  ;;  %v1642_v2 = vadd.f32 %v1641_v55, %v1640_v51  ;;  %v1609_v18 = vmul.f32 %v8433_v28, %v8433_v28 }
 0x28c   :  { %v1462_v1 = vrot.slane %v1461_v54, 2  ;;  %v1682_v4 = vsel %vm968_vm3, %v1614_v56, 0.0  ;;  %v1467_v6 = vrot.slane %v1466_v63, 4  ;;  %v8491_v7 = vpop.f32.mrb[21].mxu0  ;;  %v1272_v8 = vpop.f32.mrb[10].mxu1  ;;  %v1504_v13 = vrot.slane %v1503_v61, 2 }
 0x28d   :  { %9059 = vst [vmem:[#allocation29_spill] sm:$0xff] %v8491_v7  ;;  %7864 = vrsqrt.f32 %v1827_v59  ;;  %v1683_v14 = vrot.slane %v1682_v4, 4  ;;  %v1395_v19 = vpop.f32.mrb[22].mxu0  ;;  %v1273_v23 = vpop.f32.mrb[11].mxu1  ;;  %v1643_v33 = vrot.slane %v1642_v2, 2  ;;  %v1647_v31 = vsel %vm968_vm3, %v1609_v18, 0.0 }
 0x28e   :  { %7866 = vrsqrt.f32 %v1831_v60  ;;  %v1463_v24 = vadd.f32 %v1462_v1, %v1461_v54  ;;  %v1468_v40 = vadd.f32 %v1467_v6, %v1466_v63  ;;  %v1396_v25 = vpop.f32.mrb[23].mxu0  ;;  %v1505_v27 = vadd.f32 %v1504_v13, %v1503_v61 }
 0x28f   :  { %v1684_v30 = vadd.f32 %v1683_v14, %v1682_v4  ;;  %v1508_v32 = vsel %vm968_vm3, %v8435_v29, 0.0  ;;  %v1644_v35 = vadd.f32 %v1643_v33, %v1642_v2  ;;  %v1648_v39 = vrot.slane %v1647_v31, 4 }
 0x290   :  { %v1464_v34 = vrot.slane %v1463_v24, 1  ;;  %v1469_v38 = vrot.slane %v1468_v40, 2  ;;  %v1506_v42 = vrot.slane %v1505_v27, 1  ;;  %v1509_v44 = vrot.slane %v1508_v32, 4 }
 0x291   :  { %v1685_v43 = vrot.slane %v1684_v30, 2  ;;  %v1615_v46 = vmul.f32 %v8435_v29, %v8435_v29  ;;  %v1645_v50 = vrot.slane %v1644_v35, 1  ;;  %v1649_v53 = vadd.f32 %v1648_v39, %v1647_v31 }
 0x292   :  { %v8500_v48 = vpop.eup %7860  ;;  %v1465_v49 = vadd.f32 %v1464_v34, %v1463_v24  ;;  %v1470_v51 = vadd.f32 %v1469_v38, %v1468_v40  ;;  %v8502_v54 = vpop.f32.mrb[12].mxu1  ;;  %v1507_v55 = vadd.f32 %v1506_v42, %v1505_v27  ;;  %v1510_v59 = vadd.f32 %v1509_v44, %v1508_v32 }
 0x293   :  { %v1686_v56 = vadd.f32 %v1685_v43, %v1684_v30  ;;  %v1689_v60 = vsel %vm968_vm3, %v1615_v46, 0.0  ;;  %v8505_v61 = vpop.f32.mrb[13].mxu1  ;;  %v1646_v2 = vadd.f32 %v1645_v50, %v1644_v35  ;;  %v1650_v6 = vrot.slane %v1649_v53, 2 }
 0x294   :  { %v7863_v63 = vpop.eup %7862  ;;  %v8507_v1 = vmul.f32 0.5, %v1465_v49  ;;  %v1471_v4 = vrot.slane %v1470_v51, 1  ;;  %v1354_v8 = vpop.f32.mrb[14].mxu1  ;;  %v8509_v13 = vmul.f32 0.5, %v1507_v55  ;;  %v1511_v18 = vrot.slane %v1510_v59, 2 }
 0x295   :  { %v1687_v14 = vrot.slane %v1686_v56, 1  ;;  %v1690_v19 = vrot.slane %v1689_v60, 4  ;;  %v1355_v23 = vpop.f32.mrb[15].mxu1  ;;  %v1768_v24 = vmul.f32 0.5, %v1646_v2  ;;  %v1651_v34 = vadd.f32 %v1650_v6, %v1649_v53 }
 0x296   :  { %9060 = vst [vmem:[#allocation30_spill] sm:$0xff] %v8509_v13  ;;  %v1788_v33 = vmul.f32 %v8507_v1, %v8507_v1  ;;  %v1472_v25 = vadd.f32 %v1471_v4, %v1470_v51  ;;  %v1794_v31 = vmul.f32 %v8509_v13, %v8509_v13  ;;  %v1512_v43 = vadd.f32 %v1511_v18, %v1510_v59 }
 0x297   :  { %v7865_v27 = vpop.eup %7864  ;;  %v1688_v30 = vadd.f32 %v1687_v14, %v1686_v56  ;;  %v1652_v49 = vrot.slane %v1651_v34, 1  ;;  %v1691_v50 = vadd.f32 %v1690_v19, %v1689_v60  ;;  %v8530_v53 = vsub.s32 5, %v8318_v47 }
 0x298   :  { %v8519_v35 = vpop.eup %7866  ;;  %v1886_v38 = vcombine.low %v7863_v63, %v7865_v27  ;;  %v1808_v39 = vsub.f32 %v1768_v24, %v1788_v33  ;;  %v8521_v42 = vmul.f32 0.5, %v1472_v25  ;;  %v8533_v63 = vsub.s32 4, %v8318_v47 }
 0x299   :  { %v1774_v46 = vmul.f32 0.5, %v1688_v30  ;;  %v1653_v59 = vadd.f32 %v1652_v49, %v1651_v34  ;;  %v1513_v6 = vrot.slane %v1512_v43, 1  ;;  %v1692_v14 = vrot.slane %v1691_v50, 2 }
 0x29a   :  { %9061 = vst [vmem:[#allocation31_spill] sm:$0xff] %v8521_v42  ;;  %v1828_v51 = vadd.f32 1e-05, %v1808_v39  ;;  %v8527_v56 = vpop.f32.mrb[16].mxu1  ;;  %v1789_v4 = vmul.f32 %v8521_v42, %v8521_v42  ;;  %v8540_v60 = vrot.slane %v1886_v38, %v8452_v11  ;;  %v1487_v18 = vsel %vm968_vm3, %v8445_v9, 0.0 }
 0x29b   :  { %v1814_v2 = vsub.f32 %v1774_v46, %v1794_v31  ;;  %v8537_v8 = vpop.f32.mrb[17].mxu1  ;;  %v1612_v19 = vmul.f32 %v8445_v9, %v8445_v9  ;;  %v1769_v33 = vmul.f32 0.5, %v1653_v59  ;;  %v1514_v25 = vadd.f32 %v1513_v6, %v1512_v43 }
 0x29c   :  { %v1436_v23 = vpop.f32.mrb[18].mxu1  ;;  %v1488_v27 = vrot.slane %v1487_v18, 4  ;;  %v1693_v31 = vadd.f32 %v1692_v14, %v1691_v50  ;;  %v1529_v38 = vsel %vm968_vm3, %v8447_v10, 0.0  ;;  %v1618_v39 = vmul.f32 %v8447_v10, %v8447_v10 }
 0x29d   :  { %v1834_v24 = vadd.f32 1e-05, %v1814_v2  ;;  %v1437_v30 = vpop.f32.mrb[19].mxu1  ;;  %v1668_v34 = vsel %vm968_vm3, %v1612_v19, 0.0  ;;  %7868 = vrsqrt.f32 %v1828_v51  ;;  %v1809_v46 = vsub.f32 %v1769_v33, %v1789_v4 }
 0x29e   :  { %v8551_v49 = vmul.f32 0.5, %v1514_v25  ;;  %v1489_v32 = vadd.f32 %v1488_v27, %v1487_v18  ;;  %v1694_v23 = vrot.slane %v1693_v31, 1  ;;  %v1669_v2 = vrot.slane %v1668_v34, 4 }
 0x29f   :  { %v1530_v59 = vrot.slane %v1529_v38, 4  ;;  %v1710_v43 = vsel %vm968_vm3, %v1618_v39, 0.0  ;;  %7870 = vrsqrt.f32 %v1834_v24  ;;  %v1829_v50 = vadd.f32 1e-05, %v1809_v46 }
 0x2a0   :  { %9062 = vst [vmem:[#allocation32_spill] sm:$0xff] %v8551_v49  ;;  %v1795_v6 = vmul.f32 %v8551_v49, %v8551_v49  ;;  %v1490_v14 = vrot.slane %v1489_v32, 2  ;;  %v1695_v19 = vadd.f32 %v1694_v23, %v1693_v31  ;;  %v1670_v30 = vadd.f32 %v1669_v2, %v1668_v34 }
 0x2a1   :  { %v1531_v55 = vadd.f32 %v1530_v59, %v1529_v38  ;;  %v1711_v40 = vrot.slane %v1710_v43, 4  ;;  %7872 = vrsqrt.f32 %v1829_v50  ;;  %v1494_v4 = vsel %vm968_vm3, %v8456_v15, 0.0 }
 0x2a2   :  { %v1491_v51 = vadd.f32 %v1490_v14, %v1489_v32  ;;  %v1613_v18 = vmul.f32 %v8456_v15, %v8456_v15  ;;  %v1775_v33 = vmul.f32 0.5, %v1695_v19  ;;  %v1671_v25 = vrot.slane %v1670_v30, 2 }
 0x2a3   :  { %v1532_v24 = vrot.slane %v1531_v55, 2  ;;  %v1712_v27 = vadd.f32 %v1711_v40, %v1710_v43  ;;  %v1495_v46 = vrot.slane %v1494_v4, 4  ;;  %v1536_v31 = vsel %vm968_vm3, %v8458_v16, 0.0 }
 0x2a4   :  { %v1492_v39 = vrot.slane %v1491_v51, 1  ;;  %v1675_v26 = vsel %vm968_vm3, %v1613_v18, 0.0  ;;  %v1815_v34 = vsub.f32 %v1775_v33, %v1795_v6  ;;  %v1672_v38 = vadd.f32 %v1671_v25, %v1670_v30 }
 0x2a5   :  { %v1533_v32 = vadd.f32 %v1532_v24, %v1531_v55  ;;  %v1713_v23 = vrot.slane %v1712_v27, 2  ;;  %v1496_v59 = vadd.f32 %v1495_v46, %v1494_v4  ;;  %v1676_v50 = vrot.slane %v1675_v26, 4 }
 0x2a6   :  { %v1493_v2 = vadd.f32 %v1492_v39, %v1491_v51  ;;  %v1537_v14 = vrot.slane %v1536_v31, 4  ;;  %v1835_v20 = vadd.f32 1e-05, %v1815_v34  ;;  %v1673_v19 = vrot.slane %v1672_v38, 1 }
 0x2a7   :  { %v1534_v44 = vrot.slane %v1533_v32, 1  ;;  %v1714_v52 = vadd.f32 %v1713_v23, %v1712_v27  ;;  %v7869_v40 = vpop.eup %7868  ;;  %v1497_v13 = vrot.slane %v1496_v59, 2  ;;  %v1677_v18 = vadd.f32 %v1676_v50, %v1675_v26 }
 0x2a8   :  { %v8563_v43 = vmul.f32 0.5, %v1493_v2  ;;  %v1538_v22 = vadd.f32 %v1537_v14, %v1536_v31  ;;  %7874 = vrsqrt.f32 %v1835_v20  ;;  %v1674_v29 = vadd.f32 %v1673_v19, %v1672_v38 }
 0x2a9   :  { %v1535_v6 = vadd.f32 %v1534_v44, %v1533_v32  ;;  %v1715_v30 = vrot.slane %v1714_v52, 1  ;;  %v8565_v55 = vpop.eup %7870  ;;  %v1498_v33 = vadd.f32 %v1497_v13, %v1496_v59  ;;  %v1678_v25 = vrot.slane %v1677_v18, 2 }
 0x2aa   :  { %v1792_v51 = vmul.f32 %v8563_v43, %v8563_v43  ;;  %v1772_v24 = vmul.f32 0.5, %v1674_v29  ;;  %v1539_v26 = vrot.slane %v1538_v22, 2  ;;  %v1619_v44 = vmul.f32 %v8458_v16, %v8458_v16 }
 0x2ab   :  { %v8571_v27 = vmul.f32 0.5, %v1535_v6  ;;  %v1716_v39 = vadd.f32 %v1715_v30, %v1714_v52  ;;  %v7873_v46 = vpop.eup %7872  ;;  %v1499_v20 = vrot.slane %v1498_v33, 1  ;;  %v1679_v31 = vadd.f32 %v1678_v25, %v1677_v18 }
 0x2ac   :  { %v1515_v34 = vsel %vm968_vm3, %v8482_v57, 0.0  ;;  %v1887_v38 = vcombine.low %v7869_v40, %v7873_v46  ;;  %v1812_v32 = vsub.f32 %v1772_v24, %v1792_v51  ;;  %v1540_v59 = vadd.f32 %v1539_v26, %v1538_v22 }
 0x2ad   :  { %9063 = vst [vmem:[#allocation33_spill] sm:$0xff] %v8571_v27  ;;  %v1778_v23 = vmul.f32 0.5, %v1716_v39  ;;  %v1798_v13 = vmul.f32 %v8571_v27, %v8571_v27  ;;  %v1500_v52 = vadd.f32 %v1499_v20, %v1498_v33  ;;  %v1680_v2 = vrot.slane %v1679_v31, 1 }
 0x2ae   :  { %v8582_v50 = vrot.slane %v1887_v38, %v8452_v11  ;;  %v1832_v14 = vadd.f32 1e-05, %v1812_v32  ;;  %v1717_v18 = vsel %vm968_vm3, %v1619_v44, 0.0  ;;  %v1541_v30 = vrot.slane %v1540_v59, 1 }
 0x2af   :  { %v1818_v19 = vsub.f32 %v1778_v23, %v1798_v13  ;;  %v8585_v6 = vmul.f32 0.5, %v1500_v52  ;;  %v1681_v40 = vadd.f32 %v1680_v2, %v1679_v31  ;;  %v1718_v51 = vrot.slane %v1717_v18, 4 }
 0x2b0   :  { %v9064_v25 = vcombine.low %v8500_v48, %v8519_v35  ;;  %v1516_v39 = vrot.slane %v1515_v34, 4  ;;  %v1542_v31 = vadd.f32 %v1541_v30, %v1540_v59  ;;  %7876 = vrsqrt.f32 %v1832_v14 }
 0x2b1   :  { %v1838_v26 = vadd.f32 1e-05, %v1818_v19  ;;  %v1773_v46 = vmul.f32 0.5, %v1681_v40  ;;  %v1793_v20 = vmul.f32 %v8585_v6, %v8585_v6  ;;  %v1719_v35 = vadd.f32 %v1718_v51, %v1717_v18 }
 0x2b2   :  { %v8591_v24 = vrot.slane %v9064_v25, %v8452_v11  ;;  %v8599_v44 = vpop.eup %7874  ;;  %v1517_v38 = vadd.f32 %v1516_v39, %v1515_v34  ;;  %v8605_v13 = vmul.f32 0.5, %v1542_v31  ;;  %v1616_v52 = vmul.f32 %v8482_v57, %v8482_v57 }
 0x2b3   :  { %v1813_v23 = vsub.f32 %v1773_v46, %v1793_v20  ;;  %v1720_v2 = vrot.slane %v1719_v35, 2  ;;  %v1557_v59 = vsel %vm968_vm3, %v8484_v58, 0.0  ;;  %v1622_v14 = vmul.f32 %v8484_v58, %v8484_v58 }
 0x2b4   :  { %9065 = vst [vmem:[#allocation34_spill] sm:$0xff] %v8605_v13  ;;  %v1518_v19 = vrot.slane %v1517_v38, 2  ;;  %7878 = vrsqrt.f32 %v1838_v26  ;;  %v1799_v34 = vmul.f32 %v8605_v13, %v8605_v13  ;;  %v1696_v25 = vsel %vm968_vm3, %v1616_v52, 0.0 }
 0x2b5   :  { %v1833_v18 = vadd.f32 1e-05, %v1813_v23  ;;  %v1721_v30 = vadd.f32 %v1720_v2, %v1719_v35  ;;  %v1558_v39 = vrot.slane %v1557_v59, 4  ;;  %v1697_v46 = vrot.slane %v1696_v25, 4 }
 0x2b6   :  { %v1519_v51 = vadd.f32 %v1518_v19, %v1517_v38  ;;  %v1738_v20 = vsel %vm968_vm3, %v1622_v14, 0.0  ;;  %v1522_v31 = vsel %vm968_vm3, %v8488_v0, 0.0  ;;  %v1617_v35 = vmul.f32 %v8488_v0, %v8488_v0 }
 0x2b7   :  { %7880 = vrsqrt.f32 %v1833_v18  ;;  %v1722_v26 = vrot.slane %v1721_v30, 1  ;;  %v1559_v29 = vadd.f32 %v1558_v39, %v1557_v59  ;;  %v1739_v4 = vrot.slane %v1738_v20, 4 }
 0x2b8   :  { %v1520_v23 = vrot.slane %v1519_v51, 1  ;;  %v1698_v22 = vadd.f32 %v1697_v46, %v1696_v25  ;;  %v1523_v48 = vrot.slane %v1522_v31, 4  ;;  %v1564_v38 = vsel %vm968_vm3, %v8491_v7, 0.0 }
 0x2b9   :  { %v1723_v52 = vadd.f32 %v1722_v26, %v1721_v30  ;;  %v1560_v19 = vrot.slane %v1559_v29, 2  ;;  %v1740_v18 = vadd.f32 %v1739_v4, %v1738_v20  ;;  %v1703_v32 = vsel %vm968_vm3, %v1617_v35, 0.0 }
 0x2ba   :  { %v1521_v2 = vadd.f32 %v1520_v23, %v1519_v51  ;;  %v1699_v14 = vrot.slane %v1698_v22, 2  ;;  %v1524_v40 = vadd.f32 %v1523_v48, %v1522_v31  ;;  %v1565_v33 = vrot.slane %v1564_v38, 4  ;;  %v7877_v27 = vpop.eup %7876 }
 0x2bb   :  { %v1779_v59 = vmul.f32 0.5, %v1723_v52  ;;  %v1561_v25 = vadd.f32 %v1560_v19, %v1559_v29  ;;  %v1741_v46 = vrot.slane %v1740_v18, 2  ;;  %v1704_v16 = vrot.slane %v1703_v32, 4 }
 0x2bc   :  { %v8626_v39 = vmul.f32 0.5, %v1521_v2  ;;  %v1700_v10 = vadd.f32 %v1699_v14, %v1698_v22  ;;  %v1525_v13 = vrot.slane %v1524_v40, 2  ;;  %v1566_v49 = vadd.f32 %v1565_v33, %v1564_v38 }
 0x2bd   :  { %v1819_v42 = vsub.f32 %v1779_v59, %v1799_v34  ;;  %v1562_v48 = vrot.slane %v1561_v25, 1  ;;  %v1742_v31 = vadd.f32 %v1741_v46, %v1740_v18  ;;  %v1705_v23 = vadd.f32 %v1704_v16, %v1703_v32 }
 0x2be   :  { %9066 = vst [vmem:[#allocation35_spill] sm:$0xff] %v8626_v39  ;;  %v1796_v30 = vmul.f32 %v8626_v39, %v8626_v39  ;;  %v8632_v51 = vpop.eup %7878  ;;  %v1701_v20 = vrot.slane %v1700_v10, 1  ;;  %v1526_v26 = vadd.f32 %v1525_v13, %v1524_v40  ;;  %v1567_v22 = vrot.slane %v1566_v49, 2 }
 0x2bf   :  { %v1839_v29 = vadd.f32 1e-05, %v1819_v42  ;;  %v1563_v35 = vadd.f32 %v1562_v48, %v1561_v25  ;;  %v1623_v33 = vmul.f32 %v8491_v7, %v8491_v7  ;;  %v1743_v52 = vrot.slane %v1742_v31, 1 }
 0x2c0   :  { %v1702_v38 = vadd.f32 %v1701_v20, %v1700_v10  ;;  %v1527_v2 = vrot.slane %v1526_v26, 1  ;;  %v1706_v19 = vrot.slane %v1705_v23, 2  ;;  %v1568_v4 = vadd.f32 %v1567_v22, %v1566_v49 }
 0x2c1   :  { %v7881_v34 = vpop.eup %7880  ;;  %7882 = vrsqrt.f32 %v1839_v29  ;;  %v8636_v59 = vmul.f32 0.5, %v1563_v35  ;;  %v1744_v18 = vadd.f32 %v1743_v52, %v1742_v31  ;;  %v1745_v31 = vsel %vm968_vm3, %v1623_v33, 0.0  ;;  %v1439_v52 = vld [vmem:[#allocation8] sm:$0xff] }
 0x2c2   :  { %v1889_v14 = vcombine.low %v7877_v27, %v7881_v34  ;;  %v1776_v39 = vmul.f32 0.5, %v1702_v38  ;;  %v1528_v13 = vadd.f32 %v1527_v2, %v1526_v26  ;;  %v1707_v16 = vadd.f32 %v1706_v19, %v1705_v23 }
 0x2c3   :  { %9067 = vst [vmem:[#allocation36_spill] sm:$0xff] %v8636_v59  ;;  %v1802_v32 = vmul.f32 %v8636_v59, %v8636_v59  ;;  %v1569_v40 = vrot.slane %v1568_v4, 1  ;;  %v1782_v46 = vmul.f32 0.5, %v1744_v18  ;;  %v1543_v26 = vsel %vm968_vm3, %v8502_v54, 0.0 }
 0x2c4   :  { %v1917_v42 = vrot.slane %v1889_v14, %v8452_v11  ;;  %v1816_v25 = vsub.f32 %v1776_v39, %v1796_v30  ;;  %v8643_v27 = vmul.f32 0.5, %v1528_v13  ;;  %v1708_v48 = vrot.slane %v1707_v16, 1 }
 0x2c5   :  { %v1570_v20 = vadd.f32 %v1569_v40, %v1568_v4  ;;  %v1822_v29 = vsub.f32 %v1782_v46, %v1802_v32  ;;  %v9068_v39 = vcombine.low %v8540_v60, %v8582_v50  ;;  %v1746_v4 = vrot.slane %v1745_v31, 4 }
 0x2c6   :  { %v1919_v49 = vcombine.low %v8591_v24, %v1917_v42  ;;  %v1836_v23 = vadd.f32 1e-05, %v1816_v25  ;;  %v1709_v35 = vadd.f32 %v1708_v48, %v1707_v16  ;;  %v1797_v22 = vmul.f32 %v8643_v27, %v8643_v27 }
 0x2c7   :  { %v1926_v30 = vrot.slane %v9068_v39, %v8452_v11  ;;  %v9069_v33 = vcombine.low %v8565_v55, %v8599_v44  ;;  %v1842_v2 = vadd.f32 1e-05, %v1822_v29  ;;  %v1544_v14 = vrot.slane %v1543_v26, 4 }
 0x2c8   :  { %v1933_v34 = vrot.slane %v1919_v49, %v8452_v11  ;;  %v1777_v19 = vmul.f32 0.5, %v1709_v35  ;;  %7884 = vrsqrt.f32 %v1836_v23  ;;  %v8664_v60 = vmul.f32 0.5, %v1570_v20 }
 0x2c9   :  { %v8662_v38 = vrot.slane %v9069_v33, %v8452_v11  ;;  %v1747_v50 = vadd.f32 %v1746_v4, %v1745_v31  ;;  %7886 = vrsqrt.f32 %v1842_v2  ;;  %v1545_v16 = vadd.f32 %v1544_v14, %v1543_v26 }
 0x2ca   :  { %v1934_v18 = vcombine.low %v1926_v30, %v1933_v34  ;;  %v1817_v13 = vsub.f32 %v1777_v19, %v1797_v22  ;;  %v1620_v42 = vmul.f32 %v8502_v54, %v8502_v54  ;;  %v1550_v40 = vsel %vm968_vm3, %v8505_v61, 0.0 }
 0x2cb   :  { %v8668_v32 = vpop.eup %7882  ;;  %v1748_v44 = vrot.slane %v1747_v50, 2  ;;  %v1621_v25 = vmul.f32 %v8505_v61, %v8505_v61  ;;  %v1546_v49 = vrot.slane %v1545_v16, 2  ;;  %v1551_v29 = vrot.slane %v1550_v40, 4 }
 0x2cc   :  { %v8670_v55 = vmul.f32 %v1934_v18, %v1439_v52  ;;  %v1837_v48 = vadd.f32 1e-05, %v1817_v13  ;;  %v1724_v20 = vsel %vm968_vm3, %v1620_v42, 0.0  ;;  %v1803_v35 = vmul.f32 %v8664_v60, %v8664_v60 }
 0x2cd   :  { %v1749_v26 = vadd.f32 %v1748_v44, %v1747_v50  ;;  %v1725_v23 = vrot.slane %v1724_v20, 4  ;;  %v1547_v22 = vadd.f32 %v1546_v49, %v1545_v16  ;;  %v1731_v39 = vsel %vm968_vm3, %v1621_v25, 0.0 }
 0x2ce   :  { %v2068_v31 = vrot.slane %v8670_v55, %v8471_v36  ;;  %7888 = vrsqrt.f32 %v1837_v48  ;;  %v9070_v30 = vsub.f32 %v8456_v15, %v8585_v6  ;;  %v1552_v52 = vadd.f32 %v1551_v29, %v1550_v40 }
 0x2cf   :  { %v1750_v4 = vrot.slane %v1749_v26, 1  ;;  %v1726_v33 = vadd.f32 %v1725_v23, %v1724_v20  ;;  %v1548_v2 = vrot.slane %v1547_v22, 1  ;;  %v1732_v19 = vrot.slane %v1731_v39, 4 }
 0x2d0   :  { %v8687_v34 = vmul.f32 %v2068_v31, %v9070_v30  ;;  %v1571_v14 = vsel %vm968_vm3, %v8527_v56, 0.0  ;;  %v1624_v18 = vmul.f32 %v8527_v56, %v8527_v56  ;;  %v1553_v16 = vrot.slane %v1552_v52, 2 }
 0x2d1   :  { %v1751_v50 = vadd.f32 %v1750_v4, %v1749_v26  ;;  %v1727_v13 = vrot.slane %v1726_v33, 2  ;;  %v1572_v42 = vrot.slane %v1571_v14, 4  ;;  %v1549_v44 = vadd.f32 %v1548_v2, %v1547_v22 }
 0x2d2   :  { %v1733_v25 = vadd.f32 %v1732_v19, %v1731_v39  ;;  %v1752_v15 = vsel %vm968_vm3, %v1624_v18, 0.0  ;;  %v1578_v6 = vsel %vm968_vm3, %v8537_v8, 0.0  ;;  %v7885_v40 = vpop.eup %7884  ;;  %v1554_v20 = vadd.f32 %v1553_v16, %v1552_v52 }
 0x2d3   :  { %v1783_v48 = vmul.f32 0.5, %v1751_v50  ;;  %v1728_v49 = vadd.f32 %v1727_v13, %v1726_v33  ;;  %v1573_v31 = vadd.f32 %v1572_v42, %v1571_v14  ;;  %v8696_v23 = vpop.eup %7886  ;;  %v8698_v29 = vmul.f32 0.5, %v1549_v44 }
 0x2d4   :  { %v1734_v26 = vrot.slane %v1733_v25, 2  ;;  %v1753_v30 = vrot.slane %v1752_v15, 4  ;;  %v1579_v4 = vrot.slane %v1578_v6, 4  ;;  %v1555_v39 = vrot.slane %v1554_v20, 1 }
 0x2d5   :  { %v1823_v10 = vsub.f32 %v1783_v48, %v1803_v35  ;;  %v1729_v22 = vrot.slane %v1728_v49, 1  ;;  %v1574_v2 = vrot.slane %v1573_v31, 2  ;;  %v1800_v19 = vmul.f32 %v8698_v29, %v8698_v29 }
 0x2d6   :  { %v1735_v33 = vadd.f32 %v1734_v26, %v1733_v25  ;;  %v1754_v52 = vadd.f32 %v1753_v30, %v1752_v15  ;;  %v1556_v13 = vadd.f32 %v1555_v39, %v1554_v20  ;;  %v1580_v46 = vadd.f32 %v1579_v4, %v1578_v6 }
 0x2d7   :  { %v1843_v14 = vadd.f32 1e-05, %v1823_v10  ;;  %v1730_v50 = vadd.f32 %v1729_v22, %v1728_v49  ;;  %v1575_v16 = vadd.f32 %v1574_v2, %v1573_v31  ;;  %v1625_v35 = vmul.f32 %v8537_v8, %v8537_v8 }
 0x2d8   :  { %v7889_v42 = vpop.eup %7888  ;;  %v1736_v44 = vrot.slane %v1735_v33, 1  ;;  %v1755_v24 = vrot.slane %v1754_v52, 2  ;;  %v8706_v58 = vmul.f32 0.5, %v1556_v13  ;;  %v1581_v15 = vrot.slane %v1580_v46, 2 }
 0x2d9   :  { %v1936_v48 = vcombine.low %v7885_v40, %v7889_v42  ;;  %7890 = vrsqrt.f32 %v1843_v14  ;;  %v1780_v59 = vmul.f32 0.5, %v1730_v50  ;;  %v1576_v18 = vrot.slane %v1575_v16, 1 }
 0x2da   :  { %v1737_v7 = vadd.f32 %v1736_v44, %v1735_v33  ;;  %v1756_v25 = vadd.f32 %v1755_v24, %v1754_v52  ;;  %v1801_v20 = vmul.f32 %v8706_v58, %v8706_v58  ;;  %v2029_v6 = vsub.f32 %v8505_v61, %v8706_v58  ;;  %v8722_v52 = vld [vmem:[#allocation10] sm:$0xff] }
 0x2db   :  { %v8709_v10 = vrot.slane %v1936_v48, %v8452_v11  ;;  %v1820_v49 = vsub.f32 %v1780_v59, %v1800_v19  ;;  %v1577_v40 = vadd.f32 %v1576_v18, %v1575_v16  ;;  %v1582_v30 = vadd.f32 %v1581_v15, %v1580_v46 }
 0x2dc   :  { %v1781_v31 = vmul.f32 0.5, %v1737_v7  ;;  %v1757_v26 = vrot.slane %v1756_v25, 1  ;;  %v1759_v24 = vsel %vm968_vm3, %v1625_v35, 0.0  ;;  %v2060_v39 = vrot.slane %v8670_v55, %v8530_v53 }
 0x2dd   :  { %v1967_v4 = vcombine.low %v8662_v38, %v8709_v10  ;;  %v1840_v22 = vadd.f32 1e-05, %v1820_v49  ;;  %v8720_v2 = vmul.f32 0.5, %v1577_v40  ;;  %v1583_v33 = vrot.slane %v1582_v30, 1 }
 0x2de   :  { %v1821_v59 = vsub.f32 %v1781_v31, %v1801_v20  ;;  %v1758_v19 = vadd.f32 %v1757_v26, %v1756_v25  ;;  %v2018_v7 = vsub.f32 %v8398_v37, %v8437_v62  ;;  %v1760_v46 = vrot.slane %v1759_v24, 4 }
 0x2df   :  { %7892 = vrsqrt.f32 %v1840_v22  ;;  %v9071_v18 = vsub.f32 %v8408_v45, %v8439_v3  ;;  %v1804_v16 = vmul.f32 %v8720_v2, %v8720_v2  ;;  %v1584_v44 = vadd.f32 %v1583_v33, %v1582_v30 }
 0x2e0   :  { %v1841_v50 = vadd.f32 1e-05, %v1821_v59  ;;  %v1784_v13 = vmul.f32 0.5, %v1758_v19  ;;  %v1761_v35 = vadd.f32 %v1760_v46, %v1759_v24  ;;  %v2183_v48 = vrot.slane %v8722_v52, %v8530_v53 }
 0x2e1   :  { %v2142_v14 = vmul.f32 %v2060_v39, %v9071_v18  ;;  %v2056_v37 = vrot.slane %v8670_v55, %v8533_v63  ;;  %v2179_v45 = vrot.slane %v8722_v52, %v8533_v63  ;;  %v2191_v62 = vrot.slane %v8722_v52, %v8471_v36 }
 0x2e2   :  { %7894 = vrsqrt.f32 %v1841_v50  ;;  %v8743_v25 = vmul.f32 0.5, %v1584_v44  ;;  %v1762_v15 = vrot.slane %v1761_v35, 2  ;;  %v1824_v40 = vsub.f32 %v1784_v13, %v1804_v16  ;;  %v8757_v50 = vld [vmem:[#allocation10 + $0x8] sm:$0xff] }
 0x2e3   :  { %v8741_v3 = vpop.eup %7890  ;;  %v2265_v49 = vadd.f32 %v2183_v48, %v2142_v14  ;;  %v2141_v20 = vmul.f32 %v2056_v37, %v2018_v7  ;;  %v2267_v26 = vadd.f32 %v2191_v62, %v8687_v34  ;;  %v8749_v30 = vsub.s32 6, %v8318_v47 }
 0x2e4   :  { %v1984_v31 = vcombine.low %v8696_v23, %v8741_v3  ;;  %v1763_v22 = vadd.f32 %v1762_v15, %v1761_v35  ;;  %v1844_v14 = vadd.f32 1e-05, %v1824_v40  ;;  %v1805_v44 = vmul.f32 %v8743_v25, %v8743_v25  ;;  %v7188_v40 = vld [vmem:[#allocation11 + $0x200] ss:$16 sps:$4 sm:$0xff]   ;;  %v7221_v3 = vld [vmem:[#allocation11 + $0x2a8] ss:$16 sps:$4 sm:$0xff]  }
 0x2e5   :  { %v2285_v39 = vmul.f32 0.01, %v2265_v49  ;;  %v2264_v59 = vadd.f32 %v2179_v45, %v2141_v20  ;;  %v2287_v19 = vmul.f32 0.01, %v2267_v26  ;;  %v2064_v7 = vrot.slane %v8670_v55, %v8749_v30  ;;  %v7218_v23 = vld [vmem:[#allocation11 + $0x2a0] ss:$16 sps:$4 sm:$0xff]  }
 0x2e6   :  { %v1764_v33 = vrot.slane %v1763_v22, 1  ;;  %v2187_v18 = vrot.slane %v8722_v52, %v8749_v30  ;;  %v9072_v48 = vsub.f32 %v8445_v9, %v8563_v43  ;;  %v8765_v15 = vsub.s32 1, %v8318_v47 }
 0x2e7   :  { %v2305_v46 = vmax.f32 %v2265_v49, %v2285_v39  ;;  %v2284_v34 = vmul.f32 0.01, %v2264_v59  ;;  %v2307_v62 = vmax.f32 %v2267_v26, %v2287_v19  ;;  %v8768_v49 = vsub.s32 0, %v8318_v47 }
 0x2e8   :  { %v1765_v16 = vadd.f32 %v1764_v33, %v1763_v22  ;;  %v2143_v37 = vmul.f32 %v2064_v7, %v9072_v48  ;;  %v7191_v22 = vld [vmem:[#allocation11 + $0x208] ss:$16 sps:$4 sm:$0xff]   ;;  %v8773_v33 = vsub.s32 2, %v8318_v47  ;;  %v2215_v9 = vrot.slane %v8757_v50, %v8530_v53 }
 0x2e9   :  { %v7893_v13 = vpop.eup %7892  ;;  %v2321_v35 = vpack.c.bf16 %v2305_v46, %v2305_v46  ;;  %v2304_v45 = vmax.f32 %v2264_v59, %v2284_v34  ;;  %v2211_v59 = vrot.slane %v8757_v50, %v8533_v63  ;;  %v2223_v19 = vrot.slane %v8757_v50, %v8471_v36 }
 0x2ea   :  { %v1785_v20 = vmul.f32 0.5, %v1765_v16  ;;  %v8770_v39 = vadd.f32 %v2187_v18, %v2143_v37  ;;  %v2219_v46 = vrot.slane %v8757_v50, %v8749_v30  ;;  %v8784_v34 = vsub.s32 3, %v8318_v47  ;;  %v7196_v16 = vld [vmem:[#allocation11 + $0x224] ss:$16 sps:$4 sm:$0xff]  }
 0x2eb   :  { %5440 = vmatprep.mubr.bf16.mxu0 %v2321_v35  ;;  %5768 = vmatprep.mubr.bf16.mxu1 %v2321_v35  ;;  %v2320_v26 = vpack.c.bf16 %v2304_v45, %v2304_v45  ;;  %v7199_v35 = vld [vmem:[#allocation11 + $0x22c] ss:$16 sps:$4 sm:$0xff]   ;;  %v2323_v48 = vpack.c.bf16 %v2307_v62, %v2307_v62  ;;  %v9073_v37 = vcombine.low %v8632_v51, %v8668_v32  ;;  %7896 = vrsqrt.f32 %v1844_v14  ;;  %v7202_v47 = vld [vmem:[#allocation11 + $0x244] ss:$16 sps:$4 sm:$0xff]  }
 0x2ec   :  { %v7895_v43 = vpop.eup %7894  ;;  %v1825_v18 = vsub.f32 %v1785_v20, %v1805_v44  ;;  %v7197_v44 = vld [vmem:[#allocation11 + $0x228] ss:$16 sps:$4 sm:$0xff]   ;;  %v7205_v20 = vld [vmem:[#allocation11 + $0x24c] ss:$16 sps:$4 sm:$0xff]   ;;  %v2040_v62 = vrot.slane %v8670_v55, %v8768_v49  ;;  %v2048_v51 = vrot.slane %v8670_v55, %v8773_v33  ;;  %v1975_v32 = vrot.slane %v1967_v4, %v8452_v11 }
 0x2ed   :  { %v1938_v7 = vcombine.low %v7893_v13, %v7895_v43  ;;  %5441 = vmatmul.mubr.bf16.vlgmr.msra.gmra.mrb[24].mxu0 %v2320_v26  ;;  %5769 = vmatmul.mubr.bf16.vlgmr.msra.gmra.mrb[24].mxu1 %v2320_v26  ;;  %v1959_v45 = vrot.slane %v9073_v37, %v8452_v11  ;;  %v7194_v13 = vld [vmem:[#allocation11 + $0x220] ss:$16 sps:$4 sm:$0xff]   ;;  %v2044_v43 = vrot.slane %v8670_v55, %v8765_v15 }
 0x2ee   :  { %v1845_v24 = vadd.f32 1e-05, %v1825_v18  ;;  %5450 = vmatpush1.bf16.msra.mxu0 %v7188_v40  ;;  %5778 = vmatpush1.bf16.msra.mxu1 %v7191_v22  ;;  %v2052_v40 = vrot.slane %v8670_v55, %v8784_v34  ;;  %v9074_v22 = vsub.f32 %v8402_v41, %v8441_v5  ;;  %v2163_v10 = vrot.slane %v8722_v52, %v8768_v49  ;;  %v7200_v55 = vld [vmem:[#allocation11 + $0x240] ss:$16 sps:$4 sm:$0xff]  }
 0x2ef   :  { %v1966_v42 = vrot.slane %v1938_v7, %v8452_v11  ;;  %5481 = vmatprep.mubr.bf16.mxu0 %v2323_v48  ;;  %5809 = vmatprep.mubr.bf16.mxu1 %v2323_v48  ;;  %v9075_v7 = vsub.f32 %v8411_v17, %v8454_v12  ;;  %v9076_v48 = vsub.f32 %v8429_v21, %v8507_v1  ;;  %v9077_v41 = vld [vmem:[#allocation31_spill] sm:$0xff]  ;;  %v1440_v12 = vld [vmem:[#allocation8 + $0x8] sm:$0xff]  ;;  %v7211_v1 = vld [vmem:[#allocation11 + $0x26c] ss:$16 sps:$4 sm:$0xff]  }
 0x2f0   :  { %7898 = vrsqrt.f32 %v1845_v24  ;;  %5451 = vmatprep.subr.bf16.mxu0 %v7196_v16  ;;  %5779 = vmatprep.subr.bf16.mxu1 %v7199_v35  ;;  %v2137_v26 = vmul.f32 %v2040_v62, %v9074_v22  ;;  %v9078_v5 = vsub.f32 %v8433_v28, %v9077_v41  ;;  %v2167_v17 = vrot.slane %v8722_v52, %v8765_v15  ;;  %v7208_v21 = vld [vmem:[#allocation11 + $0x264] ss:$16 sps:$4 sm:$0xff]  }
 0x2f1   :  { %v1968_v14 = vcombine.low %v1959_v45, %v1966_v42  ;;  %v2138_v18 = vmul.f32 %v2044_v43, %v9075_v7  ;;  %v2139_v38 = vmul.f32 %v2048_v51, %v9076_v48  ;;  %v7203_v42 = vld [vmem:[#allocation11 + $0x248] ss:$16 sps:$4 sm:$0xff]   ;;  %v2171_v16 = vrot.slane %v8722_v52, %v8773_v33  ;;  %v9080_v51 = vld [vmem:[#allocation25_spill] sm:$0xff] }
 0x2f2   :  { %5452 = vmatpush1.bf16.msra.mxu0 %v7194_v13  ;;  %5780 = vmatpush1.bf16.msra.mxu1 %v7197_v44  ;;  %v2140_v24 = vmul.f32 %v2052_v40, %v9078_v5  ;;  %v2175_v35 = vrot.slane %v8722_v52, %v8784_v34  ;;  %v8824_v37 = vadd.f32 %v2163_v10, %v2137_v26  ;;  %v9079_v43 = vld [vmem:[#allocation32_spill] sm:$0xff]  ;;  %v7214_v52 = vld [vmem:[#allocation11 + $0x284] ss:$16 sps:$4 sm:$0xff]  }
 0x2f3   :  { %v1982_v4 = vrot.slane %v1968_v14, %v8452_v11  ;;  %5453 = vmatprep.subr.bf16.mxu0 %v7202_v47  ;;  %5781 = vmatprep.subr.bf16.mxu1 %v7205_v20  ;;  %v8826_v13 = vadd.f32 %v2167_v17, %v2138_v18  ;;  %v8828_v28 = vadd.f32 %v2171_v16, %v2139_v38  ;;  %v7206_v47 = vld [vmem:[#allocation11 + $0x260] ss:$16 sps:$4 sm:$0xff]   ;;  %v7209_v20 = vld [vmem:[#allocation11 + $0x268] ss:$16 sps:$4 sm:$0xff]   ;;  %v7217_v40 = vld [vmem:[#allocation11 + $0x28c] ss:$16 sps:$4 sm:$0xff]  }
 0x2f4   :  { %v8830_v44 = vadd.f32 %v2175_v35, %v2140_v24  ;;  %v2023_v14 = vsub.f32 %v9080_v51, %v9079_v43  ;;  %v2203_v22 = vrot.slane %v8757_v50, %v8773_v33  ;;  %v7212_v24 = vld [vmem:[#allocation11 + $0x280] ss:$16 sps:$4 sm:$0xff]   ;;  %v7215_v17 = vld [vmem:[#allocation11 + $0x288] ss:$16 sps:$4 sm:$0xff]   ;;  %v7223_v43 = vld [vmem:[#allocation11 + $0x2ac] ss:$16 sps:$4 sm:$0xff]   ;;  %v9084_v58 = vsub.f32 %v8488_v0, %v8643_v27 }
 0x2f5   :  { %v1983_v45 = vcombine.low %v1975_v32, %v1982_v4  ;;  %v2207_v32 = vrot.slane %v8757_v50, %v8784_v34  ;;  %v7897_v26 = vpop.eup %7896  ;;  %v1992_v51 = vrot.slane %v1984_v31, %v8452_v11 }
 0x2f6   :  { %5454 = vmatpush1.bf16.msra.mxu0 %v7200_v55  ;;  %5782 = vmatpush1.bf16.msra.mxu1 %v7203_v42 }
 0x2f7   :  { %v2012_v62 = vmul.f32 %v1983_v45, %v1440_v12  ;;  %5455 = vmatprep.subr.bf16.mxu0 %v7208_v21  ;;  %5783 = vmatprep.subr.bf16.mxu1 %v7211_v1  ;;  %v9081_v21 = vld [vmem:[#allocation24_spill] sm:$0xff]  ;;  %v9082_v1 = vld [vmem:[#allocation30_spill] sm:$0xff] }
 0x2f8   :  { %v9083_v16 = vsub.f32 %v9081_v21, %v9082_v1  ;;  %v9094_v21 = vld [vmem:[#allocation29_spill] sm:$0xff] }
 0x2f9   :  { %v2100_v7 = vrot.slane %v2012_v62, %v8471_v36  ;;  %v2076_v18 = vrot.slane %v2012_v62, %v8765_v15  ;;  %v2072_v48 = vrot.slane %v2012_v62, %v8768_v49  ;;  %v2084_v38 = vrot.slane %v2012_v62, %v8784_v34  ;;  %v7226_v36 = vld [vmem:[#allocation11 + $0x2c4] ss:$16 sps:$4 sm:$0xff]  }
 0x2fa   :  { %v2080_v10 = vrot.slane %v2012_v62, %v8773_v33  ;;  %v2092_v4 = vrot.slane %v2012_v62, %v8530_v53  ;;  %v2088_v55 = vrot.slane %v2012_v62, %v8533_v63  ;;  %v2096_v42 = vrot.slane %v2012_v62, %v8749_v30  ;;  %v7899_v41 = vpop.eup %7898  ;;  %5456 = vmatpush1.bf16.msra.mxu0 %v7206_v47  ;;  %v7220_v62 = vld [vmem:[#allocation11 + $0x2a4] ss:$16 sps:$4 sm:$0xff]   ;;  %v7224_v53 = vld [vmem:[#allocation11 + $0x2c0] ss:$16 sps:$4 sm:$0xff]  }
 0x2fb   :  { %v2152_v5 = vmul.f32 %v2100_v7, %v2029_v6  ;;  %5784 = vmatpush1.bf16.msra.mxu1 %v7209_v20  ;;  %v8849_v12 = vmul.f32 %v2076_v18, %v2023_v14  ;;  %v8854_v35 = vmul.f32 %v2072_v48, %v9083_v16  ;;  %v1985_v45 = vcombine.low %v7897_v26, %v7899_v41  ;;  %v9085_v6 = vld [vmem:[#allocation35_spill] sm:$0xff]  ;;  %v9088_v7 = vld [vmem:[#allocation34_spill] sm:$0xff]  ;;  %v9091_v18 = vld [vmem:[#allocation33_spill] sm:$0xff] }
 0x2fc   :  { %5457 = vmatprep.subr.bf16.mxu0 %v7214_v52  ;;  %5785 = vmatprep.subr.bf16.mxu1 %v7217_v40  ;;  %v2148_v61 = vmul.f32 %v2084_v38, %v9084_v58  ;;  %v9086_v47 = vsub.f32 %v8482_v57, %v9085_v6  ;;  %v9087_v14 = vld [vmem:[#allocation27_spill] sm:$0xff]  ;;  %v9090_v40 = vld [vmem:[#allocation26_spill] sm:$0xff]  ;;  %v2031_v1 = vsub.f32 %v9094_v21, %v8664_v60 }
 0x2fd   :  { %v9089_v26 = vsub.f32 %v9087_v14, %v9088_v7  ;;  %v9092_v48 = vsub.f32 %v9090_v40, %v9091_v18  ;;  %v1999_v0 = vrot.slane %v1985_v45, %v8452_v11  ;;  %v8880_v57 = vadd.f32 %v2223_v19, %v2152_v5  ;;  %v7229_v19 = vld [vmem:[#allocation11 + $0x2cc] ss:$16 sps:$4 sm:$0xff]   ;;  %v7269_v21 = vld [vmem:[#allocation11 + $0x3a8] ss:$16 sps:$4 sm:$0xff]  }
 0x2fe   :  { %v2147_v20 = vmul.f32 %v2080_v10, %v9086_v47  ;;  %v8873_v27 = vadd.f32 %v2207_v32, %v2148_v61  ;;  %5458 = vmatpush1.bf16.msra.mxu0 %v7212_v24  ;;  %v9093_v10 = vsub.f32 %v8502_v54, %v8698_v29  ;;  %v1444_v24 = vld [vmem:[#allocation10 + $0x10] sm:$0xf]  ;;  %v9095_v30 = vsub.f32 %v8537_v8, %v8743_v25  ;;  %v7238_v61 = vld [vmem:[#allocation11 + $0x304] ss:$16 sps:$4 sm:$0xff]   ;;  %v7236_v8 = vld [vmem:[#allocation11 + $0x300] ss:$16 sps:$4 sm:$0xff]  }
 0x2ff   :  { %v2150_v52 = vmul.f32 %v2092_v4, %v9089_v26  ;;  %v2149_v41 = vmul.f32 %v2088_v55, %v9092_v48  ;;  %5786 = vmatpush1.bf16.msra.mxu1 %v7215_v17  ;;  %5459 = vmatprep.subr.bf16.mxu0 %v7220_v62  ;;  %v1441_v55 = vld [vmem:[#allocation8 + $0x10] sm:$0xf]  ;;  %v7235_v17 = vld [vmem:[#allocation11 + $0x2ec] ss:$16 sps:$4 sm:$0xff]   ;;  %v2239_v45 = vrot.slane %v1444_v24, %v8784_v34  ;;  %v7230_v62 = vld [vmem:[#allocation11 + $0x2e0] ss:$16 sps:$4 sm:$0xff]  }
 0x300   :  { %v8875_v38 = vadd.f32 %v2203_v22, %v2147_v20  ;;  %v2000_v22 = vcombine.low %v1992_v51, %v1999_v0  ;;  %5787 = vmatprep.subr.bf16.mxu1 %v7223_v43  ;;  %v2151_v4 = vmul.f32 %v2096_v42, %v9093_v10  ;;  %v7233_v43 = vld [vmem:[#allocation11 + $0x2e8] ss:$16 sps:$4 sm:$0xff]   ;;  %v2235_v60 = vrot.slane %v1444_v24, %v8773_v33  ;;  %v7241_v6 = vld [vmem:[#allocation11 + $0x30c] ss:$16 sps:$4 sm:$0xff]   ;;  %v7244_v48 = vld [vmem:[#allocation11 + $0x324] ss:$16 sps:$4 sm:$0xff]  }
 0x301   :  { %v8885_v31 = vadd.f32 %v2215_v9, %v2150_v52  ;;  %v8890_v32 = vadd.f32 %v2211_v59, %v2149_v41  ;;  %v7227_v9 = vld [vmem:[#allocation11 + $0x2c8] ss:$16 sps:$4 sm:$0xff]   ;;  %v7232_v59 = vld [vmem:[#allocation11 + $0x2e4] ss:$16 sps:$4 sm:$0xff]   ;;  %v9099_v26 = vsub.f32 %v8527_v56, %v8720_v2  ;;  %v7247_v41 = vld [vmem:[#allocation11 + $0x32c] ss:$16 sps:$4 sm:$0xff]  }
 0x302   :  { %v2007_v5 = vrot.slane %v2000_v22, %v8452_v11  ;;  %5460 = vmatpush1.bf16.msra.mxu0 %v7218_v23  ;;  %v8901_v54 = vadd.f32 %v2219_v46, %v2151_v4  ;;  %v9096_v20 = vld [vmem:[#allocation28_spill] sm:$0xff]  ;;  %v7242_v0 = vld [vmem:[#allocation11 + $0x320] ss:$16 sps:$4 sm:$0xff]   ;;  %v7250_v56 = vld [vmem:[#allocation11 + $0x344] ss:$16 sps:$4 sm:$0xff]  }
 0x303   :  { %5788 = vmatpush1.bf16.msra.mxu1 %v7221_v3  ;;  %5461 = vmatprep.subr.bf16.mxu0 %v7226_v36  ;;  %v9097_v51 = vld [vmem:[#allocation36_spill] sm:$0xff]  ;;  %v7248_v3 = vld [vmem:[#allocation11 + $0x340] ss:$16 sps:$4 sm:$0xff]   ;;  %v7256_v36 = vld [vmem:[#allocation11 + $0x364] ss:$16 sps:$4 sm:$0xff]  }
 0x304   :  { %v2013_v63 = vmul.f32 %v2007_v5, %v1441_v55  ;;  %5789 = vmatprep.subr.bf16.mxu1 %v7229_v19  ;;  %v9098_v14 = vsub.f32 %v9096_v20, %v9097_v51  ;;  %v7239_v25 = vld [vmem:[#allocation11 + $0x308] ss:$16 sps:$4 sm:$0xff]   ;;  %v7253_v2 = vld [vmem:[#allocation11 + $0x34c] ss:$16 sps:$4 sm:$0xff]   ;;  %v7254_v10 = vld [vmem:[#allocation11 + $0x360] ss:$16 sps:$4 sm:$0xff]  }
 0x305   :  { %v7245_v23 = vld [vmem:[#allocation11 + $0x328] ss:$16 sps:$4 sm:$0xff]   ;;  %v7259_v19 = vld [vmem:[#allocation11 + $0x36c] ss:$16 sps:$4 sm:$0xff]   ;;  %v7262_v55 = vld [vmem:[#allocation11 + $0x384] ss:$16 sps:$4 sm:$0xff]  }
 0x306   :  { %v2116_v29 = vrot.slane %v2013_v63, %v8784_v34  ;;  %v2108_v42 = vrot.slane %v2013_v63, %v8765_v15  ;;  %v2104_v16 = vrot.slane %v2013_v63, %v8768_v49  ;;  %5462 = vmatpush1.bf16.msra.mxu0 %v7224_v53  ;;  %v2112_v58 = vrot.slane %v2013_v63, %v8773_v33  ;;  %v7251_v22 = vld [vmem:[#allocation11 + $0x348] ss:$16 sps:$4 sm:$0xff]   ;;  %v7265_v5 = vld [vmem:[#allocation11 + $0x38c] ss:$16 sps:$4 sm:$0xff]   ;;  %v7260_v53 = vld [vmem:[#allocation11 + $0x380] ss:$16 sps:$4 sm:$0xff]  }
 0x307   :  { %5790 = vmatpush1.bf16.msra.mxu1 %v7227_v9  ;;  %5463 = vmatprep.subr.bf16.mxu0 %v7232_v59  ;;  %v7257_v4 = vld [vmem:[#allocation11 + $0x368] ss:$16 sps:$4 sm:$0xff]   ;;  %v7268_v24 = vld [vmem:[#allocation11 + $0x3a4] ss:$16 sps:$4 sm:$0xff]   ;;  %v7271_v63 = vld [vmem:[#allocation11 + $0x3ac] ss:$16 sps:$4 sm:$0xff]   ;;  %v2199_v59 = vrot.slane %v8757_v50, %v8765_v15 }
 0x308   :  { %v2156_v46 = vmul.f32 %v2116_v29, %v9095_v30  ;;  %5791 = vmatprep.subr.bf16.mxu1 %v7235_v17  ;;  %v8912_v47 = vmul.f32 %v2108_v42, %v2031_v1  ;;  %v8917_v7 = vmul.f32 %v2104_v16, %v9098_v14  ;;  %v2155_v52 = vmul.f32 %v2112_v58, %v9099_v26  ;;  %v7263_v9 = vld [vmem:[#allocation11 + $0x388] ss:$16 sps:$4 sm:$0xff]   ;;  %v7266_v17 = vld [vmem:[#allocation11 + $0x3a0] ss:$16 sps:$4 sm:$0xff]   ;;  %v7274_v1 = vld [vmem:[#allocation11 + $0x3c4] ss:$16 sps:$4 sm:$0xff]  }
 0x309   :  { %v7277_v29 = vld [vmem:[#allocation11 + $0x3cc] ss:$16 sps:$4 sm:$0xff]   ;;  %v2269_v42 = vadd.f32 %v2199_v59, %v8849_v12  ;;  %v7272_v16 = vld [vmem:[#allocation11 + $0x3c0] ss:$16 sps:$4 sm:$0xff]   ;;  %v2286_v58 = vmul.f32 0.01, %v8770_v39 }
 0x30a   :  { %v8922_v40 = vadd.f32 %v2239_v45, %v2156_v46  ;;  %5464 = vmatpush1.bf16.msra.mxu0 %v7230_v62  ;;  %v8924_v18 = vadd.f32 %v2235_v60, %v2155_v52  ;;  %v7275_v45 = vld [vmem:[#allocation11 + $0x3c8] ss:$16 sps:$4 sm:$0xff]   ;;  %v7280_v62 = vld [vmem:[#allocation11 + $0x3e4] ss:$16 sps:$4 sm:$0xff]   ;;  %v7278_v30 = vld [vmem:[#allocation11 + $0x3e0] ss:$16 sps:$4 sm:$0xff]  }
 0x30b   :  { %5792 = vmatpush1.bf16.msra.mxu1 %v7233_v43  ;;  %5465 = vmatprep.subr.bf16.mxu0 %v7238_v61  ;;  %v7283_v43 = vld [vmem:[#allocation11 + $0x3ec] ss:$16 sps:$4 sm:$0xff]   ;;  %v2289_v60 = vmul.f32 0.01, %v2269_v42  ;;  %v7281_v46 = vld [vmem:[#allocation11 + $0x3e8] ss:$16 sps:$4 sm:$0xff]   ;;  %v2306_v61 = vmax.f32 %v8770_v39, %v2286_v58 }
 0x30c   :  { %5793 = vmatprep.subr.bf16.mxu1 %v7241_v6  ;;  %v7286_v12 = vld [vmem:[#allocation11 + $0x404] ss:$16 sps:$4 sm:$0xff]   ;;  %v7289_v6 = vld [vmem:[#allocation11 + $0x40c] ss:$16 sps:$4 sm:$0xff]   ;;  %v7284_v51 = vld [vmem:[#allocation11 + $0x400] ss:$16 sps:$4 sm:$0xff]  }
 0x30d   :  { %v2309_v20 = vmax.f32 %v2269_v42, %v2289_v60  ;;  %v2322_v14 = vpack.c.bf16 %v2306_v61, %v2306_v61  ;;  %v7287_v26 = vld [vmem:[#allocation11 + $0x408] ss:$16 sps:$4 sm:$0xff]   ;;  %v7325_v59 = vld [vmem:[#allocation11 + $0x4cc] ss:$16 sps:$4 sm:$0xff]   ;;  %v7326_v42 = vld [vmem:[#allocation11 + $0x4e0] ss:$16 sps:$4 sm:$0xff]  }
 0x30e   :  { %5466 = vmatpush1.bf16.msra.mxu0 %v7236_v8  ;;  %v7292_v8 = vld [vmem:[#allocation11 + $0x424] ss:$16 sps:$4 sm:$0xff]   ;;  %v7293_v39 = vld [vmem:[#allocation11 + $0x428] ss:$16 sps:$4 sm:$0xff]  }
 0x30f   :  { %5794 = vmatpush1.bf16.msra.mxu1 %v7239_v25  ;;  %5467 = vmatprep.subr.bf16.mxu0 %v7244_v48  ;;  %v2325_v52 = vpack.c.bf16 %v2309_v20, %v2309_v20  ;;  %v7295_v25 = vld [vmem:[#allocation11 + $0x42c] ss:$16 sps:$4 sm:$0xff]   ;;  %v7290_v48 = vld [vmem:[#allocation11 + $0x420] ss:$16 sps:$4 sm:$0xff]   ;;  %v7335_v58 = vld [vmem:[#allocation11 + $0x508] ss:$16 sps:$4 sm:$0xff]  }
 0x310   :  { %5795 = vmatprep.subr.bf16.mxu1 %v7247_v41  ;;  %v7298_v41 = vld [vmem:[#allocation11 + $0x444] ss:$16 sps:$4 sm:$0xff]   ;;  %v7341_v61 = vld [vmem:[#allocation11 + $0x528] ss:$16 sps:$4 sm:$0xff]   ;;  %v7344_v20 = vld [vmem:[#allocation11 + $0x540] ss:$16 sps:$4 sm:$0xff]  }
 0x311   :  { %v7340_v60 = vld [vmem:[#allocation11 + $0x524] ss:$16 sps:$4 sm:$0xff]  }
 0x312   :  { %5468 = vmatpush1.bf16.msra.mxu0 %v7242_v0  ;;  %v7301_v0 = vld [vmem:[#allocation11 + $0x44c] ss:$16 sps:$4 sm:$0xff]  }
 0x313   :  { %5796 = vmatpush1.bf16.msra.mxu1 %v7245_v23  ;;  %5469 = vmatprep.subr.bf16.mxu0 %v7250_v56  ;;  %v7296_v23 = vld [vmem:[#allocation11 + $0x440] ss:$16 sps:$4 sm:$0xff]   ;;  %v7299_v56 = vld [vmem:[#allocation11 + $0x448] ss:$16 sps:$4 sm:$0xff]  }
 0x314   :  { %5797 = vmatprep.subr.bf16.mxu1 %v7253_v2  ;;  %v7304_v2 = vld [vmem:[#allocation11 + $0x464] ss:$16 sps:$4 sm:$0xff]  }
 0x316   :  { %5470 = vmatpush1.bf16.msra.mxu0 %v7248_v3  ;;  %v7307_v3 = vld [vmem:[#allocation11 + $0x46c] ss:$16 sps:$4 sm:$0xff]  }
 0x317   :  { %5798 = vmatpush1.bf16.msra.mxu1 %v7251_v22  ;;  %5471 = vmatprep.subr.bf16.mxu0 %v7256_v36  ;;  %v7302_v22 = vld [vmem:[#allocation11 + $0x460] ss:$16 sps:$4 sm:$0xff]   ;;  %v7305_v36 = vld [vmem:[#allocation11 + $0x468] ss:$16 sps:$4 sm:$0xff]  }
 0x318   :  { %5799 = vmatprep.subr.bf16.mxu1 %v7259_v19  ;;  %v7310_v19 = vld [vmem:[#allocation11 + $0x484] ss:$16 sps:$4 sm:$0xff]  }
 0x31a   :  { %5472 = vmatpush1.bf16.msra.mxu0 %v7254_v10  ;;  %v7313_v10 = vld [vmem:[#allocation11 + $0x48c] ss:$16 sps:$4 sm:$0xff]  }
 0x31b   :  { %5800 = vmatpush1.bf16.msra.mxu1 %v7257_v4  ;;  %5473 = vmatprep.subr.bf16.mxu0 %v7262_v55  ;;  %v7308_v4 = vld [vmem:[#allocation11 + $0x480] ss:$16 sps:$4 sm:$0xff]   ;;  %v7311_v55 = vld [vmem:[#allocation11 + $0x488] ss:$16 sps:$4 sm:$0xff]  }
 0x31c   :  { %5801 = vmatprep.subr.bf16.mxu1 %v7265_v5  ;;  %v7316_v5 = vld [vmem:[#allocation11 + $0x4a4] ss:$16 sps:$4 sm:$0xff]  }
 0x31e   :  { %5474 = vmatpush1.bf16.msra.mxu0 %v7260_v53  ;;  %v7319_v53 = vld [vmem:[#allocation11 + $0x4ac] ss:$16 sps:$4 sm:$0xff]  }
 0x31f   :  { %5802 = vmatpush1.bf16.msra.mxu1 %v7263_v9  ;;  %5475 = vmatprep.subr.bf16.mxu0 %v7268_v24  ;;  %v7314_v9 = vld [vmem:[#allocation11 + $0x4a0] ss:$16 sps:$4 sm:$0xff]   ;;  %v7317_v24 = vld [vmem:[#allocation11 + $0x4a8] ss:$16 sps:$4 sm:$0xff]  }
 0x320   :  { %5803 = vmatprep.subr.bf16.mxu1 %v7271_v63  ;;  %v7322_v63 = vld [vmem:[#allocation11 + $0x4c4] ss:$16 sps:$4 sm:$0xff]  }
 0x322   :  { %5476 = vmatpush1.bf16.msra.mxu0 %v7266_v17  ;;  %v7320_v17 = vld [vmem:[#allocation11 + $0x4c0] ss:$16 sps:$4 sm:$0xff]  }
 0x323   :  { %5804 = vmatpush1.bf16.msra.mxu1 %v7269_v21  ;;  %5477 = vmatprep.subr.bf16.mxu0 %v7274_v1  ;;  %v7323_v21 = vld [vmem:[#allocation11 + $0x4c8] ss:$16 sps:$4 sm:$0xff]   ;;  %v7328_v1 = vld [vmem:[#allocation11 + $0x4e4] ss:$16 sps:$4 sm:$0xff]  }
 0x324   :  { %5805 = vmatprep.subr.bf16.mxu1 %v7277_v29  ;;  %v7331_v29 = vld [vmem:[#allocation11 + $0x4ec] ss:$16 sps:$4 sm:$0xff]  }
 0x326   :  { %5478 = vmatpush1.bf16.msra.mxu0 %v7272_v16  ;;  %v7329_v16 = vld [vmem:[#allocation11 + $0x4e8] ss:$16 sps:$4 sm:$0xff]  }
 0x327   :  { %5806 = vmatpush1.bf16.msra.mxu1 %v7275_v45  ;;  %5479 = vmatprep.subr.bf16.mxu0 %v7280_v62  ;;  %v7334_v45 = vld [vmem:[#allocation11 + $0x504] ss:$16 sps:$4 sm:$0xff]   ;;  %v7337_v62 = vld [vmem:[#allocation11 + $0x50c] ss:$16 sps:$4 sm:$0xff]  }
 0x328   :  { %5807 = vmatprep.subr.bf16.mxu1 %v7283_v43  ;;  %v7332_v43 = vld [vmem:[#allocation11 + $0x500] ss:$16 sps:$4 sm:$0xff]  }
 0x32a   :  { %5480 = vmatpush1.bf16.msra.mxu0 %v7278_v30  ;;  %v7343_v30 = vld [vmem:[#allocation11 + $0x52c] ss:$16 sps:$4 sm:$0xff]  }
 0x32b   :  { %5808 = vmatpush1.bf16.msra.mxu1 %v7281_v46  ;;  %5490 = vmatprep.subr.bf16.mxu0 %v7286_v12  ;;  %v7338_v46 = vld [vmem:[#allocation11 + $0x520] ss:$16 sps:$4 sm:$0xff]   ;;  %v7346_v12 = vld [vmem:[#allocation11 + $0x544] ss:$16 sps:$4 sm:$0xff]  }
 0x32c   :  { %5818 = vmatprep.subr.bf16.mxu1 %v7289_v6  ;;  %v7349_v6 = vld [vmem:[#allocation11 + $0x54c] ss:$16 sps:$4 sm:$0xff]  }
 0x32d   :  { %5482 = vmatmul.mubr.bf16.vlgmr.msra.gmra.mrb[24].mxu0 %v2322_v14 }
 0x32e   :  { %5810 = vmatmul.mubr.bf16.vlgmr.msra.gmra.mrb[24].mxu1 %v2322_v14  ;;  %5491 = vmatpush1.bf16.msra.mxu0 %v7284_v51  ;;  %v7347_v51 = vld [vmem:[#allocation11 + $0x548] ss:$16 sps:$4 sm:$0xff]   ;;  %v7352_v14 = vld [vmem:[#allocation11 + $0x564] ss:$16 sps:$4 sm:$0xff]  }
 0x32f   :  { %5522 = vmatprep.mubr.bf16.mxu0 %v2325_v52  ;;  %5819 = vmatpush1.bf16.msra.mxu1 %v7287_v26  ;;  %v7355_v26 = vld [vmem:[#allocation11 + $0x56c] ss:$16 sps:$4 sm:$0xff]  }
 0x330   :  { %5850 = vmatprep.mubr.bf16.mxu1 %v2325_v52  ;;  %5492 = vmatprep.subr.bf16.mxu0 %v7292_v8  ;;  %v7350_v52 = vld [vmem:[#allocation11 + $0x560] ss:$16 sps:$4 sm:$0xff]   ;;  %v7353_v8 = vld [vmem:[#allocation11 + $0x568] ss:$16 sps:$4 sm:$0xff]  }
 0x331   :  { %5820 = vmatprep.subr.bf16.mxu1 %v7295_v25  ;;  %v7358_v25 = vld [vmem:[#allocation11 + $0x584] ss:$16 sps:$4 sm:$0xff]  }
 0x332   :  { %5493 = vmatpush1.bf16.msra.mxu0 %v7290_v48  ;;  %v7361_v48 = vld [vmem:[#allocation11 + $0x58c] ss:$16 sps:$4 sm:$0xff]  }
 0x333   :  { %5821 = vmatpush1.bf16.msra.mxu1 %v7293_v39  ;;  %5494 = vmatprep.subr.bf16.mxu0 %v7298_v41  ;;  %v7356_v39 = vld [vmem:[#allocation11 + $0x580] ss:$16 sps:$4 sm:$0xff]   ;;  %v7359_v41 = vld [vmem:[#allocation11 + $0x588] ss:$16 sps:$4 sm:$0xff]  }
 0x334   :  { %5822 = vmatprep.subr.bf16.mxu1 %v7301_v0  ;;  %v7364_v0 = vld [vmem:[#allocation11 + $0x5a4] ss:$16 sps:$4 sm:$0xff]  }
 0x336   :  { %5495 = vmatpush1.bf16.msra.mxu0 %v7296_v23  ;;  %v2195_v23 = vrot.slane %v8757_v50, %v8768_v49  ;;  %v7379_v50 = vld [vmem:[#allocation11 + $0x5ec] ss:$16 sps:$4 sm:$0xff]  }
 0x337   :  { %5823 = vmatpush1.bf16.msra.mxu1 %v7299_v56  ;;  %5496 = vmatprep.subr.bf16.mxu0 %v7304_v2  ;;  %v7367_v56 = vld [vmem:[#allocation11 + $0x5ac] ss:$16 sps:$4 sm:$0xff]   ;;  %v7362_v2 = vld [vmem:[#allocation11 + $0x5a0] ss:$16 sps:$4 sm:$0xff]  }
 0x338   :  { %5824 = vmatprep.subr.bf16.mxu1 %v7307_v3  ;;  %v7365_v3 = vld [vmem:[#allocation11 + $0x5a8] ss:$16 sps:$4 sm:$0xff]  }
 0x33a   :  { %5497 = vmatpush1.bf16.msra.mxu0 %v7302_v22  ;;  %v7370_v22 = vld [vmem:[#allocation11 + $0x5c4] ss:$16 sps:$4 sm:$0xff]  }
 0x33b   :  { %5825 = vmatpush1.bf16.msra.mxu1 %v7305_v36  ;;  %5498 = vmatprep.subr.bf16.mxu0 %v7310_v19  ;;  %v2268_v36 = vadd.f32 %v2195_v23, %v8854_v35  ;;  %v7373_v19 = vld [vmem:[#allocation11 + $0x5cc] ss:$16 sps:$4 sm:$0xff]   ;;  %v7382_v35 = vld [vmem:[#allocation11 + $0x604] ss:$16 sps:$4 sm:$0xff]   ;;  %v7419_v23 = vld [vmem:[#allocation11 + $0x6c8] ss:$16 sps:$4 sm:$0xff]  }
 0x33c   :  { %5826 = vmatprep.subr.bf16.mxu1 %v7313_v10  ;;  %v7368_v10 = vld [vmem:[#allocation11 + $0x5c0] ss:$16 sps:$4 sm:$0xff]  }
 0x33e   :  { %5499 = vmatpush1.bf16.msra.mxu0 %v7308_v4  ;;  %v7371_v4 = vld [vmem:[#allocation11 + $0x5c8] ss:$16 sps:$4 sm:$0xff]  }
 0x33f   :  { %5827 = vmatpush1.bf16.msra.mxu1 %v7311_v55  ;;  %5500 = vmatprep.subr.bf16.mxu0 %v7316_v5  ;;  %v7376_v55 = vld [vmem:[#allocation11 + $0x5e4] ss:$16 sps:$4 sm:$0xff]   ;;  %v2288_v5 = vmul.f32 0.01, %v2268_v36 }
 0x340   :  { %5828 = vmatprep.subr.bf16.mxu1 %v7319_v53  ;;  %v2291_v53 = vmul.f32 0.01, %v8873_v27 }
 0x342   :  { %5501 = vmatpush1.bf16.msra.mxu0 %v7314_v9  ;;  %v7374_v9 = vld [vmem:[#allocation11 + $0x5e0] ss:$16 sps:$4 sm:$0xff]  }
 0x343   :  { %5829 = vmatpush1.bf16.msra.mxu1 %v7317_v24  ;;  %5502 = vmatprep.subr.bf16.mxu0 %v7322_v63  ;;  %v7377_v24 = vld [vmem:[#allocation11 + $0x5e8] ss:$16 sps:$4 sm:$0xff]   ;;  %v2308_v63 = vmax.f32 %v2268_v36, %v2288_v5  ;;  %v7430_v36 = vld [vmem:[#allocation11 + $0x704] ss:$16 sps:$4 sm:$0xff]   ;;  %v7439_v5 = vld [vmem:[#allocation11 + $0x72c] ss:$16 sps:$4 sm:$0xff]  }
 0x344   :  { %5830 = vmatprep.subr.bf16.mxu1 %v7325_v59  ;;  %v7385_v59 = vld [vmem:[#allocation11 + $0x60c] ss:$16 sps:$4 sm:$0xff]  }
 0x346   :  { %5503 = vmatpush1.bf16.msra.mxu0 %v7320_v17  ;;  %v2311_v17 = vmax.f32 %v8873_v27, %v2291_v53  ;;  %v7397_v27 = vld [vmem:[#allocation11 + $0x64c] ss:$16 sps:$4 sm:$0xff]   ;;  %v7437_v53 = vld [vmem:[#allocation11 + $0x728] ss:$16 sps:$4 sm:$0xff]  }
 0x347   :  { %5831 = vmatpush1.bf16.msra.mxu1 %v7323_v21  ;;  %5504 = vmatprep.subr.bf16.mxu0 %v7328_v1  ;;  %v7380_v21 = vld [vmem:[#allocation11 + $0x600] ss:$16 sps:$4 sm:$0xff]   ;;  %v2324_v1 = vpack.c.bf16 %v2308_v63, %v2308_v63 }
 0x348   :  { %5832 = vmatprep.subr.bf16.mxu1 %v7331_v29  ;;  %v7383_v29 = vld [vmem:[#allocation11 + $0x608] ss:$16 sps:$4 sm:$0xff]   ;;  %v7440_v63 = vld [vmem:[#allocation11 + $0x740] ss:$16 sps:$4 sm:$0xff]  }
 0x34a   :  { %5505 = vmatpush1.bf16.msra.mxu0 %v7326_v42  ;;  %v7388_v42 = vld [vmem:[#allocation11 + $0x624] ss:$16 sps:$4 sm:$0xff]  }
 0x34b   :  { %5833 = vmatpush1.bf16.msra.mxu1 %v7329_v16  ;;  %5506 = vmatprep.subr.bf16.mxu0 %v7334_v45  ;;  %v2327_v16 = vpack.c.bf16 %v2311_v17, %v2311_v17  ;;  %v7391_v45 = vld [vmem:[#allocation11 + $0x62c] ss:$16 sps:$4 sm:$0xff]  }
 0x34c   :  { %5834 = vmatprep.subr.bf16.mxu1 %v7337_v62  ;;  %v7386_v62 = vld [vmem:[#allocation11 + $0x620] ss:$16 sps:$4 sm:$0xff]   ;;  %v7451_v17 = vld [vmem:[#allocation11 + $0x76c] ss:$16 sps:$4 sm:$0xff]  }
 0x34e   :  { %5507 = vmatpush1.bf16.msra.mxu0 %v7332_v43  ;;  %v7389_v43 = vld [vmem:[#allocation11 + $0x628] ss:$16 sps:$4 sm:$0xff]  }
 0x34f   :  { %5835 = vmatpush1.bf16.msra.mxu1 %v7335_v58  ;;  %5508 = vmatprep.subr.bf16.mxu0 %v7340_v60  ;;  %v7394_v58 = vld [vmem:[#allocation11 + $0x644] ss:$16 sps:$4 sm:$0xff]   ;;  %v7392_v60 = vld [vmem:[#allocation11 + $0x640] ss:$16 sps:$4 sm:$0xff]  }
 0x350   :  { %5836 = vmatprep.subr.bf16.mxu1 %v7343_v30  ;;  %v7395_v30 = vld [vmem:[#allocation11 + $0x648] ss:$16 sps:$4 sm:$0xff]  }
 0x352   :  { %5509 = vmatpush1.bf16.msra.mxu0 %v7338_v46  ;;  %v7400_v46 = vld [vmem:[#allocation11 + $0x664] ss:$16 sps:$4 sm:$0xff]  }
 0x353   :  { %5837 = vmatpush1.bf16.msra.mxu1 %v7341_v61  ;;  %5510 = vmatprep.subr.bf16.mxu0 %v7346_v12  ;;  %v7403_v61 = vld [vmem:[#allocation11 + $0x66c] ss:$16 sps:$4 sm:$0xff]   ;;  %v7398_v12 = vld [vmem:[#allocation11 + $0x660] ss:$16 sps:$4 sm:$0xff]  }
 0x354   :  { %5838 = vmatprep.subr.bf16.mxu1 %v7349_v6  ;;  %v7401_v6 = vld [vmem:[#allocation11 + $0x668] ss:$16 sps:$4 sm:$0xff]  }
 0x356   :  { %5511 = vmatpush1.bf16.msra.mxu0 %v7344_v20  ;;  %v7406_v20 = vld [vmem:[#allocation11 + $0x684] ss:$16 sps:$4 sm:$0xff]  }
 0x357   :  { %5839 = vmatpush1.bf16.msra.mxu1 %v7347_v51  ;;  %5512 = vmatprep.subr.bf16.mxu0 %v7352_v14  ;;  %v7409_v51 = vld [vmem:[#allocation11 + $0x68c] ss:$16 sps:$4 sm:$0xff]   ;;  %v7404_v14 = vld [vmem:[#allocation11 + $0x680] ss:$16 sps:$4 sm:$0xff]  }
 0x358   :  { %5840 = vmatprep.subr.bf16.mxu1 %v7355_v26  ;;  %v7407_v26 = vld [vmem:[#allocation11 + $0x688] ss:$16 sps:$4 sm:$0xff]  }
 0x35a   :  { %5513 = vmatpush1.bf16.msra.mxu0 %v7350_v52  ;;  %v7412_v52 = vld [vmem:[#allocation11 + $0x6a4] ss:$16 sps:$4 sm:$0xff]  }
 0x35b   :  { %5841 = vmatpush1.bf16.msra.mxu1 %v7353_v8  ;;  %5514 = vmatprep.subr.bf16.mxu0 %v7358_v25  ;;  %v7415_v8 = vld [vmem:[#allocation11 + $0x6ac] ss:$16 sps:$4 sm:$0xff]   ;;  %v7410_v25 = vld [vmem:[#allocation11 + $0x6a0] ss:$16 sps:$4 sm:$0xff]  }
 0x35c   :  { %5842 = vmatprep.subr.bf16.mxu1 %v7361_v48  ;;  %v7413_v48 = vld [vmem:[#allocation11 + $0x6a8] ss:$16 sps:$4 sm:$0xff]  }
 0x35e   :  { %5515 = vmatpush1.bf16.msra.mxu0 %v7356_v39  ;;  %v7418_v39 = vld [vmem:[#allocation11 + $0x6c4] ss:$16 sps:$4 sm:$0xff]  }
 0x35f   :  { %5843 = vmatpush1.bf16.msra.mxu1 %v7359_v41  ;;  %5516 = vmatprep.subr.bf16.mxu0 %v7364_v0  ;;  %v7421_v41 = vld [vmem:[#allocation11 + $0x6cc] ss:$16 sps:$4 sm:$0xff]   ;;  %v7416_v0 = vld [vmem:[#allocation11 + $0x6c0] ss:$16 sps:$4 sm:$0xff]  }
 0x360   :  { %5844 = vmatprep.subr.bf16.mxu1 %v7367_v56  ;;  %v7424_v56 = vld [vmem:[#allocation11 + $0x6e4] ss:$16 sps:$4 sm:$0xff]  }
 0x362   :  { %5517 = vmatpush1.bf16.msra.mxu0 %v7362_v2  ;;  %v7427_v2 = vld [vmem:[#allocation11 + $0x6ec] ss:$16 sps:$4 sm:$0xff]  }
 0x363   :  { %5845 = vmatpush1.bf16.msra.mxu1 %v7365_v3  ;;  %5518 = vmatprep.subr.bf16.mxu0 %v7370_v22  ;;  %v7422_v3 = vld [vmem:[#allocation11 + $0x6e0] ss:$16 sps:$4 sm:$0xff]   ;;  %v7425_v22 = vld [vmem:[#allocation11 + $0x6e8] ss:$16 sps:$4 sm:$0xff]  }
 0x364   :  { %5846 = vmatprep.subr.bf16.mxu1 %v7373_v19  ;;  %v7433_v19 = vld [vmem:[#allocation11 + $0x70c] ss:$16 sps:$4 sm:$0xff]  }
 0x366   :  { %5519 = vmatpush1.bf16.msra.mxu0 %v7368_v10  ;;  %v7428_v10 = vld [vmem:[#allocation11 + $0x700] ss:$16 sps:$4 sm:$0xff]  }
 0x367   :  { %5847 = vmatpush1.bf16.msra.mxu1 %v7371_v4  ;;  %5520 = vmatprep.subr.bf16.mxu0 %v7376_v55  ;;  %v7431_v4 = vld [vmem:[#allocation11 + $0x708] ss:$16 sps:$4 sm:$0xff]   ;;  %v7436_v55 = vld [vmem:[#allocation11 + $0x724] ss:$16 sps:$4 sm:$0xff]  }
 0x368   :  { %5848 = vmatprep.subr.bf16.mxu1 %v7379_v50  ;;  %v7434_v50 = vld [vmem:[#allocation11 + $0x720] ss:$16 sps:$4 sm:$0xff]  }
 0x36a   :  { %5521 = vmatpush1.bf16.msra.mxu0 %v7374_v9  ;;  %v7442_v9 = vld [vmem:[#allocation11 + $0x744] ss:$16 sps:$4 sm:$0xff]  }
 0x36b   :  { %5849 = vmatpush1.bf16.msra.mxu1 %v7377_v24  ;;  %5531 = vmatprep.subr.bf16.mxu0 %v7382_v35  ;;  %v7445_v24 = vld [vmem:[#allocation11 + $0x74c] ss:$16 sps:$4 sm:$0xff]   ;;  %v7443_v35 = vld [vmem:[#allocation11 + $0x748] ss:$16 sps:$4 sm:$0xff]  }
 0x36c   :  { %5859 = vmatprep.subr.bf16.mxu1 %v7385_v59  ;;  %v7448_v59 = vld [vmem:[#allocation11 + $0x764] ss:$16 sps:$4 sm:$0xff]  }
 0x36d   :  { %5523 = vmatmul.mubr.bf16.vlgmr.msra.gmra.mrb[24].mxu0 %v2324_v1 }
 0x36e   :  { %5851 = vmatmul.mubr.bf16.vlgmr.msra.gmra.mrb[24].mxu1 %v2324_v1  ;;  %5532 = vmatpush1.bf16.msra.mxu0 %v7380_v21  ;;  %v7446_v21 = vld [vmem:[#allocation11 + $0x760] ss:$16 sps:$4 sm:$0xff]   ;;  %v7449_v1 = vld [vmem:[#allocation11 + $0x768] ss:$16 sps:$4 sm:$0xff]  }
 0x36f   :  { %5563 = vmatprep.mubr.bf16.mxu0 %v2327_v16  ;;  %5860 = vmatpush1.bf16.msra.mxu1 %v7383_v29  ;;  %v7454_v29 = vld [vmem:[#allocation11 + $0x784] ss:$16 sps:$4 sm:$0xff]  }
 0x370   :  { %5891 = vmatprep.mubr.bf16.mxu1 %v2327_v16  ;;  %5533 = vmatprep.subr.bf16.mxu0 %v7388_v42  ;;  %v7457_v42 = vld [vmem:[#allocation11 + $0x78c] ss:$16 sps:$4 sm:$0xff]   ;;  %v7452_v16 = vld [vmem:[#allocation11 + $0x780] ss:$16 sps:$4 sm:$0xff]  }
 0x371   :  { %5861 = vmatprep.subr.bf16.mxu1 %v7391_v45  ;;  %v7455_v45 = vld [vmem:[#allocation11 + $0x788] ss:$16 sps:$4 sm:$0xff]  }
 0x372   :  { %5534 = vmatpush1.bf16.msra.mxu0 %v7386_v62  ;;  %v7460_v62 = vld [vmem:[#allocation11 + $0x7a4] ss:$16 sps:$4 sm:$0xff]  }
 0x373   :  { %5862 = vmatpush1.bf16.msra.mxu1 %v7389_v43  ;;  %5535 = vmatprep.subr.bf16.mxu0 %v7394_v58  ;;  %v7463_v43 = vld [vmem:[#allocation11 + $0x7ac] ss:$16 sps:$4 sm:$0xff]   ;;  %v7458_v58 = vld [vmem:[#allocation11 + $0x7a0] ss:$16 sps:$4 sm:$0xff]  }
 0x374   :  { %5863 = vmatprep.subr.bf16.mxu1 %v7397_v27  ;;  %v7461_v27 = vld [vmem:[#allocation11 + $0x7a8] ss:$16 sps:$4 sm:$0xff]  }
 0x376   :  { %5536 = vmatpush1.bf16.msra.mxu0 %v7392_v60  ;;  %v7466_v60 = vld [vmem:[#allocation11 + $0x7c4] ss:$16 sps:$4 sm:$0xff]  }
 0x377   :  { %5864 = vmatpush1.bf16.msra.mxu1 %v7395_v30  ;;  %5537 = vmatprep.subr.bf16.mxu0 %v7400_v46  ;;  %v7469_v30 = vld [vmem:[#allocation11 + $0x7cc] ss:$16 sps:$4 sm:$0xff]   ;;  %v7464_v46 = vld [vmem:[#allocation11 + $0x7c0] ss:$16 sps:$4 sm:$0xff]  }
 0x378   :  { %5865 = vmatprep.subr.bf16.mxu1 %v7403_v61  ;;  %v7467_v61 = vld [vmem:[#allocation11 + $0x7c8] ss:$16 sps:$4 sm:$0xff]  }
 0x37a   :  { %5538 = vmatpush1.bf16.msra.mxu0 %v7398_v12  ;;  %v7472_v12 = vld [vmem:[#allocation11 + $0x7e4] ss:$16 sps:$4 sm:$0xff]  }
 0x37b   :  { %5866 = vmatpush1.bf16.msra.mxu1 %v7401_v6  ;;  %5539 = vmatprep.subr.bf16.mxu0 %v7406_v20  ;;  %v2290_v6 = vmul.f32 0.01, %v8875_v38  ;;  %v7475_v20 = vld [vmem:[#allocation11 + $0x7ec] ss:$16 sps:$4 sm:$0xff]  }
 0x37c   :  { %5867 = vmatprep.subr.bf16.mxu1 %v7409_v51  ;;  %v2293_v51 = vmul.f32 0.01, %v8885_v31 }
 0x37e   :  { %5540 = vmatpush1.bf16.msra.mxu0 %v7404_v14  ;;  %v7470_v14 = vld [vmem:[#allocation11 + $0x7e0] ss:$16 sps:$4 sm:$0xff]  }
 0x37f   :  { %5868 = vmatpush1.bf16.msra.mxu1 %v7407_v26  ;;  %5541 = vmatprep.subr.bf16.mxu0 %v7412_v52  ;;  %v7473_v26 = vld [vmem:[#allocation11 + $0x7e8] ss:$16 sps:$4 sm:$0xff]   ;;  %v2310_v52 = vmax.f32 %v8875_v38, %v2290_v6 }
 0x380   :  { %5869 = vmatprep.subr.bf16.mxu1 %v7415_v8  ;;  %v7478_v8 = vld [vmem:[#allocation11 + $0x804] ss:$16 sps:$4 sm:$0xff]   ;;  %v7485_v38 = vld [vmem:[#allocation11 + $0x828] ss:$16 sps:$4 sm:$0xff]  }
 0x381   :  { %v7533_v6 = vld [vmem:[#allocation11 + $0x928] ss:$16 sps:$4 sm:$0xff]  }
 0x382   :  { %5542 = vmatpush1.bf16.msra.mxu0 %v7410_v25  ;;  %v7481_v25 = vld [vmem:[#allocation11 + $0x80c] ss:$16 sps:$4 sm:$0xff]  }
 0x383   :  { %5870 = vmatpush1.bf16.msra.mxu1 %v7413_v48  ;;  %5543 = vmatprep.subr.bf16.mxu0 %v7418_v39  ;;  %v2313_v48 = vmax.f32 %v8885_v31, %v2293_v51  ;;  %v7476_v39 = vld [vmem:[#allocation11 + $0x800] ss:$16 sps:$4 sm:$0xff]   ;;  %v7493_v31 = vld [vmem:[#allocation11 + $0x84c] ss:$16 sps:$4 sm:$0xff]  }
 0x384   :  { %5871 = vmatprep.subr.bf16.mxu1 %v7421_v41  ;;  %v2326_v41 = vpack.c.bf16 %v2310_v52, %v2310_v52  ;;  %v7541_v51 = vld [vmem:[#allocation11 + $0x94c] ss:$16 sps:$4 sm:$0xff]   ;;  %v7544_v52 = vld [vmem:[#allocation11 + $0x964] ss:$16 sps:$4 sm:$0xff]  }
 0x386   :  { %5544 = vmatpush1.bf16.msra.mxu0 %v7416_v0  ;;  %v7479_v0 = vld [vmem:[#allocation11 + $0x808] ss:$16 sps:$4 sm:$0xff]  }
 0x387   :  { %5872 = vmatpush1.bf16.msra.mxu1 %v7419_v23  ;;  %5545 = vmatprep.subr.bf16.mxu0 %v7424_v56  ;;  %v7484_v23 = vld [vmem:[#allocation11 + $0x824] ss:$16 sps:$4 sm:$0xff]   ;;  %v2329_v56 = vpack.c.bf16 %v2313_v48, %v2313_v48  ;;  %v7545_v48 = vld [vmem:[#allocation11 + $0x968] ss:$16 sps:$4 sm:$0xff]  }
 0x388   :  { %5873 = vmatprep.subr.bf16.mxu1 %v7427_v2  ;;  %v7487_v2 = vld [vmem:[#allocation11 + $0x82c] ss:$16 sps:$4 sm:$0xff]  }
 0x38a   :  { %5546 = vmatpush1.bf16.msra.mxu0 %v7422_v3  ;;  %v7482_v3 = vld [vmem:[#allocation11 + $0x820] ss:$16 sps:$4 sm:$0xff]  }
 0x38b   :  { %5874 = vmatpush1.bf16.msra.mxu1 %v7425_v22  ;;  %5547 = vmatprep.subr.bf16.mxu0 %v7430_v36  ;;  %v7490_v22 = vld [vmem:[#allocation11 + $0x844] ss:$16 sps:$4 sm:$0xff]   ;;  %v7488_v36 = vld [vmem:[#allocation11 + $0x840] ss:$16 sps:$4 sm:$0xff]  }
 0x38c   :  { %5875 = vmatprep.subr.bf16.mxu1 %v7433_v19  ;;  %v7491_v19 = vld [vmem:[#allocation11 + $0x848] ss:$16 sps:$4 sm:$0xff]  }
 0x38e   :  { %5548 = vmatpush1.bf16.msra.mxu0 %v7428_v10  ;;  %v7496_v10 = vld [vmem:[#allocation11 + $0x864] ss:$16 sps:$4 sm:$0xff]  }
 0x38f   :  { %5876 = vmatpush1.bf16.msra.mxu1 %v7431_v4  ;;  %5549 = vmatprep.subr.bf16.mxu0 %v7436_v55  ;;  %v7499_v4 = vld [vmem:[#allocation11 + $0x86c] ss:$16 sps:$4 sm:$0xff]   ;;  %v7494_v55 = vld [vmem:[#allocation11 + $0x860] ss:$16 sps:$4 sm:$0xff]  }
 0x390   :  { %5877 = vmatprep.subr.bf16.mxu1 %v7439_v5  ;;  %v7497_v5 = vld [vmem:[#allocation11 + $0x868] ss:$16 sps:$4 sm:$0xff]  }
 0x392   :  { %5550 = vmatpush1.bf16.msra.mxu0 %v7434_v50  ;;  %v7502_v50 = vld [vmem:[#allocation11 + $0x884] ss:$16 sps:$4 sm:$0xff]  }
 0x393   :  { %5878 = vmatpush1.bf16.msra.mxu1 %v7437_v53  ;;  %5551 = vmatprep.subr.bf16.mxu0 %v7442_v9  ;;  %v7505_v53 = vld [vmem:[#allocation11 + $0x88c] ss:$16 sps:$4 sm:$0xff]   ;;  %v7500_v9 = vld [vmem:[#allocation11 + $0x880] ss:$16 sps:$4 sm:$0xff]  }
 0x394   :  { %5879 = vmatprep.subr.bf16.mxu1 %v7445_v24  ;;  %v7503_v24 = vld [vmem:[#allocation11 + $0x888] ss:$16 sps:$4 sm:$0xff]  }
 0x396   :  { %5552 = vmatpush1.bf16.msra.mxu0 %v7440_v63  ;;  %v7508_v63 = vld [vmem:[#allocation11 + $0x8a4] ss:$16 sps:$4 sm:$0xff]  }
 0x397   :  { %5880 = vmatpush1.bf16.msra.mxu1 %v7443_v35  ;;  %5553 = vmatprep.subr.bf16.mxu0 %v7448_v59  ;;  %v7511_v35 = vld [vmem:[#allocation11 + $0x8ac] ss:$16 sps:$4 sm:$0xff]   ;;  %v7506_v59 = vld [vmem:[#allocation11 + $0x8a0] ss:$16 sps:$4 sm:$0xff]  }
 0x398   :  { %5881 = vmatprep.subr.bf16.mxu1 %v7451_v17  ;;  %v7509_v17 = vld [vmem:[#allocation11 + $0x8a8] ss:$16 sps:$4 sm:$0xff]  }
 0x39a   :  { %5554 = vmatpush1.bf16.msra.mxu0 %v7446_v21  ;;  %v7514_v21 = vld [vmem:[#allocation11 + $0x8c4] ss:$16 sps:$4 sm:$0xff]  }
 0x39b   :  { %5882 = vmatpush1.bf16.msra.mxu1 %v7449_v1  ;;  %5555 = vmatprep.subr.bf16.mxu0 %v7454_v29  ;;  %v7517_v1 = vld [vmem:[#allocation11 + $0x8cc] ss:$16 sps:$4 sm:$0xff]   ;;  %v7512_v29 = vld [vmem:[#allocation11 + $0x8c0] ss:$16 sps:$4 sm:$0xff]  }
 0x39c   :  { %5883 = vmatprep.subr.bf16.mxu1 %v7457_v42  ;;  %v7515_v42 = vld [vmem:[#allocation11 + $0x8c8] ss:$16 sps:$4 sm:$0xff]  }
 0x39e   :  { %5556 = vmatpush1.bf16.msra.mxu0 %v7452_v16  ;;  %v7520_v16 = vld [vmem:[#allocation11 + $0x8e4] ss:$16 sps:$4 sm:$0xff]  }
 0x39f   :  { %5884 = vmatpush1.bf16.msra.mxu1 %v7455_v45  ;;  %5557 = vmatprep.subr.bf16.mxu0 %v7460_v62  ;;  %v7523_v45 = vld [vmem:[#allocation11 + $0x8ec] ss:$16 sps:$4 sm:$0xff]   ;;  %v7518_v62 = vld [vmem:[#allocation11 + $0x8e0] ss:$16 sps:$4 sm:$0xff]  }
 0x3a0   :  { %5885 = vmatprep.subr.bf16.mxu1 %v7463_v43  ;;  %v7521_v43 = vld [vmem:[#allocation11 + $0x8e8] ss:$16 sps:$4 sm:$0xff]  }
 0x3a2   :  { %5558 = vmatpush1.bf16.msra.mxu0 %v7458_v58  ;;  %v7526_v58 = vld [vmem:[#allocation11 + $0x904] ss:$16 sps:$4 sm:$0xff]  }
 0x3a3   :  { %5886 = vmatpush1.bf16.msra.mxu1 %v7461_v27  ;;  %5559 = vmatprep.subr.bf16.mxu0 %v7466_v60  ;;  %v7529_v27 = vld [vmem:[#allocation11 + $0x90c] ss:$16 sps:$4 sm:$0xff]   ;;  %v7524_v60 = vld [vmem:[#allocation11 + $0x900] ss:$16 sps:$4 sm:$0xff]  }
 0x3a4   :  { %5887 = vmatprep.subr.bf16.mxu1 %v7469_v30  ;;  %v7527_v30 = vld [vmem:[#allocation11 + $0x908] ss:$16 sps:$4 sm:$0xff]  }
 0x3a6   :  { %5560 = vmatpush1.bf16.msra.mxu0 %v7464_v46  ;;  %v7532_v46 = vld [vmem:[#allocation11 + $0x924] ss:$16 sps:$4 sm:$0xff]  }
 0x3a7   :  { %5888 = vmatpush1.bf16.msra.mxu1 %v7467_v61  ;;  %5561 = vmatprep.subr.bf16.mxu0 %v7472_v12  ;;  %v7535_v61 = vld [vmem:[#allocation11 + $0x92c] ss:$16 sps:$4 sm:$0xff]   ;;  %v7530_v12 = vld [vmem:[#allocation11 + $0x920] ss:$16 sps:$4 sm:$0xff]  }
 0x3a8   :  { %5889 = vmatprep.subr.bf16.mxu1 %v7475_v20  ;;  %v7538_v20 = vld [vmem:[#allocation11 + $0x944] ss:$16 sps:$4 sm:$0xff]  }
 0x3aa   :  { %5562 = vmatpush1.bf16.msra.mxu0 %v7470_v14  ;;  %v7536_v14 = vld [vmem:[#allocation11 + $0x940] ss:$16 sps:$4 sm:$0xff]  }
 0x3ab   :  { %5890 = vmatpush1.bf16.msra.mxu1 %v7473_v26  ;;  %5572 = vmatprep.subr.bf16.mxu0 %v7478_v8  ;;  %v7539_v26 = vld [vmem:[#allocation11 + $0x948] ss:$16 sps:$4 sm:$0xff]   ;;  %v7547_v8 = vld [vmem:[#allocation11 + $0x96c] ss:$16 sps:$4 sm:$0xff]  }
 0x3ac   :  { %5900 = vmatprep.subr.bf16.mxu1 %v7481_v25  ;;  %v7542_v25 = vld [vmem:[#allocation11 + $0x960] ss:$16 sps:$4 sm:$0xff]  }
 0x3ad   :  { %5564 = vmatmul.mubr.bf16.vlgmr.msra.gmra.mrb[24].mxu0 %v2326_v41 }
 0x3ae   :  { %5892 = vmatmul.mubr.bf16.vlgmr.msra.gmra.mrb[24].mxu1 %v2326_v41  ;;  %5573 = vmatpush1.bf16.msra.mxu0 %v7476_v39  ;;  %v7550_v39 = vld [vmem:[#allocation11 + $0x984] ss:$16 sps:$4 sm:$0xff]   ;;  %v7553_v41 = vld [vmem:[#allocation11 + $0x98c] ss:$16 sps:$4 sm:$0xff]  }
 0x3af   :  { %5604 = vmatprep.mubr.bf16.mxu0 %v2329_v56  ;;  %5901 = vmatpush1.bf16.msra.mxu1 %v7479_v0  ;;  %v7548_v0 = vld [vmem:[#allocation11 + $0x980] ss:$16 sps:$4 sm:$0xff]  }
 0x3b0   :  { %5932 = vmatprep.mubr.bf16.mxu1 %v2329_v56  ;;  %5574 = vmatprep.subr.bf16.mxu0 %v7484_v23  ;;  %v7551_v23 = vld [vmem:[#allocation11 + $0x988] ss:$16 sps:$4 sm:$0xff]   ;;  %v7556_v56 = vld [vmem:[#allocation11 + $0x9a4] ss:$16 sps:$4 sm:$0xff]  }
 0x3b1   :  { %5902 = vmatprep.subr.bf16.mxu1 %v7487_v2  ;;  %v7559_v2 = vld [vmem:[#allocation11 + $0x9ac] ss:$16 sps:$4 sm:$0xff]  }
 0x3b2   :  { %5575 = vmatpush1.bf16.msra.mxu0 %v7482_v3  ;;  %v7554_v3 = vld [vmem:[#allocation11 + $0x9a0] ss:$16 sps:$4 sm:$0xff]  }
 0x3b3   :  { %5903 = vmatpush1.bf16.msra.mxu1 %v7485_v38  ;;  %5576 = vmatprep.subr.bf16.mxu0 %v7490_v22  ;;  %v7557_v38 = vld [vmem:[#allocation11 + $0x9a8] ss:$16 sps:$4 sm:$0xff]   ;;  %v7562_v22 = vld [vmem:[#allocation11 + $0x9c4] ss:$16 sps:$4 sm:$0xff]  }
 0x3b4   :  { %5904 = vmatprep.subr.bf16.mxu1 %v7493_v31  ;;  %v7565_v31 = vld [vmem:[#allocation11 + $0x9cc] ss:$16 sps:$4 sm:$0xff]  }
 0x3b6   :  { %5577 = vmatpush1.bf16.msra.mxu0 %v7488_v36  ;;  %v7560_v36 = vld [vmem:[#allocation11 + $0x9c0] ss:$16 sps:$4 sm:$0xff]  }
 0x3b7   :  { %5905 = vmatpush1.bf16.msra.mxu1 %v7491_v19  ;;  %5578 = vmatprep.subr.bf16.mxu0 %v7496_v10  ;;  %v7563_v19 = vld [vmem:[#allocation11 + $0x9c8] ss:$16 sps:$4 sm:$0xff]   ;;  %v7568_v10 = vld [vmem:[#allocation11 + $0x9e4] ss:$16 sps:$4 sm:$0xff]  }
 0x3b8   :  { %5906 = vmatprep.subr.bf16.mxu1 %v7499_v4  ;;  %v2292_v4 = vmul.f32 0.01, %v8890_v32 }
 0x3ba   :  { %5579 = vmatpush1.bf16.msra.mxu0 %v7494_v55  ;;  %v7571_v55 = vld [vmem:[#allocation11 + $0x9ec] ss:$16 sps:$4 sm:$0xff]  }
 0x3bb   :  { %5907 = vmatpush1.bf16.msra.mxu1 %v7497_v5  ;;  %5580 = vmatprep.subr.bf16.mxu0 %v7502_v50  ;;  %v2295_v5 = vmul.f32 0.01, %v8880_v57  ;;  %v7566_v50 = vld [vmem:[#allocation11 + $0x9e0] ss:$16 sps:$4 sm:$0xff]  }
 0x3bc   :  { %5908 = vmatprep.subr.bf16.mxu1 %v7505_v53  ;;  %v7569_v53 = vld [vmem:[#allocation11 + $0x9e8] ss:$16 sps:$4 sm:$0xff]  }
 0x3be   :  { %5581 = vmatpush1.bf16.msra.mxu0 %v7500_v9  ;;  %v2312_v9 = vmax.f32 %v8890_v32, %v2292_v4  ;;  %v7581_v32 = vld [vmem:[#allocation11 + $0xa28] ss:$16 sps:$4 sm:$0xff]   ;;  %v7637_v4 = vld [vmem:[#allocation11 + $0xb4c] ss:$16 sps:$4 sm:$0xff]  }
 0x3bf   :  { %5909 = vmatpush1.bf16.msra.mxu1 %v7503_v24  ;;  %5582 = vmatprep.subr.bf16.mxu0 %v7508_v63  ;;  %v7574_v24 = vld [vmem:[#allocation11 + $0xa04] ss:$16 sps:$4 sm:$0xff]   ;;  %v7577_v63 = vld [vmem:[#allocation11 + $0xa0c] ss:$16 sps:$4 sm:$0xff]  }
 0x3c0   :  { %5910 = vmatprep.subr.bf16.mxu1 %v7511_v35  ;;  %v2315_v35 = vmax.f32 %v8880_v57, %v2295_v5  ;;  %v7589_v57 = vld [vmem:[#allocation11 + $0xa4c] ss:$16 sps:$4 sm:$0xff]   ;;  %v7635_v5 = vld [vmem:[#allocation11 + $0xb48] ss:$16 sps:$4 sm:$0xff]  }
 0x3c2   :  { %5583 = vmatpush1.bf16.msra.mxu0 %v7506_v59  ;;  %v7572_v59 = vld [vmem:[#allocation11 + $0xa00] ss:$16 sps:$4 sm:$0xff]  }
 0x3c3   :  { %5911 = vmatpush1.bf16.msra.mxu1 %v7509_v17  ;;  %5584 = vmatprep.subr.bf16.mxu0 %v7514_v21  ;;  %v2328_v17 = vpack.c.bf16 %v2312_v9, %v2312_v9  ;;  %v7575_v21 = vld [vmem:[#allocation11 + $0xa08] ss:$16 sps:$4 sm:$0xff]   ;;  %v7638_v9 = vld [vmem:[#allocation11 + $0xb60] ss:$16 sps:$4 sm:$0xff]  }
 0x3c4   :  { %5912 = vmatprep.subr.bf16.mxu1 %v7517_v1  ;;  %v7580_v1 = vld [vmem:[#allocation11 + $0xa24] ss:$16 sps:$4 sm:$0xff]  }
 0x3c6   :  { %5585 = vmatpush1.bf16.msra.mxu0 %v7512_v29  ;;  %v2331_v29 = vpack.c.bf16 %v2315_v35, %v2315_v35  ;;  %v7649_v35 = vld [vmem:[#allocation11 + $0xb8c] ss:$16 sps:$4 sm:$0xff]  }
 0x3c7   :  { %5913 = vmatpush1.bf16.msra.mxu1 %v7515_v42  ;;  %5586 = vmatprep.subr.bf16.mxu0 %v7520_v16  ;;  %v7583_v42 = vld [vmem:[#allocation11 + $0xa2c] ss:$16 sps:$4 sm:$0xff]   ;;  %v7578_v16 = vld [vmem:[#allocation11 + $0xa20] ss:$16 sps:$4 sm:$0xff]  }
 0x3c8   :  { %5914 = vmatprep.subr.bf16.mxu1 %v7523_v45  ;;  %v7586_v45 = vld [vmem:[#allocation11 + $0xa44] ss:$16 sps:$4 sm:$0xff]  }
 0x3ca   :  { %5587 = vmatpush1.bf16.msra.mxu0 %v7518_v62  ;;  %v7584_v62 = vld [vmem:[#allocation11 + $0xa40] ss:$16 sps:$4 sm:$0xff]  }
 0x3cb   :  { %5915 = vmatpush1.bf16.msra.mxu1 %v7521_v43  ;;  %5588 = vmatprep.subr.bf16.mxu0 %v7526_v58  ;;  %v7587_v43 = vld [vmem:[#allocation11 + $0xa48] ss:$16 sps:$4 sm:$0xff]   ;;  %v7592_v58 = vld [vmem:[#allocation11 + $0xa64] ss:$16 sps:$4 sm:$0xff]  }
 0x3cc   :  { %5916 = vmatprep.subr.bf16.mxu1 %v7529_v27  ;;  %v7595_v27 = vld [vmem:[#allocation11 + $0xa6c] ss:$16 sps:$4 sm:$0xff]  }
 0x3ce   :  { %5589 = vmatpush1.bf16.msra.mxu0 %v7524_v60  ;;  %v7590_v60 = vld [vmem:[#allocation11 + $0xa60] ss:$16 sps:$4 sm:$0xff]  }
 0x3cf   :  { %5917 = vmatpush1.bf16.msra.mxu1 %v7527_v30  ;;  %5590 = vmatprep.subr.bf16.mxu0 %v7532_v46  ;;  %v7593_v30 = vld [vmem:[#allocation11 + $0xa68] ss:$16 sps:$4 sm:$0xff]   ;;  %v7598_v46 = vld [vmem:[#allocation11 + $0xa84] ss:$16 sps:$4 sm:$0xff]  }
 0x3d0   :  { %5918 = vmatprep.subr.bf16.mxu1 %v7535_v61  ;;  %v7601_v61 = vld [vmem:[#allocation11 + $0xa8c] ss:$16 sps:$4 sm:$0xff]  }
 0x3d2   :  { %5591 = vmatpush1.bf16.msra.mxu0 %v7530_v12  ;;  %v7596_v12 = vld [vmem:[#allocation11 + $0xa80] ss:$16 sps:$4 sm:$0xff]  }
 0x3d3   :  { %5919 = vmatpush1.bf16.msra.mxu1 %v7533_v6  ;;  %5592 = vmatprep.subr.bf16.mxu0 %v7538_v20  ;;  %v7599_v6 = vld [vmem:[#allocation11 + $0xa88] ss:$16 sps:$4 sm:$0xff]   ;;  %v7604_v20 = vld [vmem:[#allocation11 + $0xaa4] ss:$16 sps:$4 sm:$0xff]  }
 0x3d4   :  { %5920 = vmatprep.subr.bf16.mxu1 %v7541_v51  ;;  %v7607_v51 = vld [vmem:[#allocation11 + $0xaac] ss:$16 sps:$4 sm:$0xff]  }
 0x3d6   :  { %5593 = vmatpush1.bf16.msra.mxu0 %v7536_v14  ;;  %v7602_v14 = vld [vmem:[#allocation11 + $0xaa0] ss:$16 sps:$4 sm:$0xff]  }
 0x3d7   :  { %5921 = vmatpush1.bf16.msra.mxu1 %v7539_v26  ;;  %5594 = vmatprep.subr.bf16.mxu0 %v7544_v52  ;;  %v7605_v26 = vld [vmem:[#allocation11 + $0xaa8] ss:$16 sps:$4 sm:$0xff]   ;;  %v7610_v52 = vld [vmem:[#allocation11 + $0xac4] ss:$16 sps:$4 sm:$0xff]  }
 0x3d8   :  { %5922 = vmatprep.subr.bf16.mxu1 %v7547_v8  ;;  %v7613_v8 = vld [vmem:[#allocation11 + $0xacc] ss:$16 sps:$4 sm:$0xff]  }
 0x3da   :  { %5595 = vmatpush1.bf16.msra.mxu0 %v7542_v25  ;;  %v7608_v25 = vld [vmem:[#allocation11 + $0xac0] ss:$16 sps:$4 sm:$0xff]  }
 0x3db   :  { %5923 = vmatpush1.bf16.msra.mxu1 %v7545_v48  ;;  %5596 = vmatprep.subr.bf16.mxu0 %v7550_v39  ;;  %v7611_v48 = vld [vmem:[#allocation11 + $0xac8] ss:$16 sps:$4 sm:$0xff]   ;;  %v7616_v39 = vld [vmem:[#allocation11 + $0xae4] ss:$16 sps:$4 sm:$0xff]  }
 0x3dc   :  { %5924 = vmatprep.subr.bf16.mxu1 %v7553_v41  ;;  %v7619_v41 = vld [vmem:[#allocation11 + $0xaec] ss:$16 sps:$4 sm:$0xff]  }
 0x3de   :  { %5597 = vmatpush1.bf16.msra.mxu0 %v7548_v0  ;;  %v7614_v0 = vld [vmem:[#allocation11 + $0xae0] ss:$16 sps:$4 sm:$0xff]  }
 0x3df   :  { %5925 = vmatpush1.bf16.msra.mxu1 %v7551_v23  ;;  %5598 = vmatprep.subr.bf16.mxu0 %v7556_v56  ;;  %v7617_v23 = vld [vmem:[#allocation11 + $0xae8] ss:$16 sps:$4 sm:$0xff]   ;;  %v7622_v56 = vld [vmem:[#allocation11 + $0xb04] ss:$16 sps:$4 sm:$0xff]  }
 0x3e0   :  { %5926 = vmatprep.subr.bf16.mxu1 %v7559_v2  ;;  %v7625_v2 = vld [vmem:[#allocation11 + $0xb0c] ss:$16 sps:$4 sm:$0xff]  }
 0x3e2   :  { %5599 = vmatpush1.bf16.msra.mxu0 %v7554_v3  ;;  %v7620_v3 = vld [vmem:[#allocation11 + $0xb00] ss:$16 sps:$4 sm:$0xff]  }
 0x3e3   :  { %5927 = vmatpush1.bf16.msra.mxu1 %v7557_v38  ;;  %5600 = vmatprep.subr.bf16.mxu0 %v7562_v22  ;;  %v7623_v38 = vld [vmem:[#allocation11 + $0xb08] ss:$16 sps:$4 sm:$0xff]   ;;  %v7628_v22 = vld [vmem:[#allocation11 + $0xb24] ss:$16 sps:$4 sm:$0xff]  }
 0x3e4   :  { %5928 = vmatprep.subr.bf16.mxu1 %v7565_v31  ;;  %v7631_v31 = vld [vmem:[#allocation11 + $0xb2c] ss:$16 sps:$4 sm:$0xff]  }
 0x3e6   :  { %5601 = vmatpush1.bf16.msra.mxu0 %v7560_v36  ;;  %v7626_v36 = vld [vmem:[#allocation11 + $0xb20] ss:$16 sps:$4 sm:$0xff]  }
 0x3e7   :  { %5929 = vmatpush1.bf16.msra.mxu1 %v7563_v19  ;;  %5602 = vmatprep.subr.bf16.mxu0 %v7568_v10  ;;  %v7629_v19 = vld [vmem:[#allocation11 + $0xb28] ss:$16 sps:$4 sm:$0xff]   ;;  %v7634_v10 = vld [vmem:[#allocation11 + $0xb44] ss:$16 sps:$4 sm:$0xff]  }
 0x3e8   :  { %5930 = vmatprep.subr.bf16.mxu1 %v7571_v55  ;;  %v7632_v55 = vld [vmem:[#allocation11 + $0xb40] ss:$16 sps:$4 sm:$0xff]  }
 0x3ea   :  { %5603 = vmatpush1.bf16.msra.mxu0 %v7566_v50  ;;  %v7640_v50 = vld [vmem:[#allocation11 + $0xb64] ss:$16 sps:$4 sm:$0xff]  }
 0x3eb   :  { %5931 = vmatpush1.bf16.msra.mxu1 %v7569_v53  ;;  %5613 = vmatprep.subr.bf16.mxu0 %v7574_v24  ;;  %v7643_v53 = vld [vmem:[#allocation11 + $0xb6c] ss:$16 sps:$4 sm:$0xff]   ;;  %v7641_v24 = vld [vmem:[#allocation11 + $0xb68] ss:$16 sps:$4 sm:$0xff]  }
 0x3ec   :  { %5941 = vmatprep.subr.bf16.mxu1 %v7577_v63  ;;  %v7646_v63 = vld [vmem:[#allocation11 + $0xb84] ss:$16 sps:$4 sm:$0xff]  }
 0x3ed   :  { %5605 = vmatmul.mubr.bf16.vlgmr.msra.gmra.mrb[24].mxu0 %v2328_v17 }
 0x3ee   :  { %5933 = vmatmul.mubr.bf16.vlgmr.msra.gmra.mrb[24].mxu1 %v2328_v17  ;;  %5614 = vmatpush1.bf16.msra.mxu0 %v7572_v59  ;;  %v7644_v59 = vld [vmem:[#allocation11 + $0xb80] ss:$16 sps:$4 sm:$0xff]   ;;  %v7647_v17 = vld [vmem:[#allocation11 + $0xb88] ss:$16 sps:$4 sm:$0xff]  }
 0x3ef   :  { %5645 = vmatprep.mubr.bf16.mxu0 %v2331_v29  ;;  %5942 = vmatpush1.bf16.msra.mxu1 %v7575_v21  ;;  %v7652_v21 = vld [vmem:[#allocation11 + $0xba4] ss:$16 sps:$4 sm:$0xff]  }
 0x3f0   :  { %5973 = vmatprep.mubr.bf16.mxu1 %v2331_v29  ;;  %5615 = vmatprep.subr.bf16.mxu0 %v7580_v1  ;;  %v7655_v1 = vld [vmem:[#allocation11 + $0xbac] ss:$16 sps:$4 sm:$0xff]  }
 0x3f1   :  { %5943 = vmatprep.subr.bf16.mxu1 %v7583_v42  ;;  %v8944_v29 = vld [vmem:[#allocation10 + $0x10] sm:$0xf] }
 0x3f2   :  { %5616 = vmatpush1.bf16.msra.mxu0 %v7578_v16  ;;  %v2231_v42 = vrot.slane %v8944_v29, %v8765_v15  ;;  %v7650_v16 = vld [vmem:[#allocation11 + $0xba0] ss:$16 sps:$4 sm:$0xff]  }
 0x3f3   :  { %5944 = vmatpush1.bf16.msra.mxu1 %v7581_v32  ;;  %5617 = vmatprep.subr.bf16.mxu0 %v7586_v45  ;;  %v7653_v32 = vld [vmem:[#allocation11 + $0xba8] ss:$16 sps:$4 sm:$0xff]   ;;  %v7658_v45 = vld [vmem:[#allocation11 + $0xbc4] ss:$16 sps:$4 sm:$0xff]  }
 0x3f4   :  { %5945 = vmatprep.subr.bf16.mxu1 %v7589_v57  ;;  %v7661_v57 = vld [vmem:[#allocation11 + $0xbcc] ss:$16 sps:$4 sm:$0xff]  }
 0x3f6   :  { %5618 = vmatpush1.bf16.msra.mxu0 %v7584_v62  ;;  %v2277_v62 = vadd.f32 %v2231_v42, %v8912_v47  ;;  %v7673_v47 = vld [vmem:[#allocation11 + $0xc0c] ss:$16 sps:$4 sm:$0xff]  }
 0x3f7   :  { %5946 = vmatpush1.bf16.msra.mxu1 %v7587_v43  ;;  %5619 = vmatprep.subr.bf16.mxu0 %v7592_v58  ;;  %v7656_v43 = vld [vmem:[#allocation11 + $0xbc0] ss:$16 sps:$4 sm:$0xff]   ;;  %v7659_v58 = vld [vmem:[#allocation11 + $0xbc8] ss:$16 sps:$4 sm:$0xff]   ;;  %v7721_v42 = vld [vmem:[#allocation11 + $0xd0c] ss:$16 sps:$4 sm:$0xff]  }
 0x3f8   :  { %5947 = vmatprep.subr.bf16.mxu1 %v7595_v27  ;;  %v7664_v27 = vld [vmem:[#allocation11 + $0xbe4] ss:$16 sps:$4 sm:$0xff]  }
 0x3fa   :  { %5620 = vmatpush1.bf16.msra.mxu0 %v7590_v60  ;;  %v2294_v60 = vmul.f32 0.01, %v8901_v54 }
 0x3fb   :  { %5948 = vmatpush1.bf16.msra.mxu1 %v7593_v30  ;;  %5621 = vmatprep.subr.bf16.mxu0 %v7598_v46  ;;  %v7667_v30 = vld [vmem:[#allocation11 + $0xbec] ss:$16 sps:$4 sm:$0xff]   ;;  %v2297_v46 = vmul.f32 0.01, %v2277_v62 }
 0x3fc   :  { %5949 = vmatprep.subr.bf16.mxu1 %v7601_v61  ;;  %v7662_v61 = vld [vmem:[#allocation11 + $0xbe0] ss:$16 sps:$4 sm:$0xff]  }
 0x3fe   :  { %5622 = vmatpush1.bf16.msra.mxu0 %v7596_v12  ;;  %v7665_v12 = vld [vmem:[#allocation11 + $0xbe8] ss:$16 sps:$4 sm:$0xff]  }
 0x3ff   :  { %5950 = vmatpush1.bf16.msra.mxu1 %v7599_v6  ;;  %5623 = vmatprep.subr.bf16.mxu0 %v7604_v20  ;;  %v2314_v6 = vmax.f32 %v8901_v54, %v2294_v60  ;;  %v7670_v20 = vld [vmem:[#allocation11 + $0xc04] ss:$16 sps:$4 sm:$0xff]   ;;  %v7677_v54 = vld [vmem:[#allocation11 + $0xc28] ss:$16 sps:$4 sm:$0xff]   ;;  %v7728_v60 = vld [vmem:[#allocation11 + $0xd40] ss:$16 sps:$4 sm:$0xff]  }
 0x400   :  { %5951 = vmatprep.subr.bf16.mxu1 %v7607_v51  ;;  %v2317_v51 = vmax.f32 %v2277_v62, %v2297_v46  ;;  %v7722_v62 = vld [vmem:[#allocation11 + $0xd20] ss:$16 sps:$4 sm:$0xff]   ;;  %v7736_v46 = vld [vmem:[#allocation11 + $0xd64] ss:$16 sps:$4 sm:$0xff]  }
 0x402   :  { %5624 = vmatpush1.bf16.msra.mxu0 %v7602_v14  ;;  %v7668_v14 = vld [vmem:[#allocation11 + $0xc00] ss:$16 sps:$4 sm:$0xff]  }
 0x403   :  { %5952 = vmatpush1.bf16.msra.mxu1 %v7605_v26  ;;  %5625 = vmatprep.subr.bf16.mxu0 %v7610_v52  ;;  %v2330_v26 = vpack.c.bf16 %v2314_v6, %v2314_v6  ;;  %v7671_v52 = vld [vmem:[#allocation11 + $0xc08] ss:$16 sps:$4 sm:$0xff]  }
 0x404   :  { %5953 = vmatprep.subr.bf16.mxu1 %v7613_v8  ;;  %v7676_v8 = vld [vmem:[#allocation11 + $0xc24] ss:$16 sps:$4 sm:$0xff]   ;;  %v7737_v6 = vld [vmem:[#allocation11 + $0xd68] ss:$16 sps:$4 sm:$0xff]  }
 0x406   :  { %5626 = vmatpush1.bf16.msra.mxu0 %v7608_v25  ;;  %v2333_v25 = vpack.c.bf16 %v2317_v51, %v2317_v51  ;;  %v7740_v51 = vld [vmem:[#allocation11 + $0xd80] ss:$16 sps:$4 sm:$0xff]  }
 0x407   :  { %5954 = vmatpush1.bf16.msra.mxu1 %v7611_v48  ;;  %5627 = vmatprep.subr.bf16.mxu0 %v7616_v39  ;;  %v7679_v48 = vld [vmem:[#allocation11 + $0xc2c] ss:$16 sps:$4 sm:$0xff]   ;;  %v7674_v39 = vld [vmem:[#allocation11 + $0xc20] ss:$16 sps:$4 sm:$0xff]  }
 0x408   :  { %5955 = vmatprep.subr.bf16.mxu1 %v7619_v41  ;;  %v7682_v41 = vld [vmem:[#allocation11 + $0xc44] ss:$16 sps:$4 sm:$0xff]  }
 0x40a   :  { %5628 = vmatpush1.bf16.msra.mxu0 %v7614_v0  ;;  %v7685_v0 = vld [vmem:[#allocation11 + $0xc4c] ss:$16 sps:$4 sm:$0xff]  }
 0x40b   :  { %5956 = vmatpush1.bf16.msra.mxu1 %v7617_v23  ;;  %5629 = vmatprep.subr.bf16.mxu0 %v7622_v56  ;;  %v7680_v23 = vld [vmem:[#allocation11 + $0xc40] ss:$16 sps:$4 sm:$0xff]   ;;  %v7683_v56 = vld [vmem:[#allocation11 + $0xc48] ss:$16 sps:$4 sm:$0xff]  }
 0x40c   :  { %5957 = vmatprep.subr.bf16.mxu1 %v7625_v2  ;;  %v7688_v2 = vld [vmem:[#allocation11 + $0xc64] ss:$16 sps:$4 sm:$0xff]  }
 0x40e   :  { %5630 = vmatpush1.bf16.msra.mxu0 %v7620_v3  ;;  %v7691_v3 = vld [vmem:[#allocation11 + $0xc6c] ss:$16 sps:$4 sm:$0xff]  }
 0x40f   :  { %5958 = vmatpush1.bf16.msra.mxu1 %v7623_v38  ;;  %5631 = vmatprep.subr.bf16.mxu0 %v7628_v22  ;;  %v7686_v38 = vld [vmem:[#allocation11 + $0xc60] ss:$16 sps:$4 sm:$0xff]   ;;  %v7689_v22 = vld [vmem:[#allocation11 + $0xc68] ss:$16 sps:$4 sm:$0xff]  }
 0x410   :  { %5959 = vmatprep.subr.bf16.mxu1 %v7631_v31  ;;  %v7694_v31 = vld [vmem:[#allocation11 + $0xc84] ss:$16 sps:$4 sm:$0xff]  }
 0x412   :  { %5632 = vmatpush1.bf16.msra.mxu0 %v7626_v36  ;;  %v7697_v36 = vld [vmem:[#allocation11 + $0xc8c] ss:$16 sps:$4 sm:$0xff]  }
 0x413   :  { %5960 = vmatpush1.bf16.msra.mxu1 %v7629_v19  ;;  %5633 = vmatprep.subr.bf16.mxu0 %v7634_v10  ;;  %v7692_v19 = vld [vmem:[#allocation11 + $0xc80] ss:$16 sps:$4 sm:$0xff]   ;;  %v7695_v10 = vld [vmem:[#allocation11 + $0xc88] ss:$16 sps:$4 sm:$0xff]  }
 0x414   :  { %5961 = vmatprep.subr.bf16.mxu1 %v7637_v4  ;;  %v7700_v4 = vld [vmem:[#allocation11 + $0xca4] ss:$16 sps:$4 sm:$0xff]  }
 0x416   :  { %5634 = vmatpush1.bf16.msra.mxu0 %v7632_v55  ;;  %v7703_v55 = vld [vmem:[#allocation11 + $0xcac] ss:$16 sps:$4 sm:$0xff]  }
 0x417   :  { %5962 = vmatpush1.bf16.msra.mxu1 %v7635_v5  ;;  %5635 = vmatprep.subr.bf16.mxu0 %v7640_v50  ;;  %v7698_v5 = vld [vmem:[#allocation11 + $0xca0] ss:$16 sps:$4 sm:$0xff]   ;;  %v7701_v50 = vld [vmem:[#allocation11 + $0xca8] ss:$16 sps:$4 sm:$0xff]  }
 0x418   :  { %5963 = vmatprep.subr.bf16.mxu1 %v7643_v53  ;;  %v7706_v53 = vld [vmem:[#allocation11 + $0xcc4] ss:$16 sps:$4 sm:$0xff]  }
 0x41a   :  { %5636 = vmatpush1.bf16.msra.mxu0 %v7638_v9  ;;  %v7709_v9 = vld [vmem:[#allocation11 + $0xccc] ss:$16 sps:$4 sm:$0xff]  }
 0x41b   :  { %5964 = vmatpush1.bf16.msra.mxu1 %v7641_v24  ;;  %5637 = vmatprep.subr.bf16.mxu0 %v7646_v63  ;;  %v7704_v24 = vld [vmem:[#allocation11 + $0xcc0] ss:$16 sps:$4 sm:$0xff]   ;;  %v7707_v63 = vld [vmem:[#allocation11 + $0xcc8] ss:$16 sps:$4 sm:$0xff]  }
 0x41c   :  { %5965 = vmatprep.subr.bf16.mxu1 %v7649_v35  ;;  %v7712_v35 = vld [vmem:[#allocation11 + $0xce4] ss:$16 sps:$4 sm:$0xff]  }
 0x41e   :  { %5638 = vmatpush1.bf16.msra.mxu0 %v7644_v59  ;;  %v7715_v59 = vld [vmem:[#allocation11 + $0xcec] ss:$16 sps:$4 sm:$0xff]  }
 0x41f   :  { %5966 = vmatpush1.bf16.msra.mxu1 %v7647_v17  ;;  %5639 = vmatprep.subr.bf16.mxu0 %v7652_v21  ;;  %v7710_v17 = vld [vmem:[#allocation11 + $0xce0] ss:$16 sps:$4 sm:$0xff]   ;;  %v7713_v21 = vld [vmem:[#allocation11 + $0xce8] ss:$16 sps:$4 sm:$0xff]  }
 0x420   :  { %5967 = vmatprep.subr.bf16.mxu1 %v7655_v1  ;;  %v7718_v1 = vld [vmem:[#allocation11 + $0xd04] ss:$16 sps:$4 sm:$0xff]  }
 0x422   :  { %5640 = vmatpush1.bf16.msra.mxu0 %v7650_v16  ;;  %v7716_v16 = vld [vmem:[#allocation11 + $0xd00] ss:$16 sps:$4 sm:$0xff]  }
 0x423   :  { %5968 = vmatpush1.bf16.msra.mxu1 %v7653_v32  ;;  %5641 = vmatprep.subr.bf16.mxu0 %v7658_v45  ;;  %v7719_v32 = vld [vmem:[#allocation11 + $0xd08] ss:$16 sps:$4 sm:$0xff]   ;;  %v7724_v45 = vld [vmem:[#allocation11 + $0xd24] ss:$16 sps:$4 sm:$0xff]  }
 0x424   :  { %5969 = vmatprep.subr.bf16.mxu1 %v7661_v57  ;;  %v7727_v57 = vld [vmem:[#allocation11 + $0xd2c] ss:$16 sps:$4 sm:$0xff]  }
 0x426   :  { %5642 = vmatpush1.bf16.msra.mxu0 %v7656_v43  ;;  %v7725_v43 = vld [vmem:[#allocation11 + $0xd28] ss:$16 sps:$4 sm:$0xff]  }
 0x427   :  { %5970 = vmatpush1.bf16.msra.mxu1 %v7659_v58  ;;  %5643 = vmatprep.subr.bf16.mxu0 %v7664_v27  ;;  %v7730_v58 = vld [vmem:[#allocation11 + $0xd44] ss:$16 sps:$4 sm:$0xff]   ;;  %v7733_v27 = vld [vmem:[#allocation11 + $0xd4c] ss:$16 sps:$4 sm:$0xff]  }
 0x428   :  { %5971 = vmatprep.subr.bf16.mxu1 %v7667_v30  ;;  %v7731_v30 = vld [vmem:[#allocation11 + $0xd48] ss:$16 sps:$4 sm:$0xff]  }
 0x42a   :  { %5644 = vmatpush1.bf16.msra.mxu0 %v7662_v61  ;;  %v7739_v61 = vld [vmem:[#allocation11 + $0xd6c] ss:$16 sps:$4 sm:$0xff]  }
 0x42b   :  { %5972 = vmatpush1.bf16.msra.mxu1 %v7665_v12  ;;  %5654 = vmatprep.subr.bf16.mxu0 %v7670_v20  ;;  %v7734_v12 = vld [vmem:[#allocation11 + $0xd60] ss:$16 sps:$4 sm:$0xff]   ;;  %v7742_v20 = vld [vmem:[#allocation11 + $0xd84] ss:$16 sps:$4 sm:$0xff]  }
 0x42c   :  { %5982 = vmatprep.subr.bf16.mxu1 %v7673_v47  ;;  %v7745_v47 = vld [vmem:[#allocation11 + $0xd8c] ss:$16 sps:$4 sm:$0xff]  }
 0x42d   :  { %5646 = vmatmul.mubr.bf16.vlgmr.msra.gmra.mrb[24].mxu0 %v2330_v26 }
 0x42e   :  { %5974 = vmatmul.mubr.bf16.vlgmr.msra.gmra.mrb[24].mxu1 %v2330_v26  ;;  %5655 = vmatpush1.bf16.msra.mxu0 %v7668_v14  ;;  %v7743_v14 = vld [vmem:[#allocation11 + $0xd88] ss:$16 sps:$4 sm:$0xff]   ;;  %v7748_v26 = vld [vmem:[#allocation11 + $0xda4] ss:$16 sps:$4 sm:$0xff]  }
 0x42f   :  { %5686 = vmatprep.mubr.bf16.mxu0 %v2333_v25  ;;  %5983 = vmatpush1.bf16.msra.mxu1 %v7671_v52  ;;  %v2227_v52 = vrot.slane %v8944_v29, %v8768_v49  ;;  %v7763_v29 = vld [vmem:[#allocation11 + $0xdec] ss:$16 sps:$4 sm:$0xff]  }
 0x430   :  { %6014 = vmatprep.mubr.bf16.mxu1 %v2333_v25  ;;  %5656 = vmatprep.subr.bf16.mxu0 %v7676_v8  ;;  %v7751_v8 = vld [vmem:[#allocation11 + $0xdac] ss:$16 sps:$4 sm:$0xff]   ;;  %v7746_v25 = vld [vmem:[#allocation11 + $0xda0] ss:$16 sps:$4 sm:$0xff]  }
 0x431   :  { %5984 = vmatprep.subr.bf16.mxu1 %v7679_v48  ;;  %v7749_v48 = vld [vmem:[#allocation11 + $0xda8] ss:$16 sps:$4 sm:$0xff]  }
 0x432   :  { %5657 = vmatpush1.bf16.msra.mxu0 %v7674_v39  ;;  %v7754_v39 = vld [vmem:[#allocation11 + $0xdc4] ss:$16 sps:$4 sm:$0xff]  }
 0x433   :  { %5985 = vmatpush1.bf16.msra.mxu1 %v7677_v54  ;;  %5658 = vmatprep.subr.bf16.mxu0 %v7682_v41  ;;  %v2276_v54 = vadd.f32 %v2227_v52, %v8917_v7  ;;  %v7757_v41 = vld [vmem:[#allocation11 + $0xdcc] ss:$16 sps:$4 sm:$0xff]   ;;  %v7766_v7 = vld [vmem:[#allocation11 + $0xe04] ss:$16 sps:$4 sm:$0xff]   ;;  %v7815_v52 = vld [vmem:[#allocation11 + $0xf08] ss:$16 sps:$4 sm:$0xff]  }
 0x434   :  { %5986 = vmatprep.subr.bf16.mxu1 %v7685_v0  ;;  %v7752_v0 = vld [vmem:[#allocation11 + $0xdc0] ss:$16 sps:$4 sm:$0xff]  }
 0x436   :  { %5659 = vmatpush1.bf16.msra.mxu0 %v7680_v23  ;;  %v7755_v23 = vld [vmem:[#allocation11 + $0xdc8] ss:$16 sps:$4 sm:$0xff]  }
 0x437   :  { %5987 = vmatpush1.bf16.msra.mxu1 %v7683_v56  ;;  %5660 = vmatprep.subr.bf16.mxu0 %v7688_v2  ;;  %v7760_v56 = vld [vmem:[#allocation11 + $0xde4] ss:$16 sps:$4 sm:$0xff]   ;;  %v2296_v2 = vmul.f32 0.01, %v2276_v54 }
 0x438   :  { %5988 = vmatprep.subr.bf16.mxu1 %v7691_v3  ;;  %v2299_v3 = vmul.f32 0.01, %v8922_v40 }
 0x43a   :  { %5661 = vmatpush1.bf16.msra.mxu0 %v7686_v38  ;;  %v7758_v38 = vld [vmem:[#allocation11 + $0xde0] ss:$16 sps:$4 sm:$0xff]  }
 0x43b   :  { %5989 = vmatpush1.bf16.msra.mxu1 %v7689_v22  ;;  %5662 = vmatprep.subr.bf16.mxu0 %v7694_v31  ;;  %v7761_v22 = vld [vmem:[#allocation11 + $0xde8] ss:$16 sps:$4 sm:$0xff]   ;;  %v2316_v31 = vmax.f32 %v2276_v54, %v2296_v2  ;;  %v7826_v54 = vld [vmem:[#allocation11 + $0xf44] ss:$16 sps:$4 sm:$0xff]   ;;  %v7835_v2 = vld [vmem:[#allocation11 + $0xf6c] ss:$16 sps:$4 sm:$0xff]  }
 0x43c   :  { %5990 = vmatprep.subr.bf16.mxu1 %v7697_v36  ;;  %v7769_v36 = vld [vmem:[#allocation11 + $0xe0c] ss:$16 sps:$4 sm:$0xff]  }
 0x43e   :  { %5663 = vmatpush1.bf16.msra.mxu0 %v7692_v19  ;;  %v2319_v19 = vmax.f32 %v8922_v40, %v2299_v3  ;;  %v7781_v40 = vld [vmem:[#allocation11 + $0xe4c] ss:$16 sps:$4 sm:$0xff]   ;;  %v7833_v3 = vld [vmem:[#allocation11 + $0xf68] ss:$16 sps:$4 sm:$0xff]  }
 0x43f   :  { %5991 = vmatpush1.bf16.msra.mxu1 %v7695_v10  ;;  %5664 = vmatprep.subr.bf16.mxu0 %v7700_v4  ;;  %v7764_v10 = vld [vmem:[#allocation11 + $0xe00] ss:$16 sps:$4 sm:$0xff]   ;;  %v2332_v4 = vpack.c.bf16 %v2316_v31, %v2316_v31 }
 0x440   :  { %5992 = vmatprep.subr.bf16.mxu1 %v7703_v55  ;;  %v7767_v55 = vld [vmem:[#allocation11 + $0xe08] ss:$16 sps:$4 sm:$0xff]   ;;  %v7836_v31 = vld [vmem:[#allocation11 + $0xf80] ss:$16 sps:$4 sm:$0xff]  }
 0x442   :  { %5665 = vmatpush1.bf16.msra.mxu0 %v7698_v5  ;;  %v7772_v5 = vld [vmem:[#allocation11 + $0xe24] ss:$16 sps:$4 sm:$0xff]  }
 0x443   :  { %5993 = vmatpush1.bf16.msra.mxu1 %v7701_v50  ;;  %5666 = vmatprep.subr.bf16.mxu0 %v7706_v53  ;;  %v2335_v50 = vpack.c.bf16 %v2319_v19, %v2319_v19  ;;  %v7775_v53 = vld [vmem:[#allocation11 + $0xe2c] ss:$16 sps:$4 sm:$0xff]  }
 0x444   :  { %5994 = vmatprep.subr.bf16.mxu1 %v7709_v9  ;;  %v7770_v9 = vld [vmem:[#allocation11 + $0xe20] ss:$16 sps:$4 sm:$0xff]   ;;  %v7847_v19 = vld [vmem:[#allocation11 + $0xfac] ss:$16 sps:$4 sm:$0xff]  }
 0x446   :  { %5667 = vmatpush1.bf16.msra.mxu0 %v7704_v24  ;;  %v7773_v24 = vld [vmem:[#allocation11 + $0xe28] ss:$16 sps:$4 sm:$0xff]  }
 0x447   :  { %5995 = vmatpush1.bf16.msra.mxu1 %v7707_v63  ;;  %5668 = vmatprep.subr.bf16.mxu0 %v7712_v35  ;;  %v7778_v63 = vld [vmem:[#allocation11 + $0xe44] ss:$16 sps:$4 sm:$0xff]   ;;  %v7776_v35 = vld [vmem:[#allocation11 + $0xe40] ss:$16 sps:$4 sm:$0xff]  }
 0x448   :  { %5996 = vmatprep.subr.bf16.mxu1 %v7715_v59  ;;  %v7779_v59 = vld [vmem:[#allocation11 + $0xe48] ss:$16 sps:$4 sm:$0xff]  }
 0x44a   :  { %5669 = vmatpush1.bf16.msra.mxu0 %v7710_v17  ;;  %v7784_v17 = vld [vmem:[#allocation11 + $0xe64] ss:$16 sps:$4 sm:$0xff]  }
 0x44b   :  { %5997 = vmatpush1.bf16.msra.mxu1 %v7713_v21  ;;  %5670 = vmatprep.subr.bf16.mxu0 %v7718_v1  ;;  %v7787_v21 = vld [vmem:[#allocation11 + $0xe6c] ss:$16 sps:$4 sm:$0xff]   ;;  %v7782_v1 = vld [vmem:[#allocation11 + $0xe60] ss:$16 sps:$4 sm:$0xff]  }
 0x44c   :  { %5998 = vmatprep.subr.bf16.mxu1 %v7721_v42  ;;  %v7785_v42 = vld [vmem:[#allocation11 + $0xe68] ss:$16 sps:$4 sm:$0xff]  }
 0x44e   :  { %5671 = vmatpush1.bf16.msra.mxu0 %v7716_v16  ;;  %v7790_v16 = vld [vmem:[#allocation11 + $0xe84] ss:$16 sps:$4 sm:$0xff]  }
 0x44f   :  { %5999 = vmatpush1.bf16.msra.mxu1 %v7719_v32  ;;  %5672 = vmatprep.subr.bf16.mxu0 %v7724_v45  ;;  %v7793_v32 = vld [vmem:[#allocation11 + $0xe8c] ss:$16 sps:$4 sm:$0xff]   ;;  %v7788_v45 = vld [vmem:[#allocation11 + $0xe80] ss:$16 sps:$4 sm:$0xff]  }
 0x450   :  { %6000 = vmatprep.subr.bf16.mxu1 %v7727_v57  ;;  %v7791_v57 = vld [vmem:[#allocation11 + $0xe88] ss:$16 sps:$4 sm:$0xff]  }
 0x452   :  { %5673 = vmatpush1.bf16.msra.mxu0 %v7722_v62  ;;  %v7796_v62 = vld [vmem:[#allocation11 + $0xea4] ss:$16 sps:$4 sm:$0xff]  }
 0x453   :  { %6001 = vmatpush1.bf16.msra.mxu1 %v7725_v43  ;;  %5674 = vmatprep.subr.bf16.mxu0 %v7730_v58  ;;  %v7799_v43 = vld [vmem:[#allocation11 + $0xeac] ss:$16 sps:$4 sm:$0xff]   ;;  %v7794_v58 = vld [vmem:[#allocation11 + $0xea0] ss:$16 sps:$4 sm:$0xff]  }
 0x454   :  { %6002 = vmatprep.subr.bf16.mxu1 %v7733_v27  ;;  %v7797_v27 = vld [vmem:[#allocation11 + $0xea8] ss:$16 sps:$4 sm:$0xff]  }
 0x456   :  { %5675 = vmatpush1.bf16.msra.mxu0 %v7728_v60  ;;  %v7802_v60 = vld [vmem:[#allocation11 + $0xec4] ss:$16 sps:$4 sm:$0xff]  }
 0x457   :  { %6003 = vmatpush1.bf16.msra.mxu1 %v7731_v30  ;;  %5676 = vmatprep.subr.bf16.mxu0 %v7736_v46  ;;  %v7805_v30 = vld [vmem:[#allocation11 + $0xecc] ss:$16 sps:$4 sm:$0xff]   ;;  %v7800_v46 = vld [vmem:[#allocation11 + $0xec0] ss:$16 sps:$4 sm:$0xff]  }
 0x458   :  { %6004 = vmatprep.subr.bf16.mxu1 %v7739_v61  ;;  %v7803_v61 = vld [vmem:[#allocation11 + $0xec8] ss:$16 sps:$4 sm:$0xff]  }
 0x45a   :  { %5677 = vmatpush1.bf16.msra.mxu0 %v7734_v12  ;;  %v7808_v12 = vld [vmem:[#allocation11 + $0xee4] ss:$16 sps:$4 sm:$0xff]  }
 0x45b   :  { %6005 = vmatpush1.bf16.msra.mxu1 %v7737_v6  ;;  %5678 = vmatprep.subr.bf16.mxu0 %v7742_v20  ;;  %v7811_v6 = vld [vmem:[#allocation11 + $0xeec] ss:$16 sps:$4 sm:$0xff]   ;;  %v7806_v20 = vld [vmem:[#allocation11 + $0xee0] ss:$16 sps:$4 sm:$0xff]  }
 0x45c   :  { %6006 = vmatprep.subr.bf16.mxu1 %v7745_v47  ;;  %v7809_v47 = vld [vmem:[#allocation11 + $0xee8] ss:$16 sps:$4 sm:$0xff]  }
 0x45e   :  { %5679 = vmatpush1.bf16.msra.mxu0 %v7740_v51  ;;  %v7814_v51 = vld [vmem:[#allocation11 + $0xf04] ss:$16 sps:$4 sm:$0xff]  }
 0x45f   :  { %6007 = vmatpush1.bf16.msra.mxu1 %v7743_v14  ;;  %5680 = vmatprep.subr.bf16.mxu0 %v7748_v26  ;;  %v7817_v14 = vld [vmem:[#allocation11 + $0xf0c] ss:$16 sps:$4 sm:$0xff]   ;;  %v7812_v26 = vld [vmem:[#allocation11 + $0xf00] ss:$16 sps:$4 sm:$0xff]  }
 0x460   :  { %6008 = vmatprep.subr.bf16.mxu1 %v7751_v8  ;;  %v7820_v8 = vld [vmem:[#allocation11 + $0xf24] ss:$16 sps:$4 sm:$0xff]  }
 0x462   :  { %5681 = vmatpush1.bf16.msra.mxu0 %v7746_v25  ;;  %v7823_v25 = vld [vmem:[#allocation11 + $0xf2c] ss:$16 sps:$4 sm:$0xff]  }
 0x463   :  { %6009 = vmatpush1.bf16.msra.mxu1 %v7749_v48  ;;  %5682 = vmatprep.subr.bf16.mxu0 %v7754_v39  ;;  %v7818_v48 = vld [vmem:[#allocation11 + $0xf20] ss:$16 sps:$4 sm:$0xff]   ;;  %v7821_v39 = vld [vmem:[#allocation11 + $0xf28] ss:$16 sps:$4 sm:$0xff]  }
 0x464   :  { %6010 = vmatprep.subr.bf16.mxu1 %v7757_v41  ;;  %v7829_v41 = vld [vmem:[#allocation11 + $0xf4c] ss:$16 sps:$4 sm:$0xff]  }
 0x466   :  { %5683 = vmatpush1.bf16.msra.mxu0 %v7752_v0  ;;  %v7824_v0 = vld [vmem:[#allocation11 + $0xf40] ss:$16 sps:$4 sm:$0xff]  }
 0x467   :  { %6011 = vmatpush1.bf16.msra.mxu1 %v7755_v23  ;;  %5684 = vmatprep.subr.bf16.mxu0 %v7760_v56  ;;  %v7827_v23 = vld [vmem:[#allocation11 + $0xf48] ss:$16 sps:$4 sm:$0xff]   ;;  %v7832_v56 = vld [vmem:[#allocation11 + $0xf64] ss:$16 sps:$4 sm:$0xff]  }
 0x468   :  { %6012 = vmatprep.subr.bf16.mxu1 %v7763_v29  ;;  %v7830_v29 = vld [vmem:[#allocation11 + $0xf60] ss:$16 sps:$4 sm:$0xff]  }
 0x46a   :  { %5685 = vmatpush1.bf16.msra.mxu0 %v7758_v38  ;;  %v7838_v38 = vld [vmem:[#allocation11 + $0xf84] ss:$16 sps:$4 sm:$0xff]  }
 0x46b   :  { %6013 = vmatpush1.bf16.msra.mxu1 %v7761_v22  ;;  %5695 = vmatprep.subr.bf16.mxu0 %v7766_v7  ;;  %v7841_v22 = vld [vmem:[#allocation11 + $0xf8c] ss:$16 sps:$4 sm:$0xff]   ;;  %v7839_v7 = vld [vmem:[#allocation11 + $0xf88] ss:$16 sps:$4 sm:$0xff]  }
 0x46c   :  { %6023 = vmatprep.subr.bf16.mxu1 %v7769_v36  ;;  %v7844_v36 = vld [vmem:[#allocation11 + $0xfa4] ss:$16 sps:$4 sm:$0xff]  }
 0x46d   :  { %5687 = vmatmul.mubr.bf16.vlgmr.msra.gmra.mrb[24].mxu0 %v2332_v4 }
 0x46e   :  { %6015 = vmatmul.mubr.bf16.vlgmr.msra.gmra.mrb[24].mxu1 %v2332_v4  ;;  %5696 = vmatpush1.bf16.msra.mxu0 %v7764_v10  ;;  %v7842_v10 = vld [vmem:[#allocation11 + $0xfa0] ss:$16 sps:$4 sm:$0xff]   ;;  %v7845_v4 = vld [vmem:[#allocation11 + $0xfa8] ss:$16 sps:$4 sm:$0xff]  }
 0x46f   :  { %5727 = vmatprep.mubr.bf16.mxu0 %v2335_v50  ;;  %6024 = vmatpush1.bf16.msra.mxu1 %v7767_v55  ;;  %v7850_v55 = vld [vmem:[#allocation11 + $0xfc4] ss:$16 sps:$4 sm:$0xff]  }
 0x470   :  { %6055 = vmatprep.mubr.bf16.mxu1 %v2335_v50  ;;  %5697 = vmatprep.subr.bf16.mxu0 %v7772_v5  ;;  %v7853_v5 = vld [vmem:[#allocation11 + $0xfcc] ss:$16 sps:$4 sm:$0xff]   ;;  %v7848_v50 = vld [vmem:[#allocation11 + $0xfc0] ss:$16 sps:$4 sm:$0xff]  }
 0x471   :  { %6025 = vmatprep.subr.bf16.mxu1 %v7775_v53  ;;  %v7851_v53 = vld [vmem:[#allocation11 + $0xfc8] ss:$16 sps:$4 sm:$0xff]  }
 0x472   :  { %5698 = vmatpush1.bf16.msra.mxu0 %v7770_v9  ;;  %v7856_v9 = vld [vmem:[#allocation11 + $0xfe4] ss:$16 sps:$4 sm:$0xff]  }
 0x473   :  { %6026 = vmatpush1.bf16.msra.mxu1 %v7773_v24  ;;  %5699 = vmatprep.subr.bf16.mxu0 %v7778_v63  ;;  %v2298_v24 = vmul.f32 0.01, %v8924_v18  ;;  %v7859_v63 = vld [vmem:[#allocation11 + $0xfec] ss:$16 sps:$4 sm:$0xff]  }
 0x474   :  { %6027 = vmatprep.subr.bf16.mxu1 %v7781_v40  ;;  %v7854_v40 = vld [vmem:[#allocation11 + $0xfe0] ss:$16 sps:$4 sm:$0xff]  }
 0x476   :  { %5700 = vmatpush1.bf16.msra.mxu0 %v7776_v35  ;;  %v7857_v35 = vld [vmem:[#allocation11 + $0xfe8] ss:$16 sps:$4 sm:$0xff]  }
 0x477   :  { %6028 = vmatpush1.bf16.msra.mxu1 %v7779_v59  ;;  %5701 = vmatprep.subr.bf16.mxu0 %v7784_v17  ;;  %v2318_v59 = vmax.f32 %v8924_v18, %v2298_v24 }
 0x478   :  { %6029 = vmatprep.subr.bf16.mxu1 %v7787_v21 }
 0x479   :  { %v2334_v17 = vpack.c.bf16 %v2318_v59, %v2318_v59 }
 0x47a   :  { %5702 = vmatpush1.bf16.msra.mxu0 %v7782_v1 }
 0x47b   :  { %6030 = vmatpush1.bf16.msra.mxu1 %v7785_v42  ;;  %5703 = vmatprep.subr.bf16.mxu0 %v7790_v16 }
 0x47c   :  { %6031 = vmatprep.subr.bf16.mxu1 %v7793_v32 }
 0x47e   :  { %5704 = vmatpush1.bf16.msra.mxu0 %v7788_v45 }
 0x47f   :  { %6032 = vmatpush1.bf16.msra.mxu1 %v7791_v57  ;;  %5705 = vmatprep.subr.bf16.mxu0 %v7796_v62 }
 0x480   :  { %6033 = vmatprep.subr.bf16.mxu1 %v7799_v43 }
 0x482   :  { %5706 = vmatpush1.bf16.msra.mxu0 %v7794_v58 }
 0x483   :  { %6034 = vmatpush1.bf16.msra.mxu1 %v7797_v27  ;;  %5707 = vmatprep.subr.bf16.mxu0 %v7802_v60 }
 0x484   :  { %6035 = vmatprep.subr.bf16.mxu1 %v7805_v30 }
 0x486   :  { %5708 = vmatpush1.bf16.msra.mxu0 %v7800_v46 }
 0x487   :  { %6036 = vmatpush1.bf16.msra.mxu1 %v7803_v61  ;;  %5709 = vmatprep.subr.bf16.mxu0 %v7808_v12 }
 0x488   :  { %6037 = vmatprep.subr.bf16.mxu1 %v7811_v6 }
 0x48a   :  { %5710 = vmatpush1.bf16.msra.mxu0 %v7806_v20 }
 0x48b   :  { %6038 = vmatpush1.bf16.msra.mxu1 %v7809_v47  ;;  %5711 = vmatprep.subr.bf16.mxu0 %v7814_v51 }
 0x48c   :  { %6039 = vmatprep.subr.bf16.mxu1 %v7817_v14 }
 0x48e   :  { %5712 = vmatpush1.bf16.msra.mxu0 %v7812_v26 }
 0x48f   :  { %6040 = vmatpush1.bf16.msra.mxu1 %v7815_v52  ;;  %5713 = vmatprep.subr.bf16.mxu0 %v7820_v8 }
 0x490   :  { %6041 = vmatprep.subr.bf16.mxu1 %v7823_v25 }
 0x492   :  { %5714 = vmatpush1.bf16.msra.mxu0 %v7818_v48 }
 0x493   :  { %6042 = vmatpush1.bf16.msra.mxu1 %v7821_v39  ;;  %5715 = vmatprep.subr.bf16.mxu0 %v7826_v54 }
 0x494   :  { %6043 = vmatprep.subr.bf16.mxu1 %v7829_v41 }
 0x496   :  { %5716 = vmatpush1.bf16.msra.mxu0 %v7824_v0 }
 0x497   :  { %6044 = vmatpush1.bf16.msra.mxu1 %v7827_v23  ;;  %5717 = vmatprep.subr.bf16.mxu0 %v7832_v56 }
 0x498   :  { %6045 = vmatprep.subr.bf16.mxu1 %v7835_v2 }
 0x49a   :  { %5718 = vmatpush1.bf16.msra.mxu0 %v7830_v29 }
 0x49b   :  { %6046 = vmatpush1.bf16.msra.mxu1 %v7833_v3  ;;  %5719 = vmatprep.subr.bf16.mxu0 %v7838_v38 }
 0x49c   :  { %6047 = vmatprep.subr.bf16.mxu1 %v7841_v22 }
 0x49e   :  { %5720 = vmatpush1.bf16.msra.mxu0 %v7836_v31 }
 0x49f   :  { %6048 = vmatpush1.bf16.msra.mxu1 %v7839_v7  ;;  %5721 = vmatprep.subr.bf16.mxu0 %v7844_v36 }
 0x4a0   :  { %6049 = vmatprep.subr.bf16.mxu1 %v7847_v19 }
 0x4a2   :  { %5722 = vmatpush1.bf16.msra.mxu0 %v7842_v10 }
 0x4a3   :  { %6050 = vmatpush1.bf16.msra.mxu1 %v7845_v4  ;;  %5723 = vmatprep.subr.bf16.mxu0 %v7850_v55 }
 0x4a4   :  { %6051 = vmatprep.subr.bf16.mxu1 %v7853_v5 }
 0x4a6   :  { %5724 = vmatpush1.bf16.msra.mxu0 %v7848_v50 }
 0x4a7   :  { %6052 = vmatpush1.bf16.msra.mxu1 %v7851_v53  ;;  %5725 = vmatprep.subr.bf16.mxu0 %v7856_v9 }
 0x4a8   :  { %6053 = vmatprep.subr.bf16.mxu1 %v7859_v63 }
 0x4aa   :  { %5726 = vmatpush1.bf16.msra.mxu0 %v7854_v40 }
 0x4ab   :  { %6054 = vmatpush1.bf16.msra.mxu1 %v7857_v35 }
 0x4ad   :  { %5728 = vmatmul.mubr.bf16.vlgmr.msra.gmra.mrb[24].mxu0 %v2334_v17 }
 0x4ae   :  { %6056 = vmatmul.mubr.bf16.vlgmr.msra.gmra.mrb[24].mxu1 %v2334_v17 }
 0x580   :  { %v8958_v21 = vpop.f32.mrb[24].mxu0 }
 0x581   :  { %v6066_v1 = vsel %vm968_vm3, %v8958_v21, 0.0  ;;  %v6098_v42 = vmul.f32 %v8958_v21, %v8958_v21  ;;  %v8964_v16 = vpop.f32.mrb[24].mxu1  ;;  %v8966_v32 = vpop.f32.mrb[25].mxu0 }
 0x582   :  { %v6067_v45 = vrot.slane %v6066_v1, 4  ;;  %v6080_v18 = vsel %vm968_vm3, %v8964_v16, 0.0  ;;  %v6100_v57 = vmul.f32 %v8964_v16, %v8964_v16  ;;  %v6073_v62 = vsel %vm968_vm3, %v8966_v32, 0.0  ;;  %v8974_v43 = vpop.f32.mrb[25].mxu1  ;;  %v5733_v58 = vpop.f32.mrb[26].mxu0 }
 0x583   :  { %v6102_v27 = vsel %vm968_vm3, %v6098_v42, 0.0  ;;  %v6081_v60 = vrot.slane %v6080_v18, 4  ;;  %v6074_v30 = vrot.slane %v6073_v62, 4  ;;  %v6099_v46 = vmul.f32 %v8966_v32, %v8966_v32  ;;  %v6061_v61 = vpop.f32.mrb[26].mxu1  ;;  %v5734_v12 = vpop.f32.mrb[27].mxu0 }
 0x584   :  { %v6068_v6 = vadd.f32 %v6067_v45, %v6066_v1  ;;  %v6103_v20 = vrot.slane %v6102_v27, 4  ;;  %v6116_v47 = vsel %vm968_vm3, %v6100_v57, 0.0  ;;  %v6087_v51 = vsel %vm968_vm3, %v8974_v43, 0.0  ;;  %v6062_v14 = vpop.f32.mrb[27].mxu1 }
 0x585   :  { %v6082_v26 = vadd.f32 %v6081_v60, %v6080_v18  ;;  %v6117_v52 = vrot.slane %v6116_v47, 4  ;;  %v6075_v8 = vadd.f32 %v6074_v30, %v6073_v62  ;;  %v6109_v25 = vsel %vm968_vm3, %v6099_v46, 0.0 }
 0x586   :  { %v6069_v48 = vrot.slane %v6068_v6, 2  ;;  %v6104_v39 = vadd.f32 %v6103_v20, %v6102_v27  ;;  %v6110_v54 = vrot.slane %v6109_v25, 4  ;;  %v6088_v41 = vrot.slane %v6087_v51, 4 }
 0x587   :  { %v6083_v0 = vrot.slane %v6082_v26, 2  ;;  %v6118_v23 = vadd.f32 %v6117_v52, %v6116_v47  ;;  %v6076_v56 = vrot.slane %v6075_v8, 2  ;;  %v6101_v2 = vmul.f32 %v8974_v43, %v8974_v43 }
 0x588   :  { %v6070_v29 = vadd.f32 %v6069_v48, %v6068_v6  ;;  %v6105_v3 = vrot.slane %v6104_v39, 2  ;;  %v6111_v38 = vadd.f32 %v6110_v54, %v6109_v25  ;;  %v6089_v22 = vadd.f32 %v6088_v41, %v6087_v51 }
 0x589   :  { %v6084_v31 = vadd.f32 %v6083_v0, %v6082_v26  ;;  %v6119_v7 = vrot.slane %v6118_v23, 2  ;;  %v6077_v36 = vadd.f32 %v6076_v56, %v6075_v8  ;;  %v6123_v19 = vsel %vm968_vm3, %v6101_v2, 0.0 }
 0x58a   :  { %v6071_v10 = vrot.slane %v6070_v29, 1  ;;  %v6106_v4 = vadd.f32 %v6105_v3, %v6104_v39  ;;  %v6112_v55 = vrot.slane %v6111_v38, 2  ;;  %v6090_v5 = vrot.slane %v6089_v22, 2 }
 0x58b   :  { %v6085_v50 = vrot.slane %v6084_v31, 1  ;;  %v6120_v53 = vadd.f32 %v6119_v7, %v6118_v23  ;;  %v6078_v9 = vrot.slane %v6077_v36, 1  ;;  %v6124_v24 = vrot.slane %v6123_v19, 4 }
 0x58c   :  { %v6072_v63 = vadd.f32 %v6071_v10, %v6070_v29  ;;  %v6107_v40 = vrot.slane %v6106_v4, 1  ;;  %v6113_v35 = vadd.f32 %v6112_v55, %v6111_v38  ;;  %v6091_v59 = vadd.f32 %v6090_v5, %v6089_v22  ;;  %v6065_v5 = vld [vmem:[#allocation14] sm:$0xf] }
 0x58d   :  { %v6086_v17 = vadd.f32 %v6085_v50, %v6084_v31  ;;  %v6121_v1 = vrot.slane %v6120_v53, 1  ;;  %v6079_v42 = vadd.f32 %v6078_v9, %v6077_v36  ;;  %v6125_v45 = vadd.f32 %v6124_v24, %v6123_v19 }
 0x58e   :  { %v6094_v18 = vmul.f32 0.5, %v6072_v63  ;;  %v6108_v57 = vadd.f32 %v6107_v40, %v6106_v4  ;;  %v6114_v62 = vrot.slane %v6113_v35, 1  ;;  %v6092_v58 = vrot.slane %v6091_v59, 1 }
 0x58f   :  { %v6096_v27 = vmul.f32 0.5, %v6086_v17  ;;  %v6122_v60 = vadd.f32 %v6121_v1, %v6120_v53  ;;  %v6095_v30 = vmul.f32 0.5, %v6079_v42  ;;  %v6126_v46 = vrot.slane %v6125_v45, 2  ;;  %v6064_v53 = vld [vmem:[#allocation13] sm:$0xf] }
 0x590   :  { %v6130_v61 = vmul.f32 0.5, %v6108_v57  ;;  %v6134_v12 = vmul.f32 %v6094_v18, %v6094_v18  ;;  %v6115_v6 = vadd.f32 %v6114_v62, %v6113_v35  ;;  %v6093_v52 = vadd.f32 %v6092_v58, %v6091_v59 }
 0x591   :  { %v6132_v20 = vmul.f32 0.5, %v6122_v60  ;;  %v6136_v47 = vmul.f32 %v6096_v27, %v6096_v27  ;;  %v6135_v51 = vmul.f32 %v6095_v30, %v6095_v30  ;;  %v6127_v8 = vadd.f32 %v6126_v46, %v6125_v45 }
 0x592   :  { %v6138_v14 = vsub.f32 %v6130_v61, %v6134_v12  ;;  %v6131_v26 = vmul.f32 0.5, %v6115_v6  ;;  %v6097_v39 = vmul.f32 0.5, %v6093_v52  ;;  %v6225_v24 = vrot.slane %v6065_v5, %v8784_v34 }
 0x593   :  { %v6140_v54 = vsub.f32 %v6132_v20, %v6136_v47  ;;  %v6128_v41 = vrot.slane %v6127_v8, 1  ;;  %v6213_v40 = vrot.slane %v6065_v5, %v8768_v49  ;;  %v6217_v35 = vrot.slane %v6065_v5, %v8765_v15 }
 0x594   :  { %v6142_v25 = vadd.f32 1e-05, %v6138_v14  ;;  %v6139_v48 = vsub.f32 %v6131_v26, %v6135_v51  ;;  %v6137_v56 = vmul.f32 %v6097_v39, %v6097_v39  ;;  %v6221_v59 = vrot.slane %v6065_v5, %v8773_v33 }
 0x595   :  { %v6129_v23 = vadd.f32 %v6128_v41, %v6127_v8  ;;  %v6144_v2 = vadd.f32 1e-05, %v6140_v54  ;;  %v6180_v17 = vsub.f32 %v8958_v21, %v6094_v18  ;;  %v6182_v1 = vsub.f32 %v8964_v16, %v6096_v27 }
 0x596   :  { %7900 = vrsqrt.f32 %v6142_v25  ;;  %v6143_v0 = vadd.f32 1e-05, %v6139_v48  ;;  %v6181_v42 = vsub.f32 %v8966_v32, %v6095_v30  ;;  %v6183_v45 = vsub.f32 %v8974_v43, %v6097_v39 }
 0x597   :  { %v6133_v29 = vmul.f32 0.5, %v6129_v23  ;;  %v2280_v21 = vmul.f32 0.01, %v8824_v37  ;;  %v2281_v16 = vmul.f32 0.01, %v8826_v13 }
 0x598   :  { %7902 = vrsqrt.f32 %v6143_v0  ;;  %v2282_v32 = vmul.f32 0.01, %v8828_v28 }
 0x599   :  { %v6141_v3 = vsub.f32 %v6133_v29, %v6137_v56  ;;  %7904 = vrsqrt.f32 %v6144_v2  ;;  %v2301_v20 = vmax.f32 %v8826_v13, %v2281_v16 }
 0x59a   :  { %v2302_v51 = vmax.f32 %v8828_v28, %v2282_v32 }
 0x59b   :  { %v6145_v38 = vadd.f32 1e-05, %v6141_v3 }
 0x59d   :  { %7906 = vrsqrt.f32 %v6145_v38 }
 0x5a0   :  { %v7901_v22 = vpop.eup %7900 }
 0x5a2   :  { %v7903_v31 = vpop.eup %7902 }
 0x5a3   :  { %v6154_v7 = vcombine.low %v7901_v22, %v7903_v31  ;;  %v7905_v36 = vpop.eup %7904 }
 0x5a5   :  { %v6162_v4 = vrot.slane %v6154_v7, %v8452_v11 }
 0x5a7   :  { %v7907_v19 = vpop.eup %7906 }
 0x5a8   :  { %v6155_v10 = vcombine.low %v7905_v36, %v7907_v19 }
 0x5aa   :  { %v6169_v55 = vrot.slane %v6155_v10, %v8452_v11 }
 0x5ac   :  { %v6170_v50 = vcombine.low %v6162_v4, %v6169_v55 }
 0x5ae   :  { %v6177_v9 = vrot.slane %v6170_v50, %v8452_v11  ;;  %v9100_v50 = vld [vmem:[#allocation23_spill] sm:$0xff] }
 0x5b0   :  { %v6179_v63 = vmul.f32 %v6177_v9, %v6064_v53 }
 0x5b2   :  { %v6200_v57 = vrot.slane %v6179_v63, %v8784_v34  ;;  %v6188_v11 = vrot.slane %v6179_v63, %v8768_v49  ;;  %v6192_v62 = vrot.slane %v6179_v63, %v8765_v15  ;;  %v6196_v58 = vrot.slane %v6179_v63, %v8773_v33 }
 0x5b3   :  { %v2283_v49 = vmul.f32 0.01, %v8830_v44  ;;  %v2300_v33 = vmax.f32 %v8824_v37, %v2280_v21 }
 0x5b4   :  { %v6208_v60 = vmul.f32 %v6200_v57, %v6183_v45  ;;  %v6205_v46 = vmul.f32 %v6188_v11, %v6180_v17  ;;  %v6206_v61 = vmul.f32 %v6192_v62, %v6181_v42  ;;  %v6207_v12 = vmul.f32 %v6196_v58, %v6182_v1 }
 0x5b5   :  { %v2303_v8 = vmax.f32 %v8830_v44, %v2283_v49 }
 0x5b6   :  { %v6233_v18 = vadd.f32 %v6225_v24, %v6208_v60  ;;  %v6230_v43 = vadd.f32 %v6213_v40, %v6205_v46  ;;  %v6231_v27 = vadd.f32 %v6217_v35, %v6206_v61  ;;  %v6232_v34 = vadd.f32 %v6221_v59, %v6207_v12 }
 0x5b8   :  { %v6234_v30 = vmul.f32 0.01, %v6230_v43  ;;  %v6235_v15 = vmul.f32 0.01, %v6231_v27  ;;  %v6236_v6 = vmul.f32 0.01, %v6232_v34 }
 0x5b9   :  { %v6237_v47 = vmul.f32 0.01, %v6233_v18 }
 0x5ba   :  { %v6238_v14 = vmax.f32 %v6230_v43, %v6234_v30  ;;  %v6239_v26 = vmax.f32 %v6231_v27, %v6235_v15  ;;  %v6240_v52 = vmax.f32 %v6232_v34, %v6236_v6 }
 0x5bb   :  { %v6241_v25 = vmax.f32 %v6233_v18, %v6237_v47 }
 0x5bc   :  { %v6242_v48 = vadd.f32 %v6238_v14, %v2300_v33  ;;  %v6243_v39 = vadd.f32 %v6239_v26, %v2301_v20  ;;  %v6244_v54 = vadd.f32 %v6240_v52, %v2302_v51 }
 0x5bd   :  { %v6245_v41 = vadd.f32 %v6241_v25, %v2303_v8 }
 0x5be   :  { %v6246_v0 = vmul.f32 %v6242_v48, %v6242_v48  ;;  %v6247_v23 = vmul.f32 %v6243_v39, %v6243_v39  ;;  %v6248_v56 = vmul.f32 %v6244_v54, %v6244_v54 }
 0x5bf   :  { %v6249_v2 = vmul.f32 %v6245_v41, %v6245_v41 }
 0x5c0   :  { %v6250_v37 = vsel %vm968_vm3, %v6246_v0, 0.0  ;;  %v6251_v13 = vsel %vm968_vm3, %v6247_v23, 0.0  ;;  %v6253_v28 = vsel %vm968_vm3, %v6248_v56, 0.0 }
 0x5c1   :  { %v6252_v29 = vadd.f32 %v6251_v13, %v6250_v37  ;;  %v6255_v38 = vsel %vm968_vm3, %v6249_v2, 0.0 }
 0x5c3   :  { %v6254_v3 = vadd.f32 %v6253_v28, %v6252_v29 }
 0x5c5   :  { %v6256_v44 = vadd.f32 %v6255_v38, %v6254_v3 }
 0x5c7   :  { %6257 = vadd.xlane.f32.xlu0 %v6256_v44 }
 0x654   :  { %v6258_v22 = vpop.xlane.xlu0 %6257 }
 0x655   :  { %v6259_v31 = vadd.f32 1e-12, %v6258_v22 }
 0x657   :  { %7908 = vrsqrt.f32 %v6259_v31 }
 0x661   :  { %v7909_v7 = vpop.eup %7908 }
 0x662   :  { %v6261_v36 = vmul.f32 %v7909_v7, %v6242_v48  ;;  %v6262_v19 = vmul.f32 %v7909_v7, %v6243_v39  ;;  %v6263_v10 = vmul.f32 %v7909_v7, %v6244_v54  ;;  %v6264_v4 = vmul.f32 %v7909_v7, %v6245_v41 }
 0x664   :  { %v6269_v55 = vcombine.low %v6261_v36, %v6262_v19  ;;  %v6270_v5 = vcombine.low %v6263_v10, %v6264_v4 }
 0x666   :  { %v6277_v53 = vrot.slane %v6269_v55, %v9100_v50  ;;  %v6284_v9 = vrot.slane %v6270_v5, %v9100_v50 }
 0x668   :  { %v6285_v24 = vcombine.low %v6277_v53, %v6284_v9 }
 0x66a   :  { %6287 = vst [vmem:[#allocation16] sm:$0xff] %v6285_v24 }
 0x66b   :  { %8098 = shalt.err (!%p8095_p12)
}
 0x66c   :  { %s8099_s1 = scalar_lea.hbm %s9037_s10, 128 }
 0x66d   :  { %p8100_p13 = scmp.ne.s32.totalorder %s9037_s10, %s8099_s1  ;;  %p8103_p0 = scmp.lt.u32.totalorder %s8099_s1, %s9037_s10 }
 0x66f   :  { %p8105_p1 = pnand %p8103_p0, %p8100_p13 }
 0x671   :  { %8108 = shalt.err (!%p8105_p1)
}
 0x672   :  { %6297 = dma.vmem_to_hbm [thread:$0]  %s6295_s26, 128, %s9037_s10, [#allocation4]  }
 0x673   :  { %8119 = dma.done.wait [#allocation4], 128  }
 0x674   :  { %8120 = vsyncadd [#allocation4], 4294967168 }
 0x675   :  { %6301 = vsyncpa [#allocation3], 1 }
 0x676   :  { %6302 = vsyncpa [#allocation6], 1 }
 0x677   :  { %6303 = vsyncpa [#allocation9], 1 }
 0x678   :  { %6304 = vsyncpa [#allocation12], 1 }
 0x679   :  { %6305 = vsyncpa [#allocation15], 1 }
 0x67a   :  { %6306 = vsyncpa [#allocation4], 1 }

</bundles_post_ra>
